<compile_context>
chip_gen: v6e
topology: v6e:2x2x1
jax: 0.10.0
libtpu: 0.0.40
codegen_flags: <defaults>
</compile_context>

<pallas_src>
import jax
import jax.numpy as jnp
from jax import lax
from jax.experimental import pallas as pl
from jax.experimental.pallas import tpu as pltpu

DIM_REPR = 16       # dim_repr
DIM_MAT = 8         # dim_matrix
INIT_SCALE = 0.2
INIT_DIAG = 1.0

CHUNK = 128         # samples per inner chunk (batch on the 128-lane axis)
MAX_B_TILE = 512    # samples per grid step = CHUNK * n_chunks; amortizes ~0.35us/step
N_SQUARE = 6        # scaling-and-squaring: scale by 2**-6, square 6 times
# Degree-9 Taylor on the scaled matrix: err ~ (||M||/64)^10 / 10!  (<< f32 eps for
# moderate ||M||, up to ~O(10)). NOTE: fixed scaling; extreme trained weights / |x|
# would need a norm-based squaring count (cheap row-sum reduction) - documented risk.

_C = [1.0, 1.0, 1.0 / 2, 1.0 / 6, 1.0 / 24, 1.0 / 120,
      1.0 / 720, 1.0 / 5040, 1.0 / 40320, 1.0 / 362880]   # 1/k!


def periodic_mlayer_kernel(x_ref, w1_ref, b1_ref, ut_ref, w2_ref, out_ref):
    D = DIM_MAT
    n_chunks = x_ref.shape[1]
    bt = x_ref.shape[2]                      # == CHUNK
    scale = jnp.float32(1.0 / (2.0 ** N_SQUARE))

    # Batched identity, built once per grid step and reused by every chunk.
    row = lax.broadcasted_iota(jnp.int32, (D, D, bt), 0)
    col = lax.broadcasted_iota(jnp.int32, (D, D, bt), 1)
    ident = (row == col).astype(jnp.float32)

    w1 = w1_ref[...]                         # (R, 1)
    bias1 = b1_ref[...]                      # (R, 1)
    ut = ut_ref[...]                         # (D*D, R)
    w2 = w2_ref[...]                         # (1, D*D)

    def bmm(p, q):
        # Per-lane (per-sample) 8x8 matmul: C[i,k,b] = sum_j p[i,j,b] * q[j,k,b].
        # p supplies the sublane-broadcast slices; q is consumed as whole vregs.
        r = p[:, 0:1, :] * q[0:1, :, :]
        for j in range(1, D):
            r = r + p[:, j:j + 1, :] * q[j:j + 1, :, :]
        return r

    def chunk_body(c, carry):
        # ---- lin1 (transposed): h_T[r, b] = W1[r,0] * x[b] + b1[r]     (VPU)
        x_row = x_ref[:, pl.ds(c, 1), :].reshape(1, bt)          # (1, CHUNK)
        h_t = w1 * x_row + bias1                                 # (R, CHUNK)

        # ---- M-layer contraction (MXU): M_flat[j*D+k, b] = sum_r U[r,j,k] * h_T[r,b]
        m_flat = jnp.dot(ut, h_t, preferred_element_type=jnp.float32)   # (D*D, CHUNK)
        a = m_flat.reshape(D, D, bt) * scale                     # scaled; batch on lanes

        # ---- expm: Paterson-Stockmeyer degree-9 Taylor (4 bmms) + 6 squarings (VPU)
        a2 = bmm(a, a)
        a3 = bmm(a, a2)
        p2 = (jnp.float32(_C[6]) * ident + jnp.float32(_C[7]) * a
              + jnp.float32(_C[8]) * a2 + jnp.float32(_C[9]) * a3)
        p1 = jnp.float32(_C[3]) * ident + jnp.float32(_C[4]) * a + jnp.float32(_C[5]) * a2
        p0 = ident + a + jnp.float32(_C[2]) * a2                 # a, a2 dead after this
        t = p1 + bmm(a3, p2)
        acc = p0 + bmm(a3, t)                                    # = sum_{k<=9} A^k / k!
        for _ in range(N_SQUARE):
            acc = bmm(acc, acc)

        # ---- Flatten + lin2 (MXU; bias added in the wrapper)
        e_flat = acc.reshape(D * D, bt)
        res = jnp.dot(w2, e_flat, preferred_element_type=jnp.float32)   # (1, CHUNK)
        out_ref[:, pl.ds(c, 1), :] = res.reshape(1, 1, bt)
        return carry

    lax.fori_loop(0, n_chunks, chunk_body, 0)


def periodic_mlayer_forward(x, w1, b1, rep_to_exp, w2, b2, *, max_b_tile=MAX_B_TILE):
    """x: (B, 1); w1: (R, 1); b1: (R,); rep_to_exp: (R, D, D); w2: (1, D*D); b2: (1,)."""
    B = x.shape[0]
    R = w1.shape[0]
    D = rep_to_exp.shape[1]

    # Keep >= 2 grid blocks (v7x has 2 TensorCores): cap the tile at ceil(B/2),
    # rounded up to the 128-lane chunk size.
    cap = max(CHUNK, (((B + 1) // 2) + CHUNK - 1) // CHUNK * CHUNK)
    b_tile = max(CHUNK, (min(max_b_tile, cap) // CHUNK) * CHUNK)
    n_chunks = b_tile // CHUNK

    num_blocks = (B + b_tile - 1) // b_tile
    b_pad = num_blocks * b_tile

    x_flat = x.reshape(B).astype(jnp.float32)
    x_pad = jnp.pad(x_flat, (0, b_pad - B)).reshape(num_blocks, n_chunks, CHUNK)

    w1c = w1.reshape(R, 1).astype(jnp.float32)
    b1c = b1.reshape(R, 1).astype(jnp.float32)
    # U_flat^T[j*D + k, r] = U[r, j, k]   (row-major flatten == torch Flatten order)
    ut = jnp.transpose(rep_to_exp.reshape(R, D * D), (1, 0)).astype(jnp.float32)
    w2r = w2.reshape(1, D * D).astype(jnp.float32)

    out = pl.pallas_call(
        periodic_mlayer_kernel,
        out_shape=jax.ShapeDtypeStruct((num_blocks, n_chunks, CHUNK), jnp.float32),
        grid=(num_blocks,),
        in_specs=[
            pl.BlockSpec((1, n_chunks, CHUNK), lambda i: (i, 0, 0)),   # x tile (lane-dense)
            pl.BlockSpec((R, 1), lambda i: (0, 0)),                    # lin1 weight (column)
            pl.BlockSpec((R, 1), lambda i: (0, 0)),                    # lin1 bias (column)
            pl.BlockSpec((D * D, R), lambda i: (0, 0)),                # U flattened & transposed
            pl.BlockSpec((1, D * D), lambda i: (0, 0)),                # lin2 weight (row)
        ],
        out_specs=pl.BlockSpec((1, n_chunks, CHUNK), lambda i: (i, 0, 0)),
        compiler_params=pltpu.CompilerParams(dimension_semantics=("parallel",)),
    )(x_pad, w1c, b1c, ut, w2r)

    out = out.reshape(b_pad)[:B].reshape(B, 1)
    return out + b2.reshape(1, 1).astype(jnp.float32)


def reference_forward(x, w1, b1, rep_to_exp, w2, b2):
    h = x @ w1.T + b1[None, :]                           # (B, R)
    M = jnp.einsum("br,rjk->bjk", h, rep_to_exp)         # (B, D, D)
    E = jax.vmap(jax.scipy.linalg.expm)(M)               # (B, D, D)
    flat = E.reshape(E.shape[0], -1)
    return flat @ w2.T + b2[None, :]


if __name__ == "__main__":
    # B=600 exercises multiple grid blocks (2), a multi-chunk tile (3 x 128) and padding.
    B, R, D = 600, DIM_REPR, DIM_MAT
    key = jax.random.PRNGKey(0)
    kx, kw1, kb1, ku, kw2, kb2 = jax.random.split(key, 6)

    # inputs
    x = jax.random.normal(kx, (B, 1), dtype=jnp.float32)

    # parameters (deterministic, synthetic)
    w1 = 0.5 * jax.random.normal(kw1, (R, 1), dtype=jnp.float32)       # lin1.weight
    b1 = 0.1 * jax.random.normal(kb1, (R,), dtype=jnp.float32)         # lin1.bias
    # _init_U: Normal(0, init_scale) then subtract init_diag on each matrix diagonal
    rep_to_exp = INIT_SCALE * jax.random.normal(ku, (R, D, D), dtype=jnp.float32)
    rep_to_exp = rep_to_exp - INIT_DIAG * jnp.eye(D, dtype=jnp.float32)[None, :, :]
    w2 = 0.1 * jax.random.normal(kw2, (1, D * D), dtype=jnp.float32)   # lin2.weight
    b2 = 0.1 * jax.random.normal(kb2, (1,), dtype=jnp.float32)         # lin2.bias

    out = periodic_mlayer_forward(x, w1, b1, rep_to_exp, w2, b2)
    out = jax.block_until_ready(out)

    ref = reference_forward(x, w1, b1, rep_to_exp, w2, b2)
    assert out.shape == (B, 1)
    assert jnp.allclose(out, ref, rtol=2e-3, atol=2e-3), (out, ref)

    print("KERNEL_OK")
</pallas_src>

<mosaic_0001>
module attributes {stable_mosaic.version = 11 : i64} {
  func.func @periodic_mlayer_kernel(%arg0: i32, %arg1: memref<1x3x128xf32, #tpu.memory_space<vmem>>, %arg2: memref<16x1xf32, #tpu.memory_space<vmem>>, %arg3: memref<16x1xf32, #tpu.memory_space<vmem>>, %arg4: memref<64x16xf32, #tpu.memory_space<vmem>>, %arg5: memref<1x64xf32, #tpu.memory_space<vmem>>, %arg6: memref<1x3x128xf32, #tpu.memory_space<vmem>>) attributes {dimension_semantics = [#tpu.dimension_semantics<parallel>], iteration_bounds = array<i64: 2>, scalar_prefetch = 0 : i64, scratch_operands = 0 : i64, tpu.core_type = #tpu.core_type<tc>, window_params = [{transform_indices = @transform_0, window_bounds = array<i64: 1, 3, 128>}, {pipeline_mode = #tpu.pipeline_mode<synchronous>, transform_indices = @transform_1, window_bounds = array<i64: 16, 1>}, {pipeline_mode = #tpu.pipeline_mode<synchronous>, transform_indices = @transform_2, window_bounds = array<i64: 16, 1>}, {pipeline_mode = #tpu.pipeline_mode<synchronous>, transform_indices = @transform_3, window_bounds = array<i64: 64, 16>}, {pipeline_mode = #tpu.pipeline_mode<synchronous>, transform_indices = @transform_4, window_bounds = array<i64: 1, 64>}, {transform_indices = @transform_5, window_bounds = array<i64: 1, 3, 128>}]} {
    %0 = tpu.iota {dimensions = array<i32: 0>} : vector<8x8x128xi32>
    %1 = tpu.iota {dimensions = array<i32: 1>} : vector<8x8x128xi32>
    %2 = arith.cmpi eq, %0, %1 : vector<8x8x128xi32>
    %3 = arith.extui %2 : vector<8x8x128xi1> to vector<8x8x128xi32>
    %4 = arith.sitofp %3 : vector<8x8x128xi32> to vector<8x8x128xf32>
    %c0 = arith.constant 0 : index
    %c0_0 = arith.constant 0 : index
    %5 = vector.load %arg2[%c0, %c0_0] : memref<16x1xf32, #tpu.memory_space<vmem>>, vector<16x1xf32>
    %c0_1 = arith.constant 0 : index
    %c0_2 = arith.constant 0 : index
    %6 = vector.load %arg3[%c0_1, %c0_2] : memref<16x1xf32, #tpu.memory_space<vmem>>, vector<16x1xf32>
    %c0_3 = arith.constant 0 : index
    %c0_4 = arith.constant 0 : index
    %7 = vector.load %arg4[%c0_3, %c0_4] : memref<64x16xf32, #tpu.memory_space<vmem>>, vector<64x16xf32>
    %c0_5 = arith.constant 0 : index
    %c0_6 = arith.constant 0 : index
    %8 = vector.load %arg5[%c0_5, %c0_6] : memref<1x64xf32, #tpu.memory_space<vmem>>, vector<1x64xf32>
    %cst = arith.constant 1.562500e-02 : f32
    %c0_i32 = arith.constant 0 : i32
    %c3_i32 = arith.constant 3 : i32
    %9 = arith.addi %c0_i32, %c3_i32 : i32
    %c1_i32 = arith.constant 1 : i32
    scf.for %arg7 = %c0_i32 to %9 step %c1_i32  : i32 {
      %c0_8 = arith.constant 0 : index
      %10 = arith.index_cast %arg7 : i32 to index
      %c0_9 = arith.constant 0 : index
      %11 = vector.load %arg1[%c0_8, %10, %c0_9] : memref<1x3x128xf32, #tpu.memory_space<vmem>>, vector<1x1x128xf32>
      %12 = vector.shape_cast %11 : vector<1x1x128xf32> to vector<1x128xf32>
      %13 = vector.broadcast %5 : vector<16x1xf32> to vector<16x128xf32>
      %14 = vector.broadcast %12 : vector<1x128xf32> to vector<16x128xf32>
      %15 = arith.mulf %13, %14 : vector<16x128xf32>
      %16 = vector.broadcast %6 : vector<16x1xf32> to vector<16x128xf32>
      %17 = arith.addf %15, %16 : vector<16x128xf32>
      %cst_10 = arith.constant dense<0.000000e+00> : vector<64x128xf32>
      %18 = tpu.matmul %7, %17, %cst_10 {dimension_numbers = #tpu.dot_dimension_numbers<[1], [0], [0], [1], [0, 0, 1, 1], [], []>} : vector<64x16xf32>, vector<16x128xf32>, vector<64x128xf32> -> vector<64x128xf32>
      %19 = vector.shape_cast %18 : vector<64x128xf32> to vector<8x8x128xf32>
      %20 = vector.broadcast %cst : f32 to vector<8x8x128xf32>
      %21 = arith.mulf %19, %20 : vector<8x8x128xf32>
      %22 = vector.extract_strided_slice %21 {offsets = [0, 0, 0], sizes = [8, 1, 128], strides = [1, 1, 1]} : vector<8x8x128xf32> to vector<8x1x128xf32>
      %23 = vector.extract_strided_slice %21 {offsets = [0, 0, 0], sizes = [1, 8, 128], strides = [1, 1, 1]} : vector<8x8x128xf32> to vector<1x8x128xf32>
      %24 = vector.broadcast %22 : vector<8x1x128xf32> to vector<8x8x128xf32>
      %25 = vector.broadcast %23 : vector<1x8x128xf32> to vector<8x8x128xf32>
      %26 = arith.mulf %24, %25 : vector<8x8x128xf32>
      %27 = vector.extract_strided_slice %21 {offsets = [0, 1, 0], sizes = [8, 1, 128], strides = [1, 1, 1]} : vector<8x8x128xf32> to vector<8x1x128xf32>
      %28 = vector.extract_strided_slice %21 {offsets = [1, 0, 0], sizes = [1, 8, 128], strides = [1, 1, 1]} : vector<8x8x128xf32> to vector<1x8x128xf32>
      %29 = vector.broadcast %27 : vector<8x1x128xf32> to vector<8x8x128xf32>
      %30 = vector.broadcast %28 : vector<1x8x128xf32> to vector<8x8x128xf32>
      %31 = arith.mulf %29, %30 : vector<8x8x128xf32>
      %32 = arith.addf %26, %31 : vector<8x8x128xf32>
      %33 = vector.extract_strided_slice %21 {offsets = [0, 2, 0], sizes = [8, 1, 128], strides = [1, 1, 1]} : vector<8x8x128xf32> to vector<8x1x128xf32>
      %34 = vector.extract_strided_slice %21 {offsets = [2, 0, 0], sizes = [1, 8, 128], strides = [1, 1, 1]} : vector<8x8x128xf32> to vector<1x8x128xf32>
      %35 = vector.broadcast %33 : vector<8x1x128xf32> to vector<8x8x128xf32>
      %36 = vector.broadcast %34 : vector<1x8x128xf32> to vector<8x8x128xf32>
      %37 = arith.mulf %35, %36 : vector<8x8x128xf32>
      %38 = arith.addf %32, %37 : vector<8x8x128xf32>
      %39 = vector.extract_strided_slice %21 {offsets = [0, 3, 0], sizes = [8, 1, 128], strides = [1, 1, 1]} : vector<8x8x128xf32> to vector<8x1x128xf32>
      %40 = vector.extract_strided_slice %21 {offsets = [3, 0, 0], sizes = [1, 8, 128], strides = [1, 1, 1]} : vector<8x8x128xf32> to vector<1x8x128xf32>
      %41 = vector.broadcast %39 : vector<8x1x128xf32> to vector<8x8x128xf32>
      %42 = vector.broadcast %40 : vector<1x8x128xf32> to vector<8x8x128xf32>
      %43 = arith.mulf %41, %42 : vector<8x8x128xf32>
      %44 = arith.addf %38, %43 : vector<8x8x128xf32>
      %45 = vector.extract_strided_slice %21 {offsets = [0, 4, 0], sizes = [8, 1, 128], strides = [1, 1, 1]} : vector<8x8x128xf32> to vector<8x1x128xf32>
      %46 = vector.extract_strided_slice %21 {offsets = [4, 0, 0], sizes = [1, 8, 128], strides = [1, 1, 1]} : vector<8x8x128xf32> to vector<1x8x128xf32>
      %47 = vector.broadcast %45 : vector<8x1x128xf32> to vector<8x8x128xf32>
      %48 = vector.broadcast %46 : vector<1x8x128xf32> to vector<8x8x128xf32>
      %49 = arith.mulf %47, %48 : vector<8x8x128xf32>
      %50 = arith.addf %44, %49 : vector<8x8x128xf32>
      %51 = vector.extract_strided_slice %21 {offsets = [0, 5, 0], sizes = [8, 1, 128], strides = [1, 1, 1]} : vector<8x8x128xf32> to vector<8x1x128xf32>
      %52 = vector.extract_strided_slice %21 {offsets = [5, 0, 0], sizes = [1, 8, 128], strides = [1, 1, 1]} : vector<8x8x128xf32> to vector<1x8x128xf32>
      %53 = vector.broadcast %51 : vector<8x1x128xf32> to vector<8x8x128xf32>
      %54 = vector.broadcast %52 : vector<1x8x128xf32> to vector<8x8x128xf32>
      %55 = arith.mulf %53, %54 : vector<8x8x128xf32>
      %56 = arith.addf %50, %55 : vector<8x8x128xf32>
      %57 = vector.extract_strided_slice %21 {offsets = [0, 6, 0], sizes = [8, 1, 128], strides = [1, 1, 1]} : vector<8x8x128xf32> to vector<8x1x128xf32>
      %58 = vector.extract_strided_slice %21 {offsets = [6, 0, 0], sizes = [1, 8, 128], strides = [1, 1, 1]} : vector<8x8x128xf32> to vector<1x8x128xf32>
      %59 = vector.broadcast %57 : vector<8x1x128xf32> to vector<8x8x128xf32>
      %60 = vector.broadcast %58 : vector<1x8x128xf32> to vector<8x8x128xf32>
      %61 = arith.mulf %59, %60 : vector<8x8x128xf32>
      %62 = arith.addf %56, %61 : vector<8x8x128xf32>
      %63 = vector.extract_strided_slice %21 {offsets = [0, 7, 0], sizes = [8, 1, 128], strides = [1, 1, 1]} : vector<8x8x128xf32> to vector<8x1x128xf32>
      %64 = vector.extract_strided_slice %21 {offsets = [7, 0, 0], sizes = [1, 8, 128], strides = [1, 1, 1]} : vector<8x8x128xf32> to vector<1x8x128xf32>
      %65 = vector.broadcast %63 : vector<8x1x128xf32> to vector<8x8x128xf32>
      %66 = vector.broadcast %64 : vector<1x8x128xf32> to vector<8x8x128xf32>
      %67 = arith.mulf %65, %66 : vector<8x8x128xf32>
      %68 = arith.addf %62, %67 : vector<8x8x128xf32>
      %69 = vector.extract_strided_slice %21 {offsets = [0, 0, 0], sizes = [8, 1, 128], strides = [1, 1, 1]} : vector<8x8x128xf32> to vector<8x1x128xf32>
      %70 = vector.extract_strided_slice %68 {offsets = [0, 0, 0], sizes = [1, 8, 128], strides = [1, 1, 1]} : vector<8x8x128xf32> to vector<1x8x128xf32>
      %71 = vector.broadcast %69 : vector<8x1x128xf32> to vector<8x8x128xf32>
      %72 = vector.broadcast %70 : vector<1x8x128xf32> to vector<8x8x128xf32>
      %73 = arith.mulf %71, %72 : vector<8x8x128xf32>
      %74 = vector.extract_strided_slice %21 {offsets = [0, 1, 0], sizes = [8, 1, 128], strides = [1, 1, 1]} : vector<8x8x128xf32> to vector<8x1x128xf32>
      %75 = vector.extract_strided_slice %68 {offsets = [1, 0, 0], sizes = [1, 8, 128], strides = [1, 1, 1]} : vector<8x8x128xf32> to vector<1x8x128xf32>
      %76 = vector.broadcast %74 : vector<8x1x128xf32> to vector<8x8x128xf32>
      %77 = vector.broadcast %75 : vector<1x8x128xf32> to vector<8x8x128xf32>
      %78 = arith.mulf %76, %77 : vector<8x8x128xf32>
      %79 = arith.addf %73, %78 : vector<8x8x128xf32>
      %80 = vector.extract_strided_slice %21 {offsets = [0, 2, 0], sizes = [8, 1, 128], strides = [1, 1, 1]} : vector<8x8x128xf32> to vector<8x1x128xf32>
      %81 = vector.extract_strided_slice %68 {offsets = [2, 0, 0], sizes = [1, 8, 128], strides = [1, 1, 1]} : vector<8x8x128xf32> to vector<1x8x128xf32>
      %82 = vector.broadcast %80 : vector<8x1x128xf32> to vector<8x8x128xf32>
      %83 = vector.broadcast %81 : vector<1x8x128xf32> to vector<8x8x128xf32>
      %84 = arith.mulf %82, %83 : vector<8x8x128xf32>
      %85 = arith.addf %79, %84 : vector<8x8x128xf32>
      %86 = vector.extract_strided_slice %21 {offsets = [0, 3, 0], sizes = [8, 1, 128], strides = [1, 1, 1]} : vector<8x8x128xf32> to vector<8x1x128xf32>
      %87 = vector.extract_strided_slice %68 {offsets = [3, 0, 0], sizes = [1, 8, 128], strides = [1, 1, 1]} : vector<8x8x128xf32> to vector<1x8x128xf32>
      %88 = vector.broadcast %86 : vector<8x1x128xf32> to vector<8x8x128xf32>
      %89 = vector.broadcast %87 : vector<1x8x128xf32> to vector<8x8x128xf32>
      %90 = arith.mulf %88, %89 : vector<8x8x128xf32>
      %91 = arith.addf %85, %90 : vector<8x8x128xf32>
      %92 = vector.extract_strided_slice %21 {offsets = [0, 4, 0], sizes = [8, 1, 128], strides = [1, 1, 1]} : vector<8x8x128xf32> to vector<8x1x128xf32>
      %93 = vector.extract_strided_slice %68 {offsets = [4, 0, 0], sizes = [1, 8, 128], strides = [1, 1, 1]} : vector<8x8x128xf32> to vector<1x8x128xf32>
      %94 = vector.broadcast %92 : vector<8x1x128xf32> to vector<8x8x128xf32>
      %95 = vector.broadcast %93 : vector<1x8x128xf32> to vector<8x8x128xf32>
      %96 = arith.mulf %94, %95 : vector<8x8x128xf32>
      %97 = arith.addf %91, %96 : vector<8x8x128xf32>
      %98 = vector.extract_strided_slice %21 {offsets = [0, 5, 0], sizes = [8, 1, 128], strides = [1, 1, 1]} : vector<8x8x128xf32> to vector<8x1x128xf32>
      %99 = vector.extract_strided_slice %68 {offsets = [5, 0, 0], sizes = [1, 8, 128], strides = [1, 1, 1]} : vector<8x8x128xf32> to vector<1x8x128xf32>
      %100 = vector.broadcast %98 : vector<8x1x128xf32> to vector<8x8x128xf32>
      %101 = vector.broadcast %99 : vector<1x8x128xf32> to vector<8x8x128xf32>
      %102 = arith.mulf %100, %101 : vector<8x8x128xf32>
      %103 = arith.addf %97, %102 : vector<8x8x128xf32>
      %104 = vector.extract_strided_slice %21 {offsets = [0, 6, 0], sizes = [8, 1, 128], strides = [1, 1, 1]} : vector<8x8x128xf32> to vector<8x1x128xf32>
      %105 = vector.extract_strided_slice %68 {offsets = [6, 0, 0], sizes = [1, 8, 128], strides = [1, 1, 1]} : vector<8x8x128xf32> to vector<1x8x128xf32>
      %106 = vector.broadcast %104 : vector<8x1x128xf32> to vector<8x8x128xf32>
      %107 = vector.broadcast %105 : vector<1x8x128xf32> to vector<8x8x128xf32>
      %108 = arith.mulf %106, %107 : vector<8x8x128xf32>
      %109 = arith.addf %103, %108 : vector<8x8x128xf32>
      %110 = vector.extract_strided_slice %21 {offsets = [0, 7, 0], sizes = [8, 1, 128], strides = [1, 1, 1]} : vector<8x8x128xf32> to vector<8x1x128xf32>
      %111 = vector.extract_strided_slice %68 {offsets = [7, 0, 0], sizes = [1, 8, 128], strides = [1, 1, 1]} : vector<8x8x128xf32> to vector<1x8x128xf32>
      %112 = vector.broadcast %110 : vector<8x1x128xf32> to vector<8x8x128xf32>
      %113 = vector.broadcast %111 : vector<1x8x128xf32> to vector<8x8x128xf32>
      %114 = arith.mulf %112, %113 : vector<8x8x128xf32>
      %115 = arith.addf %109, %114 : vector<8x8x128xf32>
      %cst_11 = arith.constant 0.00138888892 : f32
      %116 = vector.broadcast %cst_11 : f32 to vector<8x8x128xf32>
      %117 = arith.mulf %116, %4 : vector<8x8x128xf32>
      %cst_12 = arith.constant 1.98412701E-4 : f32
      %118 = vector.broadcast %cst_12 : f32 to vector<8x8x128xf32>
      %119 = arith.mulf %118, %21 : vector<8x8x128xf32>
      %120 = arith.addf %117, %119 : vector<8x8x128xf32>
      %cst_13 = arith.constant 2.48015876E-5 : f32
      %121 = vector.broadcast %cst_13 : f32 to vector<8x8x128xf32>
      %122 = arith.mulf %121, %68 : vector<8x8x128xf32>
      %123 = arith.addf %120, %122 : vector<8x8x128xf32>
      %cst_14 = arith.constant 2.75573188E-6 : f32
      %124 = vector.broadcast %cst_14 : f32 to vector<8x8x128xf32>
      %125 = arith.mulf %124, %115 : vector<8x8x128xf32>
      %126 = arith.addf %123, %125 : vector<8x8x128xf32>
      %cst_15 = arith.constant 0.166666672 : f32
      %127 = vector.broadcast %cst_15 : f32 to vector<8x8x128xf32>
      %128 = arith.mulf %127, %4 : vector<8x8x128xf32>
      %cst_16 = arith.constant 0.0416666679 : f32
      %129 = vector.broadcast %cst_16 : f32 to vector<8x8x128xf32>
      %130 = arith.mulf %129, %21 : vector<8x8x128xf32>
      %131 = arith.addf %128, %130 : vector<8x8x128xf32>
      %cst_17 = arith.constant 0.00833333377 : f32
      %132 = vector.broadcast %cst_17 : f32 to vector<8x8x128xf32>
      %133 = arith.mulf %132, %68 : vector<8x8x128xf32>
      %134 = arith.addf %131, %133 : vector<8x8x128xf32>
      %135 = arith.addf %4, %21 : vector<8x8x128xf32>
      %cst_18 = arith.constant 5.000000e-01 : f32
      %136 = vector.broadcast %cst_18 : f32 to vector<8x8x128xf32>
      %137 = arith.mulf %136, %68 : vector<8x8x128xf32>
      %138 = arith.addf %135, %137 : vector<8x8x128xf32>
      %139 = vector.extract_strided_slice %115 {offsets = [0, 0, 0], sizes = [8, 1, 128], strides = [1, 1, 1]} : vector<8x8x128xf32> to vector<8x1x128xf32>
      %140 = vector.extract_strided_slice %126 {offsets = [0, 0, 0], sizes = [1, 8, 128], strides = [1, 1, 1]} : vector<8x8x128xf32> to vector<1x8x128xf32>
      %141 = vector.broadcast %139 : vector<8x1x128xf32> to vector<8x8x128xf32>
      %142 = vector.broadcast %140 : vector<1x8x128xf32> to vector<8x8x128xf32>
      %143 = arith.mulf %141, %142 : vector<8x8x128xf32>
      %144 = vector.extract_strided_slice %115 {offsets = [0, 1, 0], sizes = [8, 1, 128], strides = [1, 1, 1]} : vector<8x8x128xf32> to vector<8x1x128xf32>
      %145 = vector.extract_strided_slice %126 {offsets = [1, 0, 0], sizes = [1, 8, 128], strides = [1, 1, 1]} : vector<8x8x128xf32> to vector<1x8x128xf32>
      %146 = vector.broadcast %144 : vector<8x1x128xf32> to vector<8x8x128xf32>
      %147 = vector.broadcast %145 : vector<1x8x128xf32> to vector<8x8x128xf32>
      %148 = arith.mulf %146, %147 : vector<8x8x128xf32>
      %149 = arith.addf %143, %148 : vector<8x8x128xf32>
      %150 = vector.extract_strided_slice %115 {offsets = [0, 2, 0], sizes = [8, 1, 128], strides = [1, 1, 1]} : vector<8x8x128xf32> to vector<8x1x128xf32>
      %151 = vector.extract_strided_slice %126 {offsets = [2, 0, 0], sizes = [1, 8, 128], strides = [1, 1, 1]} : vector<8x8x128xf32> to vector<1x8x128xf32>
      %152 = vector.broadcast %150 : vector<8x1x128xf32> to vector<8x8x128xf32>
      %153 = vector.broadcast %151 : vector<1x8x128xf32> to vector<8x8x128xf32>
      %154 = arith.mulf %152, %153 : vector<8x8x128xf32>
      %155 = arith.addf %149, %154 : vector<8x8x128xf32>
      %156 = vector.extract_strided_slice %115 {offsets = [0, 3, 0], sizes = [8, 1, 128], strides = [1, 1, 1]} : vector<8x8x128xf32> to vector<8x1x128xf32>
      %157 = vector.extract_strided_slice %126 {offsets = [3, 0, 0], sizes = [1, 8, 128], strides = [1, 1, 1]} : vector<8x8x128xf32> to vector<1x8x128xf32>
      %158 = vector.broadcast %156 : vector<8x1x128xf32> to vector<8x8x128xf32>
      %159 = vector.broadcast %157 : vector<1x8x128xf32> to vector<8x8x128xf32>
      %160 = arith.mulf %158, %159 : vector<8x8x128xf32>
      %161 = arith.addf %155, %160 : vector<8x8x128xf32>
      %162 = vector.extract_strided_slice %115 {offsets = [0, 4, 0], sizes = [8, 1, 128], strides = [1, 1, 1]} : vector<8x8x128xf32> to vector<8x1x128xf32>
      %163 = vector.extract_strided_slice %126 {offsets = [4, 0, 0], sizes = [1, 8, 128], strides = [1, 1, 1]} : vector<8x8x128xf32> to vector<1x8x128xf32>
      %164 = vector.broadcast %162 : vector<8x1x128xf32> to vector<8x8x128xf32>
      %165 = vector.broadcast %163 : vector<1x8x128xf32> to vector<8x8x128xf32>
      %166 = arith.mulf %164, %165 : vector<8x8x128xf32>
      %167 = arith.addf %161, %166 : vector<8x8x128xf32>
      %168 = vector.extract_strided_slice %115 {offsets = [0, 5, 0], sizes = [8, 1, 128], strides = [1, 1, 1]} : vector<8x8x128xf32> to vector<8x1x128xf32>
      %169 = vector.extract_strided_slice %126 {offsets = [5, 0, 0], sizes = [1, 8, 128], strides = [1, 1, 1]} : vector<8x8x128xf32> to vector<1x8x128xf32>
      %170 = vector.broadcast %168 : vector<8x1x128xf32> to vector<8x8x128xf32>
      %171 = vector.broadcast %169 : vector<1x8x128xf32> to vector<8x8x128xf32>
      %172 = arith.mulf %170, %171 : vector<8x8x128xf32>
      %173 = arith.addf %167, %172 : vector<8x8x128xf32>
      %174 = vector.extract_strided_slice %115 {offsets = [0, 6, 0], sizes = [8, 1, 128], strides = [1, 1, 1]} : vector<8x8x128xf32> to vector<8x1x128xf32>
      %175 = vector.extract_strided_slice %126 {offsets = [6, 0, 0], sizes = [1, 8, 128], strides = [1, 1, 1]} : vector<8x8x128xf32> to vector<1x8x128xf32>
      %176 = vector.broadcast %174 : vector<8x1x128xf32> to vector<8x8x128xf32>
      %177 = vector.broadcast %175 : vector<1x8x128xf32> to vector<8x8x128xf32>
      %178 = arith.mulf %176, %177 : vector<8x8x128xf32>
      %179 = arith.addf %173, %178 : vector<8x8x128xf32>
      %180 = vector.extract_strided_slice %115 {offsets = [0, 7, 0], sizes = [8, 1, 128], strides = [1, 1, 1]} : vector<8x8x128xf32> to vector<8x1x128xf32>
      %181 = vector.extract_strided_slice %126 {offsets = [7, 0, 0], sizes = [1, 8, 128], strides = [1, 1, 1]} : vector<8x8x128xf32> to vector<1x8x128xf32>
      %182 = vector.broadcast %180 : vector<8x1x128xf32> to vector<8x8x128xf32>
      %183 = vector.broadcast %181 : vector<1x8x128xf32> to vector<8x8x128xf32>
      %184 = arith.mulf %182, %183 : vector<8x8x128xf32>
      %185 = arith.addf %179, %184 : vector<8x8x128xf32>
      %186 = arith.addf %134, %185 : vector<8x8x128xf32>
      %187 = vector.extract_strided_slice %115 {offsets = [0, 0, 0], sizes = [8, 1, 128], strides = [1, 1, 1]} : vector<8x8x128xf32> to vector<8x1x128xf32>
      %188 = vector.extract_strided_slice %186 {offsets = [0, 0, 0], sizes = [1, 8, 128], strides = [1, 1, 1]} : vector<8x8x128xf32> to vector<1x8x128xf32>
      %189 = vector.broadcast %187 : vector<8x1x128xf32> to vector<8x8x128xf32>
      %190 = vector.broadcast %188 : vector<1x8x128xf32> to vector<8x8x128xf32>
      %191 = arith.mulf %189, %190 : vector<8x8x128xf32>
      %192 = vector.extract_strided_slice %115 {offsets = [0, 1, 0], sizes = [8, 1, 128], strides = [1, 1, 1]} : vector<8x8x128xf32> to vector<8x1x128xf32>
      %193 = vector.extract_strided_slice %186 {offsets = [1, 0, 0], sizes = [1, 8, 128], strides = [1, 1, 1]} : vector<8x8x128xf32> to vector<1x8x128xf32>
      %194 = vector.broadcast %192 : vector<8x1x128xf32> to vector<8x8x128xf32>
      %195 = vector.broadcast %193 : vector<1x8x128xf32> to vector<8x8x128xf32>
      %196 = arith.mulf %194, %195 : vector<8x8x128xf32>
      %197 = arith.addf %191, %196 : vector<8x8x128xf32>
      %198 = vector.extract_strided_slice %115 {offsets = [0, 2, 0], sizes = [8, 1, 128], strides = [1, 1, 1]} : vector<8x8x128xf32> to vector<8x1x128xf32>
      %199 = vector.extract_strided_slice %186 {offsets = [2, 0, 0], sizes = [1, 8, 128], strides = [1, 1, 1]} : vector<8x8x128xf32> to vector<1x8x128xf32>
      %200 = vector.broadcast %198 : vector<8x1x128xf32> to vector<8x8x128xf32>
      %201 = vector.broadcast %199 : vector<1x8x128xf32> to vector<8x8x128xf32>
      %202 = arith.mulf %200, %201 : vector<8x8x128xf32>
      %203 = arith.addf %197, %202 : vector<8x8x128xf32>
      %204 = vector.extract_strided_slice %115 {offsets = [0, 3, 0], sizes = [8, 1, 128], strides = [1, 1, 1]} : vector<8x8x128xf32> to vector<8x1x128xf32>
      %205 = vector.extract_strided_slice %186 {offsets = [3, 0, 0], sizes = [1, 8, 128], strides = [1, 1, 1]} : vector<8x8x128xf32> to vector<1x8x128xf32>
      %206 = vector.broadcast %204 : vector<8x1x128xf32> to vector<8x8x128xf32>
      %207 = vector.broadcast %205 : vector<1x8x128xf32> to vector<8x8x128xf32>
      %208 = arith.mulf %206, %207 : vector<8x8x128xf32>
      %209 = arith.addf %203, %208 : vector<8x8x128xf32>
      %210 = vector.extract_strided_slice %115 {offsets = [0, 4, 0], sizes = [8, 1, 128], strides = [1, 1, 1]} : vector<8x8x128xf32> to vector<8x1x128xf32>
      %211 = vector.extract_strided_slice %186 {offsets = [4, 0, 0], sizes = [1, 8, 128], strides = [1, 1, 1]} : vector<8x8x128xf32> to vector<1x8x128xf32>
      %212 = vector.broadcast %210 : vector<8x1x128xf32> to vector<8x8x128xf32>
      %213 = vector.broadcast %211 : vector<1x8x128xf32> to vector<8x8x128xf32>
      %214 = arith.mulf %212, %213 : vector<8x8x128xf32>
      %215 = arith.addf %209, %214 : vector<8x8x128xf32>
      %216 = vector.extract_strided_slice %115 {offsets = [0, 5, 0], sizes = [8, 1, 128], strides = [1, 1, 1]} : vector<8x8x128xf32> to vector<8x1x128xf32>
      %217 = vector.extract_strided_slice %186 {offsets = [5, 0, 0], sizes = [1, 8, 128], strides = [1, 1, 1]} : vector<8x8x128xf32> to vector<1x8x128xf32>
      %218 = vector.broadcast %216 : vector<8x1x128xf32> to vector<8x8x128xf32>
      %219 = vector.broadcast %217 : vector<1x8x128xf32> to vector<8x8x128xf32>
      %220 = arith.mulf %218, %219 : vector<8x8x128xf32>
      %221 = arith.addf %215, %220 : vector<8x8x128xf32>
      %222 = vector.extract_strided_slice %115 {offsets = [0, 6, 0], sizes = [8, 1, 128], strides = [1, 1, 1]} : vector<8x8x128xf32> to vector<8x1x128xf32>
      %223 = vector.extract_strided_slice %186 {offsets = [6, 0, 0], sizes = [1, 8, 128], strides = [1, 1, 1]} : vector<8x8x128xf32> to vector<1x8x128xf32>
      %224 = vector.broadcast %222 : vector<8x1x128xf32> to vector<8x8x128xf32>
      %225 = vector.broadcast %223 : vector<1x8x128xf32> to vector<8x8x128xf32>
      %226 = arith.mulf %224, %225 : vector<8x8x128xf32>
      %227 = arith.addf %221, %226 : vector<8x8x128xf32>
      %228 = vector.extract_strided_slice %115 {offsets = [0, 7, 0], sizes = [8, 1, 128], strides = [1, 1, 1]} : vector<8x8x128xf32> to vector<8x1x128xf32>
      %229 = vector.extract_strided_slice %186 {offsets = [7, 0, 0], sizes = [1, 8, 128], strides = [1, 1, 1]} : vector<8x8x128xf32> to vector<1x8x128xf32>
      %230 = vector.broadcast %228 : vector<8x1x128xf32> to vector<8x8x128xf32>
      %231 = vector.broadcast %229 : vector<1x8x128xf32> to vector<8x8x128xf32>
      %232 = arith.mulf %230, %231 : vector<8x8x128xf32>
      %233 = arith.addf %227, %232 : vector<8x8x128xf32>
      %234 = arith.addf %138, %233 : vector<8x8x128xf32>
      %235 = vector.extract_strided_slice %234 {offsets = [0, 0, 0], sizes = [8, 1, 128], strides = [1, 1, 1]} : vector<8x8x128xf32> to vector<8x1x128xf32>
      %236 = vector.extract_strided_slice %234 {offsets = [0, 0, 0], sizes = [1, 8, 128], strides = [1, 1, 1]} : vector<8x8x128xf32> to vector<1x8x128xf32>
      %237 = vector.broadcast %235 : vector<8x1x128xf32> to vector<8x8x128xf32>
      %238 = vector.broadcast %236 : vector<1x8x128xf32> to vector<8x8x128xf32>
      %239 = arith.mulf %237, %238 : vector<8x8x128xf32>
      %240 = vector.extract_strided_slice %234 {offsets = [0, 1, 0], sizes = [8, 1, 128], strides = [1, 1, 1]} : vector<8x8x128xf32> to vector<8x1x128xf32>
      %241 = vector.extract_strided_slice %234 {offsets = [1, 0, 0], sizes = [1, 8, 128], strides = [1, 1, 1]} : vector<8x8x128xf32> to vector<1x8x128xf32>
      %242 = vector.broadcast %240 : vector<8x1x128xf32> to vector<8x8x128xf32>
      %243 = vector.broadcast %241 : vector<1x8x128xf32> to vector<8x8x128xf32>
      %244 = arith.mulf %242, %243 : vector<8x8x128xf32>
      %245 = arith.addf %239, %244 : vector<8x8x128xf32>
      %246 = vector.extract_strided_slice %234 {offsets = [0, 2, 0], sizes = [8, 1, 128], strides = [1, 1, 1]} : vector<8x8x128xf32> to vector<8x1x128xf32>
      %247 = vector.extract_strided_slice %234 {offsets = [2, 0, 0], sizes = [1, 8, 128], strides = [1, 1, 1]} : vector<8x8x128xf32> to vector<1x8x128xf32>
      %248 = vector.broadcast %246 : vector<8x1x128xf32> to vector<8x8x128xf32>
      %249 = vector.broadcast %247 : vector<1x8x128xf32> to vector<8x8x128xf32>
      %250 = arith.mulf %248, %249 : vector<8x8x128xf32>
      %251 = arith.addf %245, %250 : vector<8x8x128xf32>
      %252 = vector.extract_strided_slice %234 {offsets = [0, 3, 0], sizes = [8, 1, 128], strides = [1, 1, 1]} : vector<8x8x128xf32> to vector<8x1x128xf32>
      %253 = vector.extract_strided_slice %234 {offsets = [3, 0, 0], sizes = [1, 8, 128], strides = [1, 1, 1]} : vector<8x8x128xf32> to vector<1x8x128xf32>
      %254 = vector.broadcast %252 : vector<8x1x128xf32> to vector<8x8x128xf32>
      %255 = vector.broadcast %253 : vector<1x8x128xf32> to vector<8x8x128xf32>
      %256 = arith.mulf %254, %255 : vector<8x8x128xf32>
      %257 = arith.addf %251, %256 : vector<8x8x128xf32>
      %258 = vector.extract_strided_slice %234 {offsets = [0, 4, 0], sizes = [8, 1, 128], strides = [1, 1, 1]} : vector<8x8x128xf32> to vector<8x1x128xf32>
      %259 = vector.extract_strided_slice %234 {offsets = [4, 0, 0], sizes = [1, 8, 128], strides = [1, 1, 1]} : vector<8x8x128xf32> to vector<1x8x128xf32>
      %260 = vector.broadcast %258 : vector<8x1x128xf32> to vector<8x8x128xf32>
      %261 = vector.broadcast %259 : vector<1x8x128xf32> to vector<8x8x128xf32>
      %262 = arith.mulf %260, %261 : vector<8x8x128xf32>
      %263 = arith.addf %257, %262 : vector<8x8x128xf32>
      %264 = vector.extract_strided_slice %234 {offsets = [0, 5, 0], sizes = [8, 1, 128], strides = [1, 1, 1]} : vector<8x8x128xf32> to vector<8x1x128xf32>
      %265 = vector.extract_strided_slice %234 {offsets = [5, 0, 0], sizes = [1, 8, 128], strides = [1, 1, 1]} : vector<8x8x128xf32> to vector<1x8x128xf32>
      %266 = vector.broadcast %264 : vector<8x1x128xf32> to vector<8x8x128xf32>
      %267 = vector.broadcast %265 : vector<1x8x128xf32> to vector<8x8x128xf32>
      %268 = arith.mulf %266, %267 : vector<8x8x128xf32>
      %269 = arith.addf %263, %268 : vector<8x8x128xf32>
      %270 = vector.extract_strided_slice %234 {offsets = [0, 6, 0], sizes = [8, 1, 128], strides = [1, 1, 1]} : vector<8x8x128xf32> to vector<8x1x128xf32>
      %271 = vector.extract_strided_slice %234 {offsets = [6, 0, 0], sizes = [1, 8, 128], strides = [1, 1, 1]} : vector<8x8x128xf32> to vector<1x8x128xf32>
      %272 = vector.broadcast %270 : vector<8x1x128xf32> to vector<8x8x128xf32>
      %273 = vector.broadcast %271 : vector<1x8x128xf32> to vector<8x8x128xf32>
      %274 = arith.mulf %272, %273 : vector<8x8x128xf32>
      %275 = arith.addf %269, %274 : vector<8x8x128xf32>
      %276 = vector.extract_strided_slice %234 {offsets = [0, 7, 0], sizes = [8, 1, 128], strides = [1, 1, 1]} : vector<8x8x128xf32> to vector<8x1x128xf32>
      %277 = vector.extract_strided_slice %234 {offsets = [7, 0, 0], sizes = [1, 8, 128], strides = [1, 1, 1]} : vector<8x8x128xf32> to vector<1x8x128xf32>
      %278 = vector.broadcast %276 : vector<8x1x128xf32> to vector<8x8x128xf32>
      %279 = vector.broadcast %277 : vector<1x8x128xf32> to vector<8x8x128xf32>
      %280 = arith.mulf %278, %279 : vector<8x8x128xf32>
      %281 = arith.addf %275, %280 : vector<8x8x128xf32>
      %282 = vector.extract_strided_slice %281 {offsets = [0, 0, 0], sizes = [8, 1, 128], strides = [1, 1, 1]} : vector<8x8x128xf32> to vector<8x1x128xf32>
      %283 = vector.extract_strided_slice %281 {offsets = [0, 0, 0], sizes = [1, 8, 128], strides = [1, 1, 1]} : vector<8x8x128xf32> to vector<1x8x128xf32>
      %284 = vector.broadcast %282 : vector<8x1x128xf32> to vector<8x8x128xf32>
      %285 = vector.broadcast %283 : vector<1x8x128xf32> to vector<8x8x128xf32>
      %286 = arith.mulf %284, %285 : vector<8x8x128xf32>
      %287 = vector.extract_strided_slice %281 {offsets = [0, 1, 0], sizes = [8, 1, 128], strides = [1, 1, 1]} : vector<8x8x128xf32> to vector<8x1x128xf32>
      %288 = vector.extract_strided_slice %281 {offsets = [1, 0, 0], sizes = [1, 8, 128], strides = [1, 1, 1]} : vector<8x8x128xf32> to vector<1x8x128xf32>
      %289 = vector.broadcast %287 : vector<8x1x128xf32> to vector<8x8x128xf32>
      %290 = vector.broadcast %288 : vector<1x8x128xf32> to vector<8x8x128xf32>
      %291 = arith.mulf %289, %290 : vector<8x8x128xf32>
      %292 = arith.addf %286, %291 : vector<8x8x128xf32>
      %293 = vector.extract_strided_slice %281 {offsets = [0, 2, 0], sizes = [8, 1, 128], strides = [1, 1, 1]} : vector<8x8x128xf32> to vector<8x1x128xf32>
      %294 = vector.extract_strided_slice %281 {offsets = [2, 0, 0], sizes = [1, 8, 128], strides = [1, 1, 1]} : vector<8x8x128xf32> to vector<1x8x128xf32>
      %295 = vector.broadcast %293 : vector<8x1x128xf32> to vector<8x8x128xf32>
      %296 = vector.broadcast %294 : vector<1x8x128xf32> to vector<8x8x128xf32>
      %297 = arith.mulf %295, %296 : vector<8x8x128xf32>
      %298 = arith.addf %292, %297 : vector<8x8x128xf32>
      %299 = vector.extract_strided_slice %281 {offsets = [0, 3, 0], sizes = [8, 1, 128], strides = [1, 1, 1]} : vector<8x8x128xf32> to vector<8x1x128xf32>
      %300 = vector.extract_strided_slice %281 {offsets = [3, 0, 0], sizes = [1, 8, 128], strides = [1, 1, 1]} : vector<8x8x128xf32> to vector<1x8x128xf32>
      %301 = vector.broadcast %299 : vector<8x1x128xf32> to vector<8x8x128xf32>
      %302 = vector.broadcast %300 : vector<1x8x128xf32> to vector<8x8x128xf32>
      %303 = arith.mulf %301, %302 : vector<8x8x128xf32>
      %304 = arith.addf %298, %303 : vector<8x8x128xf32>
      %305 = vector.extract_strided_slice %281 {offsets = [0, 4, 0], sizes = [8, 1, 128], strides = [1, 1, 1]} : vector<8x8x128xf32> to vector<8x1x128xf32>
      %306 = vector.extract_strided_slice %281 {offsets = [4, 0, 0], sizes = [1, 8, 128], strides = [1, 1, 1]} : vector<8x8x128xf32> to vector<1x8x128xf32>
      %307 = vector.broadcast %305 : vector<8x1x128xf32> to vector<8x8x128xf32>
      %308 = vector.broadcast %306 : vector<1x8x128xf32> to vector<8x8x128xf32>
      %309 = arith.mulf %307, %308 : vector<8x8x128xf32>
      %310 = arith.addf %304, %309 : vector<8x8x128xf32>
      %311 = vector.extract_strided_slice %281 {offsets = [0, 5, 0], sizes = [8, 1, 128], strides = [1, 1, 1]} : vector<8x8x128xf32> to vector<8x1x128xf32>
      %312 = vector.extract_strided_slice %281 {offsets = [5, 0, 0], sizes = [1, 8, 128], strides = [1, 1, 1]} : vector<8x8x128xf32> to vector<1x8x128xf32>
      %313 = vector.broadcast %311 : vector<8x1x128xf32> to vector<8x8x128xf32>
      %314 = vector.broadcast %312 : vector<1x8x128xf32> to vector<8x8x128xf32>
      %315 = arith.mulf %313, %314 : vector<8x8x128xf32>
      %316 = arith.addf %310, %315 : vector<8x8x128xf32>
      %317 = vector.extract_strided_slice %281 {offsets = [0, 6, 0], sizes = [8, 1, 128], strides = [1, 1, 1]} : vector<8x8x128xf32> to vector<8x1x128xf32>
      %318 = vector.extract_strided_slice %281 {offsets = [6, 0, 0], sizes = [1, 8, 128], strides = [1, 1, 1]} : vector<8x8x128xf32> to vector<1x8x128xf32>
      %319 = vector.broadcast %317 : vector<8x1x128xf32> to vector<8x8x128xf32>
      %320 = vector.broadcast %318 : vector<1x8x128xf32> to vector<8x8x128xf32>
      %321 = arith.mulf %319, %320 : vector<8x8x128xf32>
      %322 = arith.addf %316, %321 : vector<8x8x128xf32>
      %323 = vector.extract_strided_slice %281 {offsets = [0, 7, 0], sizes = [8, 1, 128], strides = [1, 1, 1]} : vector<8x8x128xf32> to vector<8x1x128xf32>
      %324 = vector.extract_strided_slice %281 {offsets = [7, 0, 0], sizes = [1, 8, 128], strides = [1, 1, 1]} : vector<8x8x128xf32> to vector<1x8x128xf32>
      %325 = vector.broadcast %323 : vector<8x1x128xf32> to vector<8x8x128xf32>
      %326 = vector.broadcast %324 : vector<1x8x128xf32> to vector<8x8x128xf32>
      %327 = arith.mulf %325, %326 : vector<8x8x128xf32>
      %328 = arith.addf %322, %327 : vector<8x8x128xf32>
      %329 = vector.extract_strided_slice %328 {offsets = [0, 0, 0], sizes = [8, 1, 128], strides = [1, 1, 1]} : vector<8x8x128xf32> to vector<8x1x128xf32>
      %330 = vector.extract_strided_slice %328 {offsets = [0, 0, 0], sizes = [1, 8, 128], strides = [1, 1, 1]} : vector<8x8x128xf32> to vector<1x8x128xf32>
      %331 = vector.broadcast %329 : vector<8x1x128xf32> to vector<8x8x128xf32>
      %332 = vector.broadcast %330 : vector<1x8x128xf32> to vector<8x8x128xf32>
      %333 = arith.mulf %331, %332 : vector<8x8x128xf32>
      %334 = vector.extract_strided_slice %328 {offsets = [0, 1, 0], sizes = [8, 1, 128], strides = [1, 1, 1]} : vector<8x8x128xf32> to vector<8x1x128xf32>
      %335 = vector.extract_strided_slice %328 {offsets = [1, 0, 0], sizes = [1, 8, 128], strides = [1, 1, 1]} : vector<8x8x128xf32> to vector<1x8x128xf32>
      %336 = vector.broadcast %334 : vector<8x1x128xf32> to vector<8x8x128xf32>
      %337 = vector.broadcast %335 : vector<1x8x128xf32> to vector<8x8x128xf32>
      %338 = arith.mulf %336, %337 : vector<8x8x128xf32>
      %339 = arith.addf %333, %338 : vector<8x8x128xf32>
      %340 = vector.extract_strided_slice %328 {offsets = [0, 2, 0], sizes = [8, 1, 128], strides = [1, 1, 1]} : vector<8x8x128xf32> to vector<8x1x128xf32>
      %341 = vector.extract_strided_slice %328 {offsets = [2, 0, 0], sizes = [1, 8, 128], strides = [1, 1, 1]} : vector<8x8x128xf32> to vector<1x8x128xf32>
      %342 = vector.broadcast %340 : vector<8x1x128xf32> to vector<8x8x128xf32>
      %343 = vector.broadcast %341 : vector<1x8x128xf32> to vector<8x8x128xf32>
      %344 = arith.mulf %342, %343 : vector<8x8x128xf32>
      %345 = arith.addf %339, %344 : vector<8x8x128xf32>
      %346 = vector.extract_strided_slice %328 {offsets = [0, 3, 0], sizes = [8, 1, 128], strides = [1, 1, 1]} : vector<8x8x128xf32> to vector<8x1x128xf32>
      %347 = vector.extract_strided_slice %328 {offsets = [3, 0, 0], sizes = [1, 8, 128], strides = [1, 1, 1]} : vector<8x8x128xf32> to vector<1x8x128xf32>
      %348 = vector.broadcast %346 : vector<8x1x128xf32> to vector<8x8x128xf32>
      %349 = vector.broadcast %347 : vector<1x8x128xf32> to vector<8x8x128xf32>
      %350 = arith.mulf %348, %349 : vector<8x8x128xf32>
      %351 = arith.addf %345, %350 : vector<8x8x128xf32>
      %352 = vector.extract_strided_slice %328 {offsets = [0, 4, 0], sizes = [8, 1, 128], strides = [1, 1, 1]} : vector<8x8x128xf32> to vector<8x1x128xf32>
      %353 = vector.extract_strided_slice %328 {offsets = [4, 0, 0], sizes = [1, 8, 128], strides = [1, 1, 1]} : vector<8x8x128xf32> to vector<1x8x128xf32>
      %354 = vector.broadcast %352 : vector<8x1x128xf32> to vector<8x8x128xf32>
      %355 = vector.broadcast %353 : vector<1x8x128xf32> to vector<8x8x128xf32>
      %356 = arith.mulf %354, %355 : vector<8x8x128xf32>
      %357 = arith.addf %351, %356 : vector<8x8x128xf32>
      %358 = vector.extract_strided_slice %328 {offsets = [0, 5, 0], sizes = [8, 1, 128], strides = [1, 1, 1]} : vector<8x8x128xf32> to vector<8x1x128xf32>
      %359 = vector.extract_strided_slice %328 {offsets = [5, 0, 0], sizes = [1, 8, 128], strides = [1, 1, 1]} : vector<8x8x128xf32> to vector<1x8x128xf32>
      %360 = vector.broadcast %358 : vector<8x1x128xf32> to vector<8x8x128xf32>
      %361 = vector.broadcast %359 : vector<1x8x128xf32> to vector<8x8x128xf32>
      %362 = arith.mulf %360, %361 : vector<8x8x128xf32>
      %363 = arith.addf %357, %362 : vector<8x8x128xf32>
      %364 = vector.extract_strided_slice %328 {offsets = [0, 6, 0], sizes = [8, 1, 128], strides = [1, 1, 1]} : vector<8x8x128xf32> to vector<8x1x128xf32>
      %365 = vector.extract_strided_slice %328 {offsets = [6, 0, 0], sizes = [1, 8, 128], strides = [1, 1, 1]} : vector<8x8x128xf32> to vector<1x8x128xf32>
      %366 = vector.broadcast %364 : vector<8x1x128xf32> to vector<8x8x128xf32>
      %367 = vector.broadcast %365 : vector<1x8x128xf32> to vector<8x8x128xf32>
      %368 = arith.mulf %366, %367 : vector<8x8x128xf32>
      %369 = arith.addf %363, %368 : vector<8x8x128xf32>
      %370 = vector.extract_strided_slice %328 {offsets = [0, 7, 0], sizes = [8, 1, 128], strides = [1, 1, 1]} : vector<8x8x128xf32> to vector<8x1x128xf32>
      %371 = vector.extract_strided_slice %328 {offsets = [7, 0, 0], sizes = [1, 8, 128], strides = [1, 1, 1]} : vector<8x8x128xf32> to vector<1x8x128xf32>
      %372 = vector.broadcast %370 : vector<8x1x128xf32> to vector<8x8x128xf32>
      %373 = vector.broadcast %371 : vector<1x8x128xf32> to vector<8x8x128xf32>
      %374 = arith.mulf %372, %373 : vector<8x8x128xf32>
      %375 = arith.addf %369, %374 : vector<8x8x128xf32>
      %376 = vector.extract_strided_slice %375 {offsets = [0, 0, 0], sizes = [8, 1, 128], strides = [1, 1, 1]} : vector<8x8x128xf32> to vector<8x1x128xf32>
      %377 = vector.extract_strided_slice %375 {offsets = [0, 0, 0], sizes = [1, 8, 128], strides = [1, 1, 1]} : vector<8x8x128xf32> to vector<1x8x128xf32>
      %378 = vector.broadcast %376 : vector<8x1x128xf32> to vector<8x8x128xf32>
      %379 = vector.broadcast %377 : vector<1x8x128xf32> to vector<8x8x128xf32>
      %380 = arith.mulf %378, %379 : vector<8x8x128xf32>
      %381 = vector.extract_strided_slice %375 {offsets = [0, 1, 0], sizes = [8, 1, 128], strides = [1, 1, 1]} : vector<8x8x128xf32> to vector<8x1x128xf32>
      %382 = vector.extract_strided_slice %375 {offsets = [1, 0, 0], sizes = [1, 8, 128], strides = [1, 1, 1]} : vector<8x8x128xf32> to vector<1x8x128xf32>
      %383 = vector.broadcast %381 : vector<8x1x128xf32> to vector<8x8x128xf32>
      %384 = vector.broadcast %382 : vector<1x8x128xf32> to vector<8x8x128xf32>
      %385 = arith.mulf %383, %384 : vector<8x8x128xf32>
      %386 = arith.addf %380, %385 : vector<8x8x128xf32>
      %387 = vector.extract_strided_slice %375 {offsets = [0, 2, 0], sizes = [8, 1, 128], strides = [1, 1, 1]} : vector<8x8x128xf32> to vector<8x1x128xf32>
      %388 = vector.extract_strided_slice %375 {offsets = [2, 0, 0], sizes = [1, 8, 128], strides = [1, 1, 1]} : vector<8x8x128xf32> to vector<1x8x128xf32>
      %389 = vector.broadcast %387 : vector<8x1x128xf32> to vector<8x8x128xf32>
      %390 = vector.broadcast %388 : vector<1x8x128xf32> to vector<8x8x128xf32>
      %391 = arith.mulf %389, %390 : vector<8x8x128xf32>
      %392 = arith.addf %386, %391 : vector<8x8x128xf32>
      %393 = vector.extract_strided_slice %375 {offsets = [0, 3, 0], sizes = [8, 1, 128], strides = [1, 1, 1]} : vector<8x8x128xf32> to vector<8x1x128xf32>
      %394 = vector.extract_strided_slice %375 {offsets = [3, 0, 0], sizes = [1, 8, 128], strides = [1, 1, 1]} : vector<8x8x128xf32> to vector<1x8x128xf32>
      %395 = vector.broadcast %393 : vector<8x1x128xf32> to vector<8x8x128xf32>
      %396 = vector.broadcast %394 : vector<1x8x128xf32> to vector<8x8x128xf32>
      %397 = arith.mulf %395, %396 : vector<8x8x128xf32>
      %398 = arith.addf %392, %397 : vector<8x8x128xf32>
      %399 = vector.extract_strided_slice %375 {offsets = [0, 4, 0], sizes = [8, 1, 128], strides = [1, 1, 1]} : vector<8x8x128xf32> to vector<8x1x128xf32>
      %400 = vector.extract_strided_slice %375 {offsets = [4, 0, 0], sizes = [1, 8, 128], strides = [1, 1, 1]} : vector<8x8x128xf32> to vector<1x8x128xf32>
      %401 = vector.broadcast %399 : vector<8x1x128xf32> to vector<8x8x128xf32>
      %402 = vector.broadcast %400 : vector<1x8x128xf32> to vector<8x8x128xf32>
      %403 = arith.mulf %401, %402 : vector<8x8x128xf32>
      %404 = arith.addf %398, %403 : vector<8x8x128xf32>
      %405 = vector.extract_strided_slice %375 {offsets = [0, 5, 0], sizes = [8, 1, 128], strides = [1, 1, 1]} : vector<8x8x128xf32> to vector<8x1x128xf32>
      %406 = vector.extract_strided_slice %375 {offsets = [5, 0, 0], sizes = [1, 8, 128], strides = [1, 1, 1]} : vector<8x8x128xf32> to vector<1x8x128xf32>
      %407 = vector.broadcast %405 : vector<8x1x128xf32> to vector<8x8x128xf32>
      %408 = vector.broadcast %406 : vector<1x8x128xf32> to vector<8x8x128xf32>
      %409 = arith.mulf %407, %408 : vector<8x8x128xf32>
      %410 = arith.addf %404, %409 : vector<8x8x128xf32>
      %411 = vector.extract_strided_slice %375 {offsets = [0, 6, 0], sizes = [8, 1, 128], strides = [1, 1, 1]} : vector<8x8x128xf32> to vector<8x1x128xf32>
      %412 = vector.extract_strided_slice %375 {offsets = [6, 0, 0], sizes = [1, 8, 128], strides = [1, 1, 1]} : vector<8x8x128xf32> to vector<1x8x128xf32>
      %413 = vector.broadcast %411 : vector<8x1x128xf32> to vector<8x8x128xf32>
      %414 = vector.broadcast %412 : vector<1x8x128xf32> to vector<8x8x128xf32>
      %415 = arith.mulf %413, %414 : vector<8x8x128xf32>
      %416 = arith.addf %410, %415 : vector<8x8x128xf32>
      %417 = vector.extract_strided_slice %375 {offsets = [0, 7, 0], sizes = [8, 1, 128], strides = [1, 1, 1]} : vector<8x8x128xf32> to vector<8x1x128xf32>
      %418 = vector.extract_strided_slice %375 {offsets = [7, 0, 0], sizes = [1, 8, 128], strides = [1, 1, 1]} : vector<8x8x128xf32> to vector<1x8x128xf32>
      %419 = vector.broadcast %417 : vector<8x1x128xf32> to vector<8x8x128xf32>
      %420 = vector.broadcast %418 : vector<1x8x128xf32> to vector<8x8x128xf32>
      %421 = arith.mulf %419, %420 : vector<8x8x128xf32>
      %422 = arith.addf %416, %421 : vector<8x8x128xf32>
      %423 = vector.extract_strided_slice %422 {offsets = [0, 0, 0], sizes = [8, 1, 128], strides = [1, 1, 1]} : vector<8x8x128xf32> to vector<8x1x128xf32>
      %424 = vector.extract_strided_slice %422 {offsets = [0, 0, 0], sizes = [1, 8, 128], strides = [1, 1, 1]} : vector<8x8x128xf32> to vector<1x8x128xf32>
      %425 = vector.broadcast %423 : vector<8x1x128xf32> to vector<8x8x128xf32>
      %426 = vector.broadcast %424 : vector<1x8x128xf32> to vector<8x8x128xf32>
      %427 = arith.mulf %425, %426 : vector<8x8x128xf32>
      %428 = vector.extract_strided_slice %422 {offsets = [0, 1, 0], sizes = [8, 1, 128], strides = [1, 1, 1]} : vector<8x8x128xf32> to vector<8x1x128xf32>
      %429 = vector.extract_strided_slice %422 {offsets = [1, 0, 0], sizes = [1, 8, 128], strides = [1, 1, 1]} : vector<8x8x128xf32> to vector<1x8x128xf32>
      %430 = vector.broadcast %428 : vector<8x1x128xf32> to vector<8x8x128xf32>
      %431 = vector.broadcast %429 : vector<1x8x128xf32> to vector<8x8x128xf32>
      %432 = arith.mulf %430, %431 : vector<8x8x128xf32>
      %433 = arith.addf %427, %432 : vector<8x8x128xf32>
      %434 = vector.extract_strided_slice %422 {offsets = [0, 2, 0], sizes = [8, 1, 128], strides = [1, 1, 1]} : vector<8x8x128xf32> to vector<8x1x128xf32>
      %435 = vector.extract_strided_slice %422 {offsets = [2, 0, 0], sizes = [1, 8, 128], strides = [1, 1, 1]} : vector<8x8x128xf32> to vector<1x8x128xf32>
      %436 = vector.broadcast %434 : vector<8x1x128xf32> to vector<8x8x128xf32>
      %437 = vector.broadcast %435 : vector<1x8x128xf32> to vector<8x8x128xf32>
      %438 = arith.mulf %436, %437 : vector<8x8x128xf32>
      %439 = arith.addf %433, %438 : vector<8x8x128xf32>
      %440 = vector.extract_strided_slice %422 {offsets = [0, 3, 0], sizes = [8, 1, 128], strides = [1, 1, 1]} : vector<8x8x128xf32> to vector<8x1x128xf32>
      %441 = vector.extract_strided_slice %422 {offsets = [3, 0, 0], sizes = [1, 8, 128], strides = [1, 1, 1]} : vector<8x8x128xf32> to vector<1x8x128xf32>
      %442 = vector.broadcast %440 : vector<8x1x128xf32> to vector<8x8x128xf32>
      %443 = vector.broadcast %441 : vector<1x8x128xf32> to vector<8x8x128xf32>
      %444 = arith.mulf %442, %443 : vector<8x8x128xf32>
      %445 = arith.addf %439, %444 : vector<8x8x128xf32>
      %446 = vector.extract_strided_slice %422 {offsets = [0, 4, 0], sizes = [8, 1, 128], strides = [1, 1, 1]} : vector<8x8x128xf32> to vector<8x1x128xf32>
      %447 = vector.extract_strided_slice %422 {offsets = [4, 0, 0], sizes = [1, 8, 128], strides = [1, 1, 1]} : vector<8x8x128xf32> to vector<1x8x128xf32>
      %448 = vector.broadcast %446 : vector<8x1x128xf32> to vector<8x8x128xf32>
      %449 = vector.broadcast %447 : vector<1x8x128xf32> to vector<8x8x128xf32>
      %450 = arith.mulf %448, %449 : vector<8x8x128xf32>
      %451 = arith.addf %445, %450 : vector<8x8x128xf32>
      %452 = vector.extract_strided_slice %422 {offsets = [0, 5, 0], sizes = [8, 1, 128], strides = [1, 1, 1]} : vector<8x8x128xf32> to vector<8x1x128xf32>
      %453 = vector.extract_strided_slice %422 {offsets = [5, 0, 0], sizes = [1, 8, 128], strides = [1, 1, 1]} : vector<8x8x128xf32> to vector<1x8x128xf32>
      %454 = vector.broadcast %452 : vector<8x1x128xf32> to vector<8x8x128xf32>
      %455 = vector.broadcast %453 : vector<1x8x128xf32> to vector<8x8x128xf32>
      %456 = arith.mulf %454, %455 : vector<8x8x128xf32>
      %457 = arith.addf %451, %456 : vector<8x8x128xf32>
      %458 = vector.extract_strided_slice %422 {offsets = [0, 6, 0], sizes = [8, 1, 128], strides = [1, 1, 1]} : vector<8x8x128xf32> to vector<8x1x128xf32>
      %459 = vector.extract_strided_slice %422 {offsets = [6, 0, 0], sizes = [1, 8, 128], strides = [1, 1, 1]} : vector<8x8x128xf32> to vector<1x8x128xf32>
      %460 = vector.broadcast %458 : vector<8x1x128xf32> to vector<8x8x128xf32>
      %461 = vector.broadcast %459 : vector<1x8x128xf32> to vector<8x8x128xf32>
      %462 = arith.mulf %460, %461 : vector<8x8x128xf32>
      %463 = arith.addf %457, %462 : vector<8x8x128xf32>
      %464 = vector.extract_strided_slice %422 {offsets = [0, 7, 0], sizes = [8, 1, 128], strides = [1, 1, 1]} : vector<8x8x128xf32> to vector<8x1x128xf32>
      %465 = vector.extract_strided_slice %422 {offsets = [7, 0, 0], sizes = [1, 8, 128], strides = [1, 1, 1]} : vector<8x8x128xf32> to vector<1x8x128xf32>
      %466 = vector.broadcast %464 : vector<8x1x128xf32> to vector<8x8x128xf32>
      %467 = vector.broadcast %465 : vector<1x8x128xf32> to vector<8x8x128xf32>
      %468 = arith.mulf %466, %467 : vector<8x8x128xf32>
      %469 = arith.addf %463, %468 : vector<8x8x128xf32>
      %470 = vector.extract_strided_slice %469 {offsets = [0, 0, 0], sizes = [8, 1, 128], strides = [1, 1, 1]} : vector<8x8x128xf32> to vector<8x1x128xf32>
      %471 = vector.extract_strided_slice %469 {offsets = [0, 0, 0], sizes = [1, 8, 128], strides = [1, 1, 1]} : vector<8x8x128xf32> to vector<1x8x128xf32>
      %472 = vector.broadcast %470 : vector<8x1x128xf32> to vector<8x8x128xf32>
      %473 = vector.broadcast %471 : vector<1x8x128xf32> to vector<8x8x128xf32>
      %474 = arith.mulf %472, %473 : vector<8x8x128xf32>
      %475 = vector.extract_strided_slice %469 {offsets = [0, 1, 0], sizes = [8, 1, 128], strides = [1, 1, 1]} : vector<8x8x128xf32> to vector<8x1x128xf32>
      %476 = vector.extract_strided_slice %469 {offsets = [1, 0, 0], sizes = [1, 8, 128], strides = [1, 1, 1]} : vector<8x8x128xf32> to vector<1x8x128xf32>
      %477 = vector.broadcast %475 : vector<8x1x128xf32> to vector<8x8x128xf32>
      %478 = vector.broadcast %476 : vector<1x8x128xf32> to vector<8x8x128xf32>
      %479 = arith.mulf %477, %478 : vector<8x8x128xf32>
      %480 = arith.addf %474, %479 : vector<8x8x128xf32>
      %481 = vector.extract_strided_slice %469 {offsets = [0, 2, 0], sizes = [8, 1, 128], strides = [1, 1, 1]} : vector<8x8x128xf32> to vector<8x1x128xf32>
      %482 = vector.extract_strided_slice %469 {offsets = [2, 0, 0], sizes = [1, 8, 128], strides = [1, 1, 1]} : vector<8x8x128xf32> to vector<1x8x128xf32>
      %483 = vector.broadcast %481 : vector<8x1x128xf32> to vector<8x8x128xf32>
      %484 = vector.broadcast %482 : vector<1x8x128xf32> to vector<8x8x128xf32>
      %485 = arith.mulf %483, %484 : vector<8x8x128xf32>
      %486 = arith.addf %480, %485 : vector<8x8x128xf32>
      %487 = vector.extract_strided_slice %469 {offsets = [0, 3, 0], sizes = [8, 1, 128], strides = [1, 1, 1]} : vector<8x8x128xf32> to vector<8x1x128xf32>
      %488 = vector.extract_strided_slice %469 {offsets = [3, 0, 0], sizes = [1, 8, 128], strides = [1, 1, 1]} : vector<8x8x128xf32> to vector<1x8x128xf32>
      %489 = vector.broadcast %487 : vector<8x1x128xf32> to vector<8x8x128xf32>
      %490 = vector.broadcast %488 : vector<1x8x128xf32> to vector<8x8x128xf32>
      %491 = arith.mulf %489, %490 : vector<8x8x128xf32>
      %492 = arith.addf %486, %491 : vector<8x8x128xf32>
      %493 = vector.extract_strided_slice %469 {offsets = [0, 4, 0], sizes = [8, 1, 128], strides = [1, 1, 1]} : vector<8x8x128xf32> to vector<8x1x128xf32>
      %494 = vector.extract_strided_slice %469 {offsets = [4, 0, 0], sizes = [1, 8, 128], strides = [1, 1, 1]} : vector<8x8x128xf32> to vector<1x8x128xf32>
      %495 = vector.broadcast %493 : vector<8x1x128xf32> to vector<8x8x128xf32>
      %496 = vector.broadcast %494 : vector<1x8x128xf32> to vector<8x8x128xf32>
      %497 = arith.mulf %495, %496 : vector<8x8x128xf32>
      %498 = arith.addf %492, %497 : vector<8x8x128xf32>
      %499 = vector.extract_strided_slice %469 {offsets = [0, 5, 0], sizes = [8, 1, 128], strides = [1, 1, 1]} : vector<8x8x128xf32> to vector<8x1x128xf32>
      %500 = vector.extract_strided_slice %469 {offsets = [5, 0, 0], sizes = [1, 8, 128], strides = [1, 1, 1]} : vector<8x8x128xf32> to vector<1x8x128xf32>
      %501 = vector.broadcast %499 : vector<8x1x128xf32> to vector<8x8x128xf32>
      %502 = vector.broadcast %500 : vector<1x8x128xf32> to vector<8x8x128xf32>
      %503 = arith.mulf %501, %502 : vector<8x8x128xf32>
      %504 = arith.addf %498, %503 : vector<8x8x128xf32>
      %505 = vector.extract_strided_slice %469 {offsets = [0, 6, 0], sizes = [8, 1, 128], strides = [1, 1, 1]} : vector<8x8x128xf32> to vector<8x1x128xf32>
      %506 = vector.extract_strided_slice %469 {offsets = [6, 0, 0], sizes = [1, 8, 128], strides = [1, 1, 1]} : vector<8x8x128xf32> to vector<1x8x128xf32>
      %507 = vector.broadcast %505 : vector<8x1x128xf32> to vector<8x8x128xf32>
      %508 = vector.broadcast %506 : vector<1x8x128xf32> to vector<8x8x128xf32>
      %509 = arith.mulf %507, %508 : vector<8x8x128xf32>
      %510 = arith.addf %504, %509 : vector<8x8x128xf32>
      %511 = vector.extract_strided_slice %469 {offsets = [0, 7, 0], sizes = [8, 1, 128], strides = [1, 1, 1]} : vector<8x8x128xf32> to vector<8x1x128xf32>
      %512 = vector.extract_strided_slice %469 {offsets = [7, 0, 0], sizes = [1, 8, 128], strides = [1, 1, 1]} : vector<8x8x128xf32> to vector<1x8x128xf32>
      %513 = vector.broadcast %511 : vector<8x1x128xf32> to vector<8x8x128xf32>
      %514 = vector.broadcast %512 : vector<1x8x128xf32> to vector<8x8x128xf32>
      %515 = arith.mulf %513, %514 : vector<8x8x128xf32>
      %516 = arith.addf %510, %515 : vector<8x8x128xf32>
      %517 = vector.shape_cast %516 : vector<8x8x128xf32> to vector<64x128xf32>
      %cst_19 = arith.constant dense<0.000000e+00> : vector<1x128xf32>
      %518 = tpu.matmul %8, %517, %cst_19 {dimension_numbers = #tpu.dot_dimension_numbers<[1], [0], [0], [1], [0, 0, 1, 1], [], []>} : vector<1x64xf32>, vector<64x128xf32>, vector<1x128xf32> -> vector<1x128xf32>
      %519 = vector.shape_cast %518 : vector<1x128xf32> to vector<1x1x128xf32>
      %c0_20 = arith.constant 0 : index
      %520 = arith.index_cast %arg7 : i32 to index
      %c0_21 = arith.constant 0 : index
      %521 = vector.load %arg6[%c0_20, %520, %c0_21] : memref<1x3x128xf32, #tpu.memory_space<vmem>>, vector<1x1x128xf32>
      tpu.vector_store %arg6[%c0_20, %520, %c0_21], %519 {strides = array<i32>} : memref<1x3x128xf32, #tpu.memory_space<vmem>>, vector<1x1x128xf32>,
    }
    %c3_i32_7 = arith.constant 3 : i32
    return
  }
  func.func @transform_0(%arg0: i32) -> (i32, i32, i32) {
    %c0_i32 = arith.constant 0 : i32
    %c0_i32_0 = arith.constant 0 : i32
    %c0_i32_1 = arith.constant 0 : i32
    return %arg0, %c0_i32, %c0_i32_0 : i32, i32, i32
  }
  func.func @transform_1(%arg0: i32) -> (i32, i32) {
    %c0_i32 = arith.constant 0 : i32
    %c0_i32_0 = arith.constant 0 : i32
    %c0_i32_1 = arith.constant 0 : i32
    return %c0_i32, %c0_i32_0 : i32, i32
  }
  func.func @transform_2(%arg0: i32) -> (i32, i32) {
    %c0_i32 = arith.constant 0 : i32
    %c0_i32_0 = arith.constant 0 : i32
    %c0_i32_1 = arith.constant 0 : i32
    return %c0_i32, %c0_i32_0 : i32, i32
  }
  func.func @transform_3(%arg0: i32) -> (i32, i32) {
    %c0_i32 = arith.constant 0 : i32
    %c0_i32_0 = arith.constant 0 : i32
    %c0_i32_1 = arith.constant 0 : i32
    return %c0_i32, %c0_i32_0 : i32, i32
  }
  func.func @transform_4(%arg0: i32) -> (i32, i32) {
    %c0_i32 = arith.constant 0 : i32
    %c0_i32_0 = arith.constant 0 : i32
    %c0_i32_1 = arith.constant 0 : i32
    return %c0_i32, %c0_i32_0 : i32, i32
  }
  func.func @transform_5(%arg0: i32) -> (i32, i32, i32) {
    %c0_i32 = arith.constant 0 : i32
    %c0_i32_0 = arith.constant 0 : i32
    %c0_i32_1 = arith.constant 0 : i32
    return %arg0, %c0_i32, %c0_i32_0 : i32, i32, i32
  }
}

</mosaic_0001>

<bundles_post_ra>
// kernel: tpu_custom_call.1
= control target key start
LH: loop header
LB: loop body
LE: loop exit
PB: predicated region body
PF: predicated region fallthrough
CT: control target
= control target key end

     0   :  { %s4106_s18 = smov 0   ;;  %s6836_s0 = inlined_call_operand.vmem [shape: f32[2,3,128], index: 0, kind: input, shape index: {}]   ;;  %s6837_s1 = inlined_call_operand.vmem [shape: f32[16,1], index: 1, kind: input, shape index: {}]   ;;  %s6838_s2 = inlined_call_operand.vmem [shape: f32[16,1], index: 2, kind: input, shape index: {}]   ;;  %s6839_s3 = inlined_call_operand.vmem [shape: f32[64,16], index: 3, kind: input, shape index: {}]   ;;  %s6840_s4 = inlined_call_operand.vmem [shape: f32[1,64], index: 4, kind: input, shape index: {}]   ;;  %s6841_s5 = inlined_call_operand.vmem [shape: f32[2,3,128], index: 5, kind: output, shape index: {}]  }
   0x1 LB: > { %s3953_s19 = sadd.s32 4294967295, %s4066_s18   ;;  %p3957_p0 = scmp.ge.s32.totalorder %s4066_s18, 1  ;;  %s4066_s18 = sphi %s4106_s18, %s15_s18  }
   0x2   : > { %p186_p1 = scmp.lt.s32.totalorder %s4066_s18, 3 }
   0x4   : > { %p187_p2 = pnand %p3957_p0, %p186_p1 }
   0x5   : > { %p212_p3 = scmp.lt.s32.totalorder (!%p187_p2), %s3953_s19, 1  ;;  %s4215_s29 = smov (!%p187_p2), 0  }
   0x6   : > { %190 = sbr.rel (%p187_p2) target bundleno = 1030 (0x406), region = 40 }
   0xb   : > { %v220_v0 = vlaneseq  ;;  %v4117_v1 = vld [vmem:[%s6837_s1] sm:$0xff]  ;;  %v4122_v2 = vld [vmem:[%s6837_s1 + $0x8] sm:$0xff]  ;;  %s7243_s19 = smov (!%p212_p3, %s3953_s19), 1  ;;  %v4149_v8 = vld [vmem:[%s6839_s3 + $0x10] sm:$0xff]  ;;  %v4072_v15 = vmov 0.0  }
   0xc   : > { %6954 = vst [vmem:[#allocation2_spill] sm:$0xff] %v4117_v1  ;;  %6955 = vst [vmem:[#allocation3_spill] sm:$0xff] %v4122_v2  ;;  %v4127_v3 = vld [vmem:[%s6838_s2] sm:$0xff]  ;;  %v4132_v4 = vld [vmem:[%s6838_s2 + $0x8] sm:$0xff]  ;;  %s3958_s21 = sshll.u32 %s7243_s19, 2 }
   0xd   : > { %6956 = vst [vmem:[#allocation4_spill] sm:$0xff] %v4127_v3  ;;  %6957 = vst [vmem:[#allocation5_spill] sm:$0xff] %v4132_v4  ;;  %v4137_v5 = vld [vmem:[%s6839_s3] sm:$0xff]  ;;  %v4142_v6 = vld [vmem:[%s6839_s3 + $0x8] sm:$0xff]  ;;  %v4144_v7 = vshrl.u32 %v220_v0, 7  ;;  %s4183_s24 = scalar_lea.vmem %s6836_s0, %s3958_s21  ;;  %s4188_s27 = scalar_lea.vmem %s6841_s5, %s3958_s21 }
   0xe   : > { %6958 = vst [vmem:[#allocation6_spill] sm:$0xff] %v4137_v5  ;;  %6959 = vst [vmem:[#allocation7_spill] sm:$0xff] %v4142_v6  ;;  %v4154_v9 = vld [vmem:[%s6839_s3 + $0x18] sm:$0xff]  ;;  %v4159_v10 = vld [vmem:[%s6839_s3 + $0x20] sm:$0xff] }
   0xf   : > { %6960 = vst [vmem:[#allocation8_spill] sm:$0xff] %v4144_v7  ;;  %6961 = vst [vmem:[#allocation9_spill] sm:$0xff] %v4149_v8  ;;  %v4164_v11 = vld [vmem:[%s6839_s3 + $0x28] sm:$0xff]  ;;  %v4169_v12 = vld [vmem:[%s6839_s3 + $0x30] sm:$0xff]  ;;  %vm222_vm0 = vcmp.eq.s32.totalorder %v4144_v7, 0  ;;  %vm223_vm1 = vcmp.eq.s32.totalorder %v4144_v7, 1 }
  0x10   : > { %6962 = vst [vmem:[#allocation10_spill] sm:$0xff] %v4154_v9  ;;  %6963 = vst [vmem:[#allocation11_spill] sm:$0xff] %v4159_v10  ;;  %v4174_v13 = vld [vmem:[%s6839_s3 + $0x38] sm:$0xff]  ;;  %vm224_vm2 = vcmp.eq.s32.totalorder %v4144_v7, 2  ;;  %vm225_vm3 = vcmp.eq.s32.totalorder %v4144_v7, 3  ;;  %vm226_vm4 = vcmp.eq.s32.totalorder %v4144_v7, 4 }
  0x11   : > { %6964 = vst [vmem:[#allocation12_spill] sm:$0xff] %v4164_v11  ;;  %6965 = vst [vmem:[#allocation13_spill] sm:$0xff] %v4169_v12  ;;  %vm227_vm5 = vcmp.eq.s32.totalorder %v4144_v7, 5  ;;  %vm228_vm6 = vcmp.eq.s32.totalorder %v4144_v7, 6  ;;  %vm229_vm7 = vcmp.eq.s32.totalorder %v4144_v7, 7  ;;  %v4199_v16 = vsel %vm222_vm0, 1.0, %v4072_v15 }
  0x12   : > { %6966 = vst [vmem:[#allocation14_spill] sm:$0xff] %v4174_v13  ;;  %v4197_v14 = vld [vmem:[%s6840_s4] sm:$0x1]  ;;  %6968 = vst [vmem:[#allocation16_spill] sm:$0xff] %v4199_v16  ;;  %v4201_v17 = vsel %vm223_vm1, 1.0, %v4072_v15  ;;  %v4203_v18 = vsel %vm224_vm2, 1.0, %v4072_v15 }
  0x13   : > { %6967 = vst [vmem:[#allocation15_spill] sm:$0xff] %v4197_v14  ;;  %6969 = vst [vmem:[#allocation17_spill] sm:$0xff] %v4201_v17  ;;  %v4205_v19 = vsel %vm225_vm3, 1.0, %v4072_v15  ;;  %v4207_v20 = vsel %vm226_vm4, 1.0, %v4072_v15  ;;  %v4209_v21 = vsel %vm227_vm5, 1.0, %v4072_v15  ;;  %v4211_v22 = vsel %vm228_vm6, 1.0, %v4072_v15 }
  0x14   : > { %6970 = vst [vmem:[#allocation18_spill] sm:$0xff] %v4203_v18  ;;  %6971 = vst [vmem:[#allocation19_spill] sm:$0xff] %v4205_v19  ;;  %v4213_v23 = vsel %vm229_vm7, 1.0, %v4072_v15 }
  0x15   : > { %6972 = vst [vmem:[#allocation20_spill] sm:$0xff] %v4207_v20  ;;  %6973 = vst [vmem:[#allocation21_spill] sm:$0xff] %v4209_v21 }
  0x16   : > { %6974 = vst [vmem:[#allocation22_spill] sm:$0xff] %v4211_v22  ;;  %6975 = vst [vmem:[#allocation23_spill] sm:$0xff] %v4213_v23 }
  0x17 LB: >> { %v6984_v7 = vld [vmem:[#allocation8_spill] sm:$0xff]  ;;  %v4073_v24 = vmov 0   ;;  %v6985_v4 = vld [vmem:[#allocation5_spill] sm:$0xff]  ;;  %v6986_v2 = vld [vmem:[#allocation3_spill] sm:$0xff]  ;;  %vm295_vm8 = vcmask 130048   ;;  %s265_s30 = scalar_lea.vmem %s4183_s24, %s4070_s29  ;;  %vm4075_vm9 = vmmov 0   ;;  %s3891_s6 = scalar_lea.vmem %s4188_s27, %s4070_s29  ;;  %s4070_s29 = sphi %s4215_s29, %s264_s29  }
  0x18   : >> { %4055 = vset.pattern.permute.xlu1 %v4073_v24  ;;  %4054 = vset.pattern.permute.xlu0 %v4073_v24  ;;  %v6987_v3 = vld [vmem:[#allocation4_spill] sm:$0xff]  ;;  %v6988_v1 = vld [vmem:[#allocation2_spill] sm:$0xff]  ;;  %v6990_v6 = vld [vmem:[#allocation7_spill] sm:$0xff]  ;;  %v4243_v34 = vsub.s32 0, %v6984_v7  ;;  %v4246_v35 = vsub.s32 1, %v6984_v7  ;;  %v4249_v36 = vsub.s32 2, %v6984_v7 }
  0x19   : >> { %v6982_v16 = vld [vmem:[#allocation16_spill] sm:$0xff]  ;;  %290 = vperm.xlu1 %4055, %v6985_v4   ;;  %274 = vperm.xlu0 %4054, %v6986_v2   ;;  %v6989_v5 = vld [vmem:[#allocation6_spill] sm:$0xff]  ;;  %v6991_v8 = vld [vmem:[#allocation9_spill] sm:$0xff]  ;;  %v4252_v37 = vsub.s32 3, %v6984_v7  ;;  %v4255_v38 = vsub.s32 4, %v6984_v7  ;;  %v4258_v39 = vsub.s32 5, %v6984_v7 }
  0x1a   : >> { %v6983_v17 = vld [vmem:[#allocation17_spill] sm:$0xff]  ;;  %4003 = vmatprep.mubr.msk.f32.mxu0 %vm295_vm8, %v6989_v5  ;;  %v3968_v25 = vld [vmem:[%s265_s30] ss:$0 sm:$0xff]  ;;  %v6993_v10 = vld [vmem:[#allocation11_spill] sm:$0xff]  ;;  %6997 = vst [vmem:[#allocation24_spill] sm:$0xff] %v4243_v34  ;;  %v4261_v40 = vsub.s32 6, %v6984_v7 }
  0x1b   : >> { %v6979_v18 = vld [vmem:[#allocation18_spill] sm:$0xff]  ;;  %v6980_v19 = vld [vmem:[#allocation19_spill] sm:$0xff]  ;;  %v6994_v11 = vld [vmem:[#allocation12_spill] sm:$0xff]  ;;  %6998 = vst [vmem:[#allocation25_spill] sm:$0xff] %v4246_v35  ;;  %v930_v41 = vmul.f32 0.0013888889, %v6983_v17 }
  0x1c   : >> { %v6977_v20 = vld [vmem:[#allocation20_spill] sm:$0xff]  ;;  %v6978_v21 = vld [vmem:[#allocation21_spill] sm:$0xff]  ;;  %v6992_v9 = vld [vmem:[#allocation10_spill] sm:$0xff]  ;;  %6999 = vst [vmem:[#allocation26_spill] sm:$0xff] %v4249_v36  ;;  %v986_v42 = vmul.f32 0.16666667, %v6983_v17 }
  0x1d   : >> { %v6976_v23 = vld [vmem:[#allocation23_spill] sm:$0xff]  ;;  %v6981_v22 = vld [vmem:[#allocation22_spill] sm:$0xff]  ;;  %285 = vperm.xlu1 %4055, %v6987_v3   ;;  %269 = vperm.xlu0 %4054, %v6988_v1   ;;  %v6995_v12 = vld [vmem:[#allocation13_spill] sm:$0xff]  ;;  %7000 = vst [vmem:[#allocation27_spill] sm:$0xff] %v4252_v37  ;;  %v929_v43 = vmul.f32 0.0013888889, %v6982_v16 }
  0x1e   : >> { %v6996_v13 = vld [vmem:[#allocation14_spill] sm:$0xff]  ;;  %7001 = vst [vmem:[#allocation28_spill] sm:$0xff] %v4255_v38  ;;  %7002 = vst [vmem:[#allocation29_spill] sm:$0xff] %v4258_v39  ;;  %v985_v44 = vmul.f32 0.16666667, %v6982_v16  ;;  %v4282_v51 = vsub.s32 7, %v6984_v7 }
  0x1f   : >> { %7003 = vst [vmem:[#allocation30_spill] sm:$0xff] %v4261_v40  ;;  %v4268_v45 = vmul.f32 0.0013888889, %v6980_v19  ;;  %v4271_v47 = vmul.f32 0.16666667, %v6980_v19  ;;  %vm3817_vm10 = vcmask 523264  }
  0x20   : >> { %v4274_v48 = vmul.f32 0.0013888889, %v6979_v18  ;;  %v4277_v49 = vmul.f32 0.16666667, %v6979_v18  ;;  %7004 = vst [vmem:[#allocation31_spill] sm:$0xff] %v4282_v51  ;;  %s264_s29 = sadd.s32 1, %s4070_s29  }
  0x21   : >> { %v4285_v52 = vmul.f32 0.0013888889, %v6978_v21  ;;  %v4288_v53 = vmul.f32 0.16666667, %v6978_v21  ;;  %v4291_v55 = vmul.f32 0.0013888889, %v6977_v20 }
  0x22   : >> { %v4294_v56 = vmul.f32 0.16666667, %v6977_v20  ;;  %v4297_v57 = vmul.f32 0.0013888889, %v6976_v23  ;;  %v4304_v59 = vmul.f32 0.16666667, %v6976_v23 }
  0x23   : >> { %v4307_v60 = vmul.f32 0.0013888889, %v6981_v22  ;;  %v4310_v61 = vmul.f32 0.16666667, %v6981_v22  ;;  %p261_p4 = scmp.ge.s32.totalorder %s264_s29, 3  }
  0x25   : >> { %7006 = vst [vmem:[#allocation33_spill] sm:$0xff] %v4307_v60  ;;  %7007 = vst [vmem:[#allocation34_spill] sm:$0xff] %v4310_v61 }
  0x94   : >> { %v291_v26 = vpop.permute.xlu1 %290  ;;  %v275_v27 = vpop.permute.xlu0 %274 }
  0x95   : >> { %v282_v28 = vmul.f32 %v3968_v25, %v275_v27 }
  0x97   : >> { %v294_v29 = vadd.f32 %v291_v26, %v282_v28 }
  0x98   : >> { %v270_v30 = vpop.permute.xlu0 %269  ;;  %v286_v32 = vpop.permute.xlu1 %285 }
  0x99   : >> { %v281_v31 = vmul.f32 %v3968_v25, %v270_v30  ;;  %3999 = vmatprep.subr.mxu0 %v294_v29 }
  0x9a   : >> { %4000 = vmatpush3.msra.mxu0 %v294_v29 }
  0x9b   : >> { %v293_v33 = vadd.f32 %v286_v32, %v281_v31 }
  0x9d   : >> { %4001 = vmatprep.subr.mxu0 %v293_v33 }
  0x9e   : >> { %4002 = vmatpush3.msra.mxu0 %v293_v33 }
  0x9f   : >> { %4004 = vmatmul.mubr.msk.f32.vlgmr.msra.gmra.mxu0 %vm295_vm8, %v6990_v6 }
  0xa0   : >> { %4006 = vmatprep.mubr.msk.f32.mxu0 %vm295_vm8, %v6991_v8 }
  0xa3   : >> { %4007 = vmatmul.mubr.msk.f32.gmra.mxu0 %vm295_vm8, %v6992_v9 }
  0xa4   : >> { %4009 = vmatprep.mubr.msk.f32.mxu0 %vm295_vm8, %v6993_v10 }
  0xa7   : >> { %4010 = vmatmul.mubr.msk.f32.gmra.mxu0 %vm295_vm8, %v6994_v11 }
  0xa8   : >> { %4012 = vmatprep.mubr.msk.f32.mxu0 %vm295_vm8, %v6995_v12 }
  0xab   : >> { %4013 = vmatmul.mubr.msk.f32.gmra.mxu0 %vm295_vm8, %v6996_v13 }
 0x15f   : >> { %v4005_v46 = vpop.f32.mrf.mxu0 }
 0x160   : >> { %v4279_v50 = vmul.f32 0.015625, %v4005_v46 }
 0x161   : >> { %v386_v54 = vpop.f32.mrf.mxu0 }
 0x162   : >> { %v4301_v58 = vrot.slane %v4279_v50, %v4246_v35  ;;  %v4314_v62 = vrot.slane %v4279_v50, %v4243_v34  ;;  %v4318_v63 = vrot.slane %v4279_v50, %v4249_v36  ;;  %v4322_v0 = vrot.slane %v4279_v50, %v4252_v37 }
 0x163   : >> { %v4326_v15 = vrot.slane %v4279_v50, %v4255_v38  ;;  %v4008_v24 = vpop.f32.mrf.mxu0  ;;  %v4330_v25 = vrot.slane %v4279_v50, %v4258_v39  ;;  %v4334_v26 = vrot.slane %v4279_v50, %v4261_v40  ;;  %v938_v27 = vmul.f32 0.0001984127, %v4279_v50 }
 0x164   : >> { %7005 = vst [vmem:[#allocation32_spill] sm:$0xff] %v4301_v58  ;;  %7008 = vst [vmem:[#allocation35_spill] sm:$0xff] %v4318_v63  ;;  %v994_v28 = vmul.f32 0.041666668, %v4279_v50  ;;  %v506_v29 = vmul.f32 %v4301_v58, %v4279_v50  ;;  %v4342_v30 = vrot.slane %v4279_v50, %v4282_v51  ;;  %v4346_v31 = vadd.f32 %v6983_v17, %v4279_v50 }
 0x165   : >> { %7009 = vst [vmem:[#allocation36_spill] sm:$0xff] %v4322_v0  ;;  %7010 = vst [vmem:[#allocation37_spill] sm:$0xff] %v4326_v15  ;;  %v4348_v32 = vmul.f32 0.015625, %v386_v54  ;;  %v396_v33 = vpop.f32.mrf.mxu0  ;;  %v4350_v46 = vadd.f32 %v938_v27, %v930_v41  ;;  %v4354_v2 = vmul.f32 0.015625, %v4008_v24 }
 0x166   : >> { %7011 = vst [vmem:[#allocation38_spill] sm:$0xff] %v4330_v25  ;;  %7012 = vst [vmem:[#allocation39_spill] sm:$0xff] %v4342_v30  ;;  %v4352_v1 = vadd.f32 %v994_v28, %v986_v42  ;;  %v4356_v3 = vmul.f32 0.015625, %v396_v33 }
 0x167   : >> { %7013 = vst [vmem:[#allocation40_spill] sm:$0xff] %v4346_v31  ;;  %7014 = vst [vmem:[#allocation41_spill] sm:$0xff] %v4350_v46  ;;  %v4360_v4 = vrot.slane %v4348_v32, %v4243_v34  ;;  %v466_v5 = vmul.f32 %v4314_v62, %v4348_v32  ;;  %v4366_v54 = vrot.slane %v4348_v32, %v4246_v35  ;;  %v937_v9 = vmul.f32 0.0001984127, %v4348_v32  ;;  %v4011_v22 = vpop.f32.mrf.mxu0 }
 0x168   : >> { %7015 = vst [vmem:[#allocation42_spill] sm:$0xff] %v4352_v1  ;;  %v4370_v41 = vrot.slane %v4348_v32, %v4249_v36  ;;  %v4374_v42 = vrot.slane %v4348_v32, %v4252_v37  ;;  %v4378_v24 = vrot.slane %v4348_v32, %v4255_v38  ;;  %v4382_v27 = vrot.slane %v4348_v32, %v4258_v39 }
 0x169   : >> { %7016 = vst [vmem:[#allocation43_spill] sm:$0xff] %v4366_v54  ;;  %v4386_v28 = vrot.slane %v4348_v32, %v4261_v40  ;;  %v465_v33 = vmul.f32 %v4360_v4, %v4348_v32  ;;  %v505_v6 = vmul.f32 %v4366_v54, %v4279_v50  ;;  %v514_v7 = vadd.f32 %v506_v29, %v466_v5 }
 0x16a   : >> { %7017 = vst [vmem:[#allocation44_spill] sm:$0xff] %v4370_v41  ;;  %7018 = vst [vmem:[#allocation45_spill] sm:$0xff] %v4374_v42  ;;  %v4394_v8 = vrot.slane %v4348_v32, %v4282_v51  ;;  %v993_v10 = vmul.f32 0.041666668, %v4348_v32  ;;  %v4400_v11 = vadd.f32 %v6982_v16, %v4348_v32  ;;  %v4404_v12 = vrot.slane %v4354_v2, %v4243_v34 }
 0x16b   : >> { %7019 = vst [vmem:[#allocation46_spill] sm:$0xff] %v4378_v24  ;;  %7020 = vst [vmem:[#allocation47_spill] sm:$0xff] %v4382_v27  ;;  %v513_v13 = vadd.f32 %v505_v6, %v465_v33  ;;  %v4408_v5 = vrot.slane %v4354_v2, %v4246_v35  ;;  %v4412_v29 = vrot.slane %v4354_v2, %v4249_v36  ;;  %v996_v61 = vmul.f32 0.041666668, %v4354_v2 }
 0x16c   : >> { %7021 = vst [vmem:[#allocation48_spill] sm:$0xff] %v4394_v8  ;;  %7022 = vst [vmem:[#allocation49_spill] sm:$0xff] %v4400_v11  ;;  %v4416_v17 = vrot.slane %v4354_v2, %v4252_v37  ;;  %v4418_v14 = vadd.f32 %v937_v9, %v929_v43  ;;  %v4420_v16 = vadd.f32 %v993_v10, %v985_v44 }
 0x16d   : >> { %7023 = vst [vmem:[#allocation50_spill] sm:$0xff] %v4404_v12  ;;  %7024 = vst [vmem:[#allocation51_spill] sm:$0xff] %v4408_v5  ;;  %v468_v31 = vmul.f32 %v4404_v12, %v4348_v32  ;;  %v601_v6 = vmul.f32 %v4374_v42, %v4354_v2  ;;  %v508_v33 = vmul.f32 %v4408_v5, %v4279_v50 }
 0x16e   : >> { %7025 = vst [vmem:[#allocation52_spill] sm:$0xff] %v4412_v29  ;;  %7026 = vst [vmem:[#allocation53_spill] sm:$0xff] %v4416_v17  ;;  %v602_v11 = vmul.f32 %v4322_v0, %v4354_v2  ;;  %v604_v1 = vmul.f32 %v4416_v17, %v4354_v2  ;;  %v4434_v9 = vrot.slane %v4354_v2, %v4255_v38 }
 0x16f   : >> { %7027 = vst [vmem:[#allocation54_spill] sm:$0xff] %v4418_v14  ;;  %7028 = vst [vmem:[#allocation55_spill] sm:$0xff] %v4420_v16  ;;  %v4438_v10 = vrot.slane %v4354_v2, %v4258_v39  ;;  %v4442_v43 = vrot.slane %v4354_v2, %v4261_v40  ;;  %v4446_v44 = vrot.slane %v4354_v2, %v4282_v51  ;;  %v940_v16 = vmul.f32 0.0001984127, %v4354_v2 }
 0x170   : >> { %7029 = vst [vmem:[#allocation56_spill] sm:$0xff] %v4434_v9  ;;  %v4452_v46 = vadd.f32 %v6980_v19, %v4354_v2  ;;  %v4456_v14 = vrot.slane %v4356_v3, %v4243_v34  ;;  %v4460_v60 = vrot.slane %v4356_v3, %v4246_v35  ;;  %v516_v0 = vadd.f32 %v508_v33, %v468_v31 }
 0x171   : >> { %7030 = vst [vmem:[#allocation57_spill] sm:$0xff] %v4438_v10  ;;  %7031 = vst [vmem:[#allocation58_spill] sm:$0xff] %v4446_v44  ;;  %v4463_v17 = vadd.f32 %v940_v16, %v4268_v45  ;;  %v4467_v42 = vrot.slane %v4356_v3, %v4249_v36  ;;  %v553_v19 = vmul.f32 %v4370_v41, %v4356_v3  ;;  %v406_v41 = vpop.f32.mrf.mxu0 }
 0x172   : >> { %7032 = vst [vmem:[#allocation59_spill] sm:$0xff] %v4452_v46  ;;  %7033 = vst [vmem:[#allocation60_spill] sm:$0xff] %v4456_v14  ;;  %v4472_v46 = vadd.f32 %v996_v61, %v4271_v47  ;;  %v467_v5 = vmul.f32 %v4456_v14, %v4348_v32  ;;  %v507_v58 = vmul.f32 %v4460_v60, %v4279_v50 }
 0x173   : >> { %7034 = vst [vmem:[#allocation61_spill] sm:$0xff] %v4460_v60  ;;  %7035 = vst [vmem:[#allocation62_spill] sm:$0xff] %v4463_v17  ;;  %v554_v16 = vmul.f32 %v4318_v63, %v4356_v3  ;;  %v555_v45 = vmul.f32 %v4467_v42, %v4356_v3  ;;  %v556_v31 = vmul.f32 %v4412_v29, %v4356_v3 }
 0x174   : >> { %7036 = vst [vmem:[#allocation63_spill] sm:$0xff] %v4467_v42  ;;  %7037 = vst [vmem:[#allocation64_spill] sm:$0xff] %v4472_v46  ;;  %v561_v33 = vadd.f32 %v553_v19, %v513_v13  ;;  %v4486_v47 = vrot.slane %v4356_v3, %v4252_v37  ;;  %v515_v61 = vadd.f32 %v507_v58, %v467_v5  ;;  %v939_v58 = vmul.f32 0.0001984127, %v4356_v3 }
 0x175   : >> { %v562_v46 = vadd.f32 %v554_v16, %v514_v7  ;;  %v4490_v17 = vrot.slane %v4356_v3, %v4255_v38  ;;  %v4494_v63 = vrot.slane %v4356_v3, %v4258_v39  ;;  %v564_v42 = vadd.f32 %v556_v31, %v516_v0 }
 0x176   : >> { %7038 = vst [vmem:[#allocation65_spill] sm:$0xff] %v4486_v47  ;;  %v603_v29 = vmul.f32 %v4486_v47, %v4354_v2  ;;  %v4500_v13 = vrot.slane %v4356_v3, %v4261_v40  ;;  %v4504_v7 = vrot.slane %v4356_v3, %v4282_v51  ;;  %v563_v19 = vadd.f32 %v555_v45, %v515_v61 }
 0x177   : >> { %7039 = vst [vmem:[#allocation66_spill] sm:$0xff] %v4490_v17  ;;  %7040 = vst [vmem:[#allocation67_spill] sm:$0xff] %v4494_v63  ;;  %v995_v5 = vmul.f32 0.041666668, %v4356_v3  ;;  %v4510_v16 = vadd.f32 %v6979_v18, %v4356_v3  ;;  %v4512_v0 = vmul.f32 0.015625, %v4011_v22  ;;  %v4514_v31 = vmul.f32 0.015625, %v406_v41 }
 0x178   : >> { %7041 = vst [vmem:[#allocation68_spill] sm:$0xff] %v4504_v7  ;;  %v609_v47 = vadd.f32 %v601_v6, %v561_v33  ;;  %v610_v60 = vadd.f32 %v602_v11, %v562_v46  ;;  %v4517_v54 = vadd.f32 %v939_v58, %v4274_v48  ;;  %v611_v45 = vadd.f32 %v603_v29, %v563_v19 }
 0x179   : >> { %7042 = vst [vmem:[#allocation69_spill] sm:$0xff] %v4510_v16  ;;  %v4520_v12 = vadd.f32 %v995_v5, %v4277_v49  ;;  %v612_v61 = vadd.f32 %v604_v1, %v564_v42  ;;  %v4524_v14 = vrot.slane %v4512_v0, %v4243_v34  ;;  %v4528_v22 = vrot.slane %v4512_v0, %v4246_v35 }
 0x17a   : >> { %7043 = vst [vmem:[#allocation70_spill] sm:$0xff] %v4517_v54  ;;  %v4532_v41 = vrot.slane %v4512_v0, %v4249_v36  ;;  %v4536_v11 = vrot.slane %v4512_v0, %v4252_v37  ;;  %v4540_v48 = vrot.slane %v4512_v0, %v4255_v38  ;;  %v4544_v1 = vrot.slane %v4512_v0, %v4258_v39 }
 0x17b   : >> { %7044 = vst [vmem:[#allocation71_spill] sm:$0xff] %v4520_v12  ;;  %7045 = vst [vmem:[#allocation72_spill] sm:$0xff] %v4524_v14  ;;  %v697_v49 = vmul.f32 %v4382_v27, %v4512_v0  ;;  %v698_v46 = vmul.f32 %v4330_v25, %v4512_v0  ;;  %v470_v42 = vmul.f32 %v4524_v14, %v4348_v32  ;;  %v942_v54 = vmul.f32 0.0001984127, %v4512_v0 }
 0x17c   : >> { %7046 = vst [vmem:[#allocation73_spill] sm:$0xff] %v4528_v22  ;;  %7047 = vst [vmem:[#allocation74_spill] sm:$0xff] %v4532_v41  ;;  %v510_v29 = vmul.f32 %v4528_v22, %v4279_v50  ;;  %v558_v6 = vmul.f32 %v4532_v41, %v4356_v3  ;;  %v606_v33 = vmul.f32 %v4536_v11, %v4354_v2 }
 0x17d   : >> { %7048 = vst [vmem:[#allocation75_spill] sm:$0xff] %v4536_v11  ;;  %7049 = vst [vmem:[#allocation76_spill] sm:$0xff] %v4540_v48  ;;  %v4560_v19 = vmul.f32 %v4494_v63, %v4512_v0  ;;  %v4564_v58 = vmul.f32 %v4438_v10, %v4512_v0  ;;  %v4568_v5 = vmul.f32 %v4544_v1, %v4512_v0  ;;  %v998_v63 = vmul.f32 0.041666668, %v4512_v0 }
 0x17e   : >> { %7050 = vst [vmem:[#allocation77_spill] sm:$0xff] %v4544_v1  ;;  %v4572_v18 = vrot.slane %v4512_v0, %v4261_v40  ;;  %v518_v16 = vadd.f32 %v510_v29, %v470_v42  ;;  %v4576_v12 = vrot.slane %v4512_v0, %v4282_v51  ;;  %v4582_v10 = vadd.f32 %v6978_v21, %v4512_v0 }
 0x17f   : >> { %v4586_v1 = vrot.slane %v4514_v31, %v4243_v34  ;;  %v4590_v25 = vrot.slane %v4514_v31, %v4246_v35  ;;  %v4594_v42 = vrot.slane %v4514_v31, %v4249_v36  ;;  %v4597_v27 = vadd.f32 %v942_v54, %v4285_v52  ;;  %v4014_v54 = vpop.f32.mrf.mxu0 }
 0x180   : >> { %7051 = vst [vmem:[#allocation78_spill] sm:$0xff] %v4576_v12  ;;  %7052 = vst [vmem:[#allocation79_spill] sm:$0xff] %v4582_v10  ;;  %v566_v29 = vadd.f32 %v558_v6, %v518_v16  ;;  %v4600_v11 = vadd.f32 %v998_v63, %v4288_v53  ;;  %v4604_v21 = vrot.slane %v4514_v31, %v4252_v37 }
 0x181   : >> { %7053 = vst [vmem:[#allocation80_spill] sm:$0xff] %v4590_v25  ;;  %7054 = vst [vmem:[#allocation81_spill] sm:$0xff] %v4594_v42  ;;  %v469_v10 = vmul.f32 %v4586_v1, %v4348_v32  ;;  %v509_v41 = vmul.f32 %v4590_v25, %v4279_v50  ;;  %v557_v22 = vmul.f32 %v4594_v42, %v4356_v3 }
 0x182   : >> { %7055 = vst [vmem:[#allocation82_spill] sm:$0xff] %v4597_v27  ;;  %7056 = vst [vmem:[#allocation83_spill] sm:$0xff] %v4600_v11  ;;  %v4614_v52 = vrot.slane %v4514_v31, %v4255_v38  ;;  %v605_v53 = vmul.f32 %v4604_v21, %v4354_v2  ;;  %v614_v63 = vadd.f32 %v606_v33, %v566_v29 }
 0x183   : >> { %7057 = vst [vmem:[#allocation84_spill] sm:$0xff] %v4604_v21  ;;  %v649_v16 = vmul.f32 %v4378_v24, %v4514_v31  ;;  %v650_v6 = vmul.f32 %v4326_v15, %v4514_v31  ;;  %v517_v11 = vadd.f32 %v509_v41, %v469_v10  ;;  %v651_v27 = vmul.f32 %v4490_v17, %v4514_v31 }
 0x184   : >> { %7058 = vst [vmem:[#allocation85_spill] sm:$0xff] %v4614_v52  ;;  %v652_v42 = vmul.f32 %v4434_v9, %v4514_v31  ;;  %v653_v25 = vmul.f32 %v4614_v52, %v4514_v31  ;;  %v654_v21 = vmul.f32 %v4540_v48, %v4514_v31  ;;  %v4632_v24 = vrot.slane %v4514_v31, %v4258_v39  ;;  %v416_v9 = vpop.f32.mrf.mxu0 }
 0x185   : >> { %v657_v33 = vadd.f32 %v649_v16, %v609_v47  ;;  %v658_v29 = vadd.f32 %v650_v6, %v610_v60  ;;  %v565_v15 = vadd.f32 %v557_v22, %v517_v11  ;;  %v659_v10 = vadd.f32 %v651_v27, %v611_v45 }
 0x186   : >> { %7059 = vst [vmem:[#allocation86_spill] sm:$0xff] %v4632_v24  ;;  %v660_v41 = vadd.f32 %v652_v42, %v612_v61  ;;  %v4636_v17 = vrot.slane %v4514_v31, %v4261_v40  ;;  %v662_v14 = vadd.f32 %v654_v21, %v614_v63  ;;  %v701_v52 = vmul.f32 %v4632_v24, %v4512_v0 }
 0x187   : >> { %v4642_v47 = vrot.slane %v4514_v31, %v4282_v51  ;;  %v941_v60 = vmul.f32 0.0001984127, %v4514_v31  ;;  %v613_v16 = vadd.f32 %v605_v53, %v565_v15  ;;  %v997_v22 = vmul.f32 0.041666668, %v4514_v31 }
 0x188   : >> { %v4648_v27 = vadd.f32 %v6977_v20, %v4514_v31  ;;  %v4650_v45 = vmul.f32 0.015625, %v4014_v54  ;;  %v4655_v61 = vmul.f32 0.015625, %v416_v9  ;;  %v4657_v11 = vadd.f32 %v697_v49, %v657_v33 }
 0x189   : >> { %7060 = vst [vmem:[#allocation87_spill] sm:$0xff] %v4642_v47  ;;  %v4653_v21 = vadd.f32 %v941_v60, %v4291_v55  ;;  %v4659_v42 = vadd.f32 %v698_v46, %v658_v29  ;;  %v661_v63 = vadd.f32 %v653_v25, %v613_v16  ;;  %v4662_v15 = vadd.f32 %v997_v22, %v4294_v56 }
 0x18a   : >> { %7061 = vst [vmem:[#allocation88_spill] sm:$0xff] %v4648_v27  ;;  %v4666_v53 = vrot.slane %v4650_v45, %v4243_v34  ;;  %v4670_v54 = vrot.slane %v4650_v45, %v4246_v35  ;;  %v4674_v55 = vrot.slane %v4650_v45, %v4249_v36  ;;  %v4678_v9 = vrot.slane %v4650_v45, %v4252_v37 }
 0x18b   : >> { %7062 = vst [vmem:[#allocation89_spill] sm:$0xff] %v4653_v21  ;;  %7063 = vst [vmem:[#allocation90_spill] sm:$0xff] %v4662_v15  ;;  %v4682_v56 = vrot.slane %v4650_v45, %v4255_v38  ;;  %v4686_v25 = vrot.slane %v4650_v45, %v4258_v39  ;;  %v4694_v6 = vrot.slane %v4650_v45, %v4261_v40 }
 0x18c   : >> { %v472_v49 = vmul.f32 %v4666_v53, %v4348_v32  ;;  %v512_v46 = vmul.f32 %v4670_v54, %v4279_v50  ;;  %v4698_v33 = vrot.slane %v4650_v45, %v4282_v51  ;;  %v560_v29 = vmul.f32 %v4674_v55, %v4356_v3 }
 0x18d   : >> { %7064 = vst [vmem:[#allocation91_spill] sm:$0xff] %v4682_v56  ;;  %v608_v60 = vmul.f32 %v4678_v9, %v4354_v2  ;;  %v656_v16 = vmul.f32 %v4682_v56, %v4514_v31  ;;  %v704_v22 = vmul.f32 %v4686_v25, %v4512_v0  ;;  %v793_v27 = vmul.f32 %v4394_v8, %v4650_v45 }
 0x18e   : >> { %7065 = vst [vmem:[#allocation92_spill] sm:$0xff] %v4698_v33  ;;  %v520_v20 = vadd.f32 %v512_v46, %v472_v49  ;;  %v794_v15 = vmul.f32 %v4342_v30, %v4650_v45  ;;  %v795_v21 = vmul.f32 %v4504_v7, %v4650_v45  ;;  %v796_v24 = vmul.f32 %v4446_v44, %v4650_v45 }
 0x18f   : >> { %v797_v48 = vmul.f32 %v4642_v47, %v4650_v45  ;;  %v798_v56 = vmul.f32 %v4576_v12, %v4650_v45  ;;  %v800_v49 = vmul.f32 %v4698_v33, %v4650_v45  ;;  %v944_v8 = vmul.f32 0.0001984127, %v4650_v45 }
 0x190   : >> { %v568_v46 = vadd.f32 %v560_v29, %v520_v20  ;;  %v1000_v30 = vmul.f32 0.041666668, %v4650_v45  ;;  %v4726_v7 = vadd.f32 %v6976_v23, %v4650_v45  ;;  %v460_v44 = vrot.slane %v4655_v61, %v4243_v34 }
 0x191   : >> { %v4732_v47 = vrot.slane %v4655_v61, %v4246_v35  ;;  %v4736_v12 = vrot.slane %v4655_v61, %v4249_v36  ;;  %v4740_v20 = vrot.slane %v4655_v61, %v4252_v37  ;;  %v4743_v33 = vadd.f32 %v944_v8, %v4297_v57 }
 0x192   : >> { %7066 = vst [vmem:[#allocation93_spill] sm:$0xff] %v4726_v7  ;;  %v616_v29 = vadd.f32 %v608_v60, %v568_v46  ;;  %v4746_v23 = vadd.f32 %v1000_v30, %v4304_v59  ;;  %v4750_v7 = vrot.slane %v4655_v61, %v4255_v38  ;;  %v471_v35 = vmul.f32 %v460_v44, %v4348_v32 }
 0x193   : >> { %7067 = vst [vmem:[#allocation94_spill] sm:$0xff] %v4743_v33  ;;  %v511_v36 = vmul.f32 %v4732_v47, %v4279_v50  ;;  %v559_v37 = vmul.f32 %v4736_v12, %v4356_v3  ;;  %v607_v60 = vmul.f32 %v4740_v20, %v4354_v2  ;;  %v4763_v59 = vrot.slane %v4655_v61, %v4258_v39 }
 0x194   : >> { %7068 = vst [vmem:[#allocation95_spill] sm:$0xff] %v4746_v23  ;;  %v664_v8 = vadd.f32 %v656_v16, %v616_v29  ;;  %v655_v57 = vmul.f32 %v4750_v7, %v4514_v31  ;;  %v707_v30 = vadd.f32 %v4560_v19, %v659_v10  ;;  %v708_v46 = vadd.f32 %v4564_v58, %v660_v41 }
 0x195   : >> { %v519_v32 = vadd.f32 %v511_v36, %v471_v35  ;;  %v709_v50 = vadd.f32 %v701_v52, %v661_v63  ;;  %v710_v38 = vadd.f32 %v4568_v5, %v662_v14  ;;  %v703_v3 = vmul.f32 %v4763_v59, %v4512_v0 }
 0x196   : >> { %v712_v2 = vadd.f32 %v704_v22, %v664_v8  ;;  %v4772_v16 = vrot.slane %v4655_v61, %v4261_v40  ;;  %v745_v31 = vmul.f32 %v4386_v28, %v4655_v61  ;;  %v746_v35 = vmul.f32 %v4334_v26, %v4655_v61 }
 0x197   : >> { %v567_v29 = vadd.f32 %v559_v37, %v519_v32  ;;  %v747_v36 = vmul.f32 %v4500_v13, %v4655_v61  ;;  %v748_v14 = vmul.f32 %v4442_v43, %v4655_v61  ;;  %v749_v0 = vmul.f32 %v4636_v17, %v4655_v61 }
 0x198   : >> { %v750_v19 = vmul.f32 %v4572_v18, %v4655_v61  ;;  %v751_v58 = vmul.f32 %v4772_v16, %v4655_v61  ;;  %v752_v37 = vmul.f32 %v4694_v6, %v4655_v61  ;;  %v753_v52 = vadd.f32 %v745_v31, %v4657_v11 }
 0x199   : >> { %v615_v5 = vadd.f32 %v607_v60, %v567_v29  ;;  %v754_v10 = vadd.f32 %v746_v35, %v4659_v42  ;;  %v755_v41 = vadd.f32 %v747_v36, %v707_v30  ;;  %v756_v63 = vadd.f32 %v748_v14, %v708_v46  ;;  %v7070_v46 = vld [vmem:[#allocation50_spill] sm:$0xff]  ;;  %v7074_v29 = vld [vmem:[#allocation61_spill] sm:$0xff]  ;;  %v7075_v36 = vld [vmem:[#allocation51_spill] sm:$0xff] }
 0x19a   : >> { %v757_v22 = vadd.f32 %v749_v0, %v709_v50  ;;  %v758_v8 = vadd.f32 %v750_v19, %v710_v38  ;;  %v760_v32 = vadd.f32 %v752_v37, %v712_v2  ;;  %v4794_v39 = vrot.slane %v4655_v61, %v4282_v51  ;;  %v7071_v50 = vld [vmem:[#allocation72_spill] sm:$0xff]  ;;  %v7077_v19 = vld [vmem:[#allocation73_spill] sm:$0xff] }
 0x19b   : >> { %v663_v40 = vadd.f32 %v655_v57, %v615_v5  ;;  %v4796_v23 = vadd.f32 %v793_v27, %v753_v52  ;;  %v4798_v34 = vadd.f32 %v794_v15, %v754_v10  ;;  %v4800_v33 = vadd.f32 %v795_v21, %v755_v41  ;;  %v7069_v21 = vld [vmem:[#allocation60_spill] sm:$0xff] }
 0x19c   : >> { %v4802_v60 = vadd.f32 %v796_v24, %v756_v63  ;;  %v4804_v11 = vadd.f32 %v797_v48, %v757_v22  ;;  %v4806_v42 = vadd.f32 %v798_v56, %v758_v8  ;;  %v799_v38 = vmul.f32 %v4794_v39, %v4650_v45  ;;  %v7073_v2 = vld [vmem:[#allocation32_spill] sm:$0xff] }
 0x19d   : >> { %v711_v30 = vadd.f32 %v703_v3, %v663_v40  ;;  %v4810_v57 = vadd.f32 %v800_v49, %v760_v32  ;;  %v809_v27 = vmul.f32 %v4796_v23, %v4360_v4  ;;  %v810_v15 = vmul.f32 %v4796_v23, %v4314_v62  ;;  %v7072_v3 = vld [vmem:[#allocation43_spill] sm:$0xff]  ;;  %v7076_v0 = vld [vmem:[#allocation80_spill] sm:$0xff] }
 0x19e   : >> { %v811_v24 = vmul.f32 %v4796_v23, %v7069_v21  ;;  %v812_v48 = vmul.f32 %v4796_v23, %v7070_v46  ;;  %v813_v40 = vmul.f32 %v4796_v23, %v4586_v1  ;;  %v814_v45 = vmul.f32 %v4796_v23, %v7071_v50  ;;  %v7079_v21 = vld [vmem:[#allocation35_spill] sm:$0xff]  ;;  %v7081_v50 = vld [vmem:[#allocation52_spill] sm:$0xff] }
 0x19f   : >> { %v759_v56 = vadd.f32 %v751_v58, %v711_v30  ;;  %v815_v49 = vmul.f32 %v4796_v23, %v460_v44  ;;  %v816_v4 = vmul.f32 %v4796_v23, %v4666_v53  ;;  %v817_v62 = vmul.f32 %v4798_v34, %v7072_v3  ;;  %v7078_v30 = vld [vmem:[#allocation44_spill] sm:$0xff] }
 0x1a0   : >> { %v818_v31 = vmul.f32 %v4798_v34, %v7073_v2  ;;  %v819_v35 = vmul.f32 %v4798_v34, %v7074_v29  ;;  %v820_v1 = vmul.f32 %v4798_v34, %v7075_v36  ;;  %v821_v44 = vmul.f32 %v4798_v34, %v7076_v0  ;;  %v7084_v36 = vld [vmem:[#allocation45_spill] sm:$0xff]  ;;  %v7085_v0 = vld [vmem:[#allocation36_spill] sm:$0xff] }
 0x1a1   : >> { %v4835_v14 = vadd.f32 %v799_v38, %v759_v56  ;;  %v822_v53 = vmul.f32 %v4798_v34, %v7077_v19  ;;  %v823_v58 = vmul.f32 %v4798_v34, %v4732_v47  ;;  %v824_v37 = vmul.f32 %v4798_v34, %v4670_v54  ;;  %v7080_v56 = vld [vmem:[#allocation63_spill] sm:$0xff]  ;;  %v7086_v19 = vld [vmem:[#allocation65_spill] sm:$0xff] }
 0x1a2   : >> { %v825_v5 = vadd.f32 %v817_v62, %v809_v27  ;;  %v826_v52 = vadd.f32 %v818_v31, %v810_v15  ;;  %v827_v10 = vadd.f32 %v819_v35, %v811_v24  ;;  %v828_v41 = vadd.f32 %v820_v1, %v812_v48  ;;  %v7082_v27 = vld [vmem:[#allocation81_spill] sm:$0xff]  ;;  %v7083_v24 = vld [vmem:[#allocation74_spill] sm:$0xff] }
 0x1a3   : >> { %v829_v63 = vadd.f32 %v821_v44, %v813_v40  ;;  %v830_v22 = vadd.f32 %v822_v53, %v814_v45  ;;  %v831_v8 = vadd.f32 %v823_v58, %v815_v49  ;;  %v832_v32 = vadd.f32 %v824_v37, %v816_v4  ;;  %v7087_v53 = vld [vmem:[#allocation53_spill] sm:$0xff]  ;;  %v7088_v58 = vld [vmem:[#allocation84_spill] sm:$0xff] }
 0x1a4   : >> { %v833_v38 = vmul.f32 %v4800_v33, %v7078_v30  ;;  %v834_v46 = vmul.f32 %v4800_v33, %v7079_v21  ;;  %v835_v47 = vmul.f32 %v4800_v33, %v7080_v56  ;;  %v836_v54 = vmul.f32 %v4800_v33, %v7081_v50  ;;  %v7090_v56 = vld [vmem:[#allocation46_spill] sm:$0xff]  ;;  %v7091_v50 = vld [vmem:[#allocation37_spill] sm:$0xff] }
 0x1a5   : >> { %v837_v15 = vmul.f32 %v4800_v33, %v7082_v27  ;;  %v838_v48 = vmul.f32 %v4800_v33, %v7083_v24  ;;  %v839_v40 = vmul.f32 %v4800_v33, %v4736_v12  ;;  %v840_v45 = vmul.f32 %v4800_v33, %v4674_v55  ;;  %v7092_v27 = vld [vmem:[#allocation66_spill] sm:$0xff]  ;;  %v7094_v24 = vld [vmem:[#allocation85_spill] sm:$0xff] }
 0x1a6   : >> { %v841_v49 = vadd.f32 %v833_v38, %v825_v5  ;;  %v842_v4 = vadd.f32 %v834_v46, %v826_v52  ;;  %v843_v3 = vadd.f32 %v835_v47, %v827_v10  ;;  %v844_v62 = vadd.f32 %v836_v54, %v828_v41  ;;  %v7089_v5 = vld [vmem:[#allocation75_spill] sm:$0xff] }
 0x1a7   : >> { %v845_v2 = vadd.f32 %v837_v15, %v829_v63  ;;  %v846_v31 = vadd.f32 %v838_v48, %v830_v22  ;;  %v847_v29 = vadd.f32 %v839_v40, %v831_v8  ;;  %v848_v35 = vadd.f32 %v840_v45, %v832_v32  ;;  %v7093_v15 = vld [vmem:[#allocation56_spill] sm:$0xff] }
 0x1a8   : >> { %v849_v1 = vmul.f32 %v4802_v60, %v7084_v36  ;;  %v850_v44 = vmul.f32 %v4802_v60, %v7085_v0  ;;  %v851_v12 = vmul.f32 %v4802_v60, %v7086_v19  ;;  %v852_v55 = vmul.f32 %v4802_v60, %v7087_v53  ;;  %v7095_v40 = vld [vmem:[#allocation76_spill] sm:$0xff] }
 0x1a9   : >> { %v853_v37 = vmul.f32 %v4802_v60, %v7088_v58  ;;  %v854_v52 = vmul.f32 %v4802_v60, %v7089_v5  ;;  %v855_v10 = vmul.f32 %v4802_v60, %v4740_v20  ;;  %v856_v41 = vmul.f32 %v4802_v60, %v4678_v9  ;;  %v7100_v58 = vld [vmem:[#allocation57_spill] sm:$0xff]  ;;  %v7101_v5 = vld [vmem:[#allocation86_spill] sm:$0xff] }
 0x1aa   : >> { %v857_v63 = vadd.f32 %v849_v1, %v841_v49  ;;  %v858_v22 = vadd.f32 %v850_v44, %v842_v4  ;;  %v859_v8 = vadd.f32 %v851_v12, %v843_v3  ;;  %v860_v32 = vadd.f32 %v852_v55, %v844_v62  ;;  %v7096_v4 = vld [vmem:[#allocation91_spill] sm:$0xff]  ;;  %v7098_v12 = vld [vmem:[#allocation38_spill] sm:$0xff] }
 0x1ab   : >> { %v861_v30 = vadd.f32 %v853_v37, %v845_v2  ;;  %v862_v38 = vadd.f32 %v854_v52, %v846_v31  ;;  %v863_v21 = vadd.f32 %v855_v10, %v847_v29  ;;  %v864_v46 = vadd.f32 %v856_v41, %v848_v35  ;;  %v7097_v44 = vld [vmem:[#allocation47_spill] sm:$0xff]  ;;  %v7102_v10 = vld [vmem:[#allocation77_spill] sm:$0xff] }
 0x1ac   : >> { %v865_v47 = vmul.f32 %v4804_v11, %v7090_v56  ;;  %v866_v54 = vmul.f32 %v4804_v11, %v7091_v50  ;;  %v867_v20 = vmul.f32 %v4804_v11, %v7092_v27  ;;  %v868_v9 = vmul.f32 %v4804_v11, %v7093_v15  ;;  %v7099_v55 = vld [vmem:[#allocation67_spill] sm:$0xff] }
 0x1ad   : >> { %v869_v48 = vmul.f32 %v4804_v11, %v7094_v24  ;;  %v870_v45 = vmul.f32 %v4804_v11, %v7095_v40  ;;  %v871_v49 = vmul.f32 %v4804_v11, %v4750_v7  ;;  %v872_v3 = vmul.f32 %v4804_v11, %v7096_v4  ;;  %v7104_v4 = vld [vmem:[#allocation39_spill] sm:$0xff] }
 0x1ae   : >> { %v873_v62 = vadd.f32 %v865_v47, %v857_v63  ;;  %v874_v2 = vadd.f32 %v866_v54, %v858_v22  ;;  %v875_v31 = vadd.f32 %v867_v20, %v859_v8  ;;  %v876_v29 = vadd.f32 %v868_v9, %v860_v32 }
 0x1af   : >> { %v877_v35 = vadd.f32 %v869_v48, %v861_v30  ;;  %v878_v36 = vadd.f32 %v870_v45, %v862_v38  ;;  %v879_v1 = vadd.f32 %v871_v49, %v863_v21  ;;  %v880_v0 = vadd.f32 %v872_v3, %v864_v46  ;;  %v7103_v49 = vld [vmem:[#allocation48_spill] sm:$0xff] }
 0x1b0   : >> { %v881_v19 = vmul.f32 %v4806_v42, %v7097_v44  ;;  %v882_v53 = vmul.f32 %v4806_v42, %v7098_v12  ;;  %v883_v7 = vmul.f32 %v4806_v42, %v7099_v55  ;;  %v884_v37 = vmul.f32 %v4806_v42, %v7100_v58  ;;  %v7105_v3 = vld [vmem:[#allocation68_spill] sm:$0xff] }
 0x1b1   : >> { %v885_v52 = vmul.f32 %v4806_v42, %v7101_v5  ;;  %v886_v41 = vmul.f32 %v4806_v42, %v7102_v10  ;;  %v887_v63 = vmul.f32 %v4806_v42, %v4763_v59  ;;  %v888_v22 = vmul.f32 %v4806_v42, %v4686_v25 }
 0x1b2   : >> { %v889_v8 = vadd.f32 %v881_v19, %v873_v62  ;;  %v890_v32 = vadd.f32 %v882_v53, %v874_v2  ;;  %v891_v30 = vadd.f32 %v883_v7, %v875_v31  ;;  %v892_v38 = vadd.f32 %v884_v37, %v876_v29  ;;  %v7106_v62 = vld [vmem:[#allocation58_spill] sm:$0xff]  ;;  %v7107_v2 = vld [vmem:[#allocation87_spill] sm:$0xff] }
 0x1b3   : >> { %v893_v21 = vadd.f32 %v885_v52, %v877_v35  ;;  %v894_v46 = vadd.f32 %v886_v41, %v878_v36  ;;  %v895_v56 = vadd.f32 %v887_v63, %v879_v1  ;;  %v896_v47 = vadd.f32 %v888_v22, %v880_v0  ;;  %v7108_v29 = vld [vmem:[#allocation78_spill] sm:$0xff]  ;;  %v7109_v1 = vld [vmem:[#allocation92_spill] sm:$0xff] }
 0x1b4   : >> { %v897_v50 = vmul.f32 %v4835_v14, %v4386_v28  ;;  %v898_v54 = vmul.f32 %v4835_v14, %v4334_v26  ;;  %v899_v59 = vmul.f32 %v4835_v14, %v4500_v13  ;;  %v900_v25 = vmul.f32 %v4835_v14, %v4442_v43  ;;  %v7110_v22 = vld [vmem:[#allocation22_spill] sm:$0xff] }
 0x1b5   : >> { %v901_v27 = vmul.f32 %v4835_v14, %v4636_v17  ;;  %v902_v20 = vmul.f32 %v4835_v14, %v4572_v18  ;;  %v903_v15 = vmul.f32 %v4835_v14, %v4772_v16  ;;  %v904_v28 = vmul.f32 %v4835_v14, %v4694_v6 }
 0x1b6   : >> { %v905_v9 = vadd.f32 %v897_v50, %v889_v8  ;;  %v906_v26 = vadd.f32 %v898_v54, %v890_v32  ;;  %v907_v24 = vadd.f32 %v899_v59, %v891_v30  ;;  %v908_v48 = vadd.f32 %v900_v25, %v892_v38  ;;  %v7111_v32 = vld [vmem:[#allocation33_spill] sm:$0xff]  ;;  %v7114_v59 = vld [vmem:[#allocation70_spill] sm:$0xff] }
 0x1b7   : >> { %v909_v13 = vadd.f32 %v901_v27, %v893_v21  ;;  %v910_v40 = vadd.f32 %v902_v20, %v894_v46  ;;  %v911_v45 = vadd.f32 %v903_v15, %v895_v56  ;;  %v912_v43 = vadd.f32 %v904_v28, %v896_v47  ;;  %v7112_v56 = vld [vmem:[#allocation54_spill] sm:$0xff]  ;;  %v7113_v50 = vld [vmem:[#allocation41_spill] sm:$0xff] }
 0x1b8   : >> { %v913_v17 = vmul.f32 %v4810_v57, %v7103_v49  ;;  %v914_v18 = vmul.f32 %v4810_v57, %v7104_v4  ;;  %v915_v16 = vmul.f32 %v4810_v57, %v7105_v3  ;;  %v916_v6 = vmul.f32 %v4810_v57, %v7106_v62  ;;  %v7115_v27 = vld [vmem:[#allocation62_spill] sm:$0xff]  ;;  %v7116_v15 = vld [vmem:[#allocation89_spill] sm:$0xff]  ;;  %v7119_v49 = vld [vmem:[#allocation24_spill] sm:$0xff] }
 0x1b9   : >> { %v917_v31 = vmul.f32 %v4810_v57, %v7107_v2  ;;  %v918_v35 = vmul.f32 %v4810_v57, %v7108_v29  ;;  %v919_v36 = vmul.f32 %v4810_v57, %v4794_v39  ;;  %v920_v0 = vmul.f32 %v4810_v57, %v7109_v1 }
 0x1ba   : >> { %v4941_v44 = vadd.f32 %v913_v17, %v905_v9  ;;  %v4943_v19 = vadd.f32 %v914_v18, %v906_v26  ;;  %v4945_v12 = vadd.f32 %v915_v16, %v907_v24  ;;  %v4947_v53 = vadd.f32 %v916_v6, %v908_v48  ;;  %v7117_v9 = vld [vmem:[#allocation82_spill] sm:$0xff] }
 0x1bb   : >> { %v4949_v55 = vadd.f32 %v917_v31, %v909_v13  ;;  %v4951_v7 = vadd.f32 %v918_v35, %v910_v40  ;;  %v4953_v58 = vadd.f32 %v919_v36, %v911_v45  ;;  %v4955_v37 = vadd.f32 %v920_v0, %v912_v43  ;;  %v7118_v48 = vld [vmem:[#allocation94_spill] sm:$0xff] }
 0x1bc   : >> { %v943_v39 = vmul.f32 0.0001984127, %v4655_v61  ;;  %v953_v5 = vmul.f32 2.4801588e-05, %v4796_v23  ;;  %v954_v52 = vmul.f32 2.4801588e-05, %v4798_v34  ;;  %v4965_v8 = vadd.f32 %v7110_v22, %v4655_v61 }
 0x1bd   : >> { %v955_v10 = vmul.f32 2.4801588e-05, %v4800_v33  ;;  %v956_v41 = vmul.f32 2.4801588e-05, %v4802_v60  ;;  %v957_v63 = vmul.f32 2.4801588e-05, %v4804_v11  ;;  %v4983_v17 = vrot.slane %v4941_v44, %v7119_v49 }
 0x1be   : >> { %v951_v30 = vadd.f32 %v943_v39, %v7111_v32  ;;  %v958_v38 = vmul.f32 2.4801588e-05, %v4806_v42  ;;  %v959_v21 = vmul.f32 2.4801588e-05, %v4835_v14  ;;  %v960_v46 = vmul.f32 2.4801588e-05, %v4810_v57 }
 0x1bf   : >> { %v961_v47 = vadd.f32 %v953_v5, %v7112_v56  ;;  %v962_v54 = vadd.f32 %v954_v52, %v7113_v50  ;;  %v963_v25 = vadd.f32 %v955_v10, %v7114_v59  ;;  %v964_v20 = vadd.f32 %v956_v41, %v7115_v27  ;;  %v7120_v32 = vld [vmem:[#allocation34_spill] sm:$0xff]  ;;  %v7121_v56 = vld [vmem:[#allocation55_spill] sm:$0xff]  ;;  %v7124_v27 = vld [vmem:[#allocation64_spill] sm:$0xff] }
 0x1c0   : >> { %v965_v28 = vadd.f32 %v957_v63, %v7116_v15  ;;  %v966_v26 = vadd.f32 %v958_v38, %v7117_v9  ;;  %v967_v24 = vadd.f32 %v959_v21, %v951_v30  ;;  %v968_v13 = vadd.f32 %v960_v46, %v7118_v48  ;;  %v7122_v50 = vld [vmem:[#allocation42_spill] sm:$0xff]  ;;  %v7123_v59 = vld [vmem:[#allocation71_spill] sm:$0xff] }
 0x1c1   : >> { %v969_v40 = vmul.f32 2.7557319e-06, %v4941_v44  ;;  %v970_v45 = vmul.f32 2.7557319e-06, %v4943_v19  ;;  %v971_v43 = vmul.f32 2.7557319e-06, %v4945_v12  ;;  %v4990_v16 = vrot.slane %v4943_v19, %v7119_v49 }
 0x1c2   : >> { %v972_v4 = vmul.f32 2.7557319e-06, %v4947_v53  ;;  %v973_v18 = vmul.f32 2.7557319e-06, %v4949_v55  ;;  %v974_v3 = vmul.f32 2.7557319e-06, %v4951_v7  ;;  %v5015_v22 = vrot.slane %v4945_v12, %v7119_v49 }
 0x1c3   : >> { %v975_v62 = vmul.f32 2.7557319e-06, %v4953_v58  ;;  %v976_v6 = vmul.f32 2.7557319e-06, %v4955_v37  ;;  %v977_v2 = vadd.f32 %v969_v40, %v961_v47  ;;  %v4994_v31 = vadd.f32 %v970_v45, %v962_v54  ;;  %v7125_v15 = vld [vmem:[#allocation90_spill] sm:$0xff]  ;;  %v7126_v9 = vld [vmem:[#allocation83_spill] sm:$0xff] }
 0x1c4   : >> { %v4996_v29 = vadd.f32 %v971_v43, %v963_v25  ;;  %v4998_v35 = vadd.f32 %v972_v4, %v964_v20  ;;  %v5000_v36 = vadd.f32 %v973_v18, %v965_v28  ;;  %v5002_v1 = vadd.f32 %v974_v3, %v966_v26  ;;  %v7127_v48 = vld [vmem:[#allocation95_spill] sm:$0xff] }
 0x1c5   : >> { %v5004_v0 = vadd.f32 %v975_v62, %v967_v24  ;;  %v5006_v39 = vadd.f32 %v976_v6, %v968_v13  ;;  %v999_v5 = vmul.f32 0.041666668, %v4655_v61  ;;  %v1009_v52 = vmul.f32 0.008333334, %v4796_v23 }
 0x1c6   : >> { %v1010_v10 = vmul.f32 0.008333334, %v4798_v34  ;;  %v1011_v41 = vmul.f32 0.008333334, %v4800_v33  ;;  %v1012_v63 = vmul.f32 0.008333334, %v4802_v60 }
 0x1c7   : >> { %v1007_v30 = vadd.f32 %v999_v5, %v7120_v32  ;;  %v1013_v38 = vmul.f32 0.008333334, %v4804_v11  ;;  %v1014_v21 = vmul.f32 0.008333334, %v4806_v42  ;;  %v1015_v61 = vmul.f32 0.008333334, %v4835_v14 }
 0x1c8   : >> { %v1016_v46 = vmul.f32 0.008333334, %v4810_v57  ;;  %v5023_v47 = vadd.f32 %v1009_v52, %v7121_v56  ;;  %v5026_v54 = vadd.f32 %v1010_v10, %v7122_v50  ;;  %v5029_v25 = vadd.f32 %v1011_v41, %v7123_v59  ;;  %v7128_v5 = vld [vmem:[#allocation49_spill] sm:$0xff]  ;;  %v7130_v10 = vld [vmem:[#allocation40_spill] sm:$0xff] }
 0x1c9   : >> { %v5032_v20 = vadd.f32 %v1012_v63, %v7124_v27  ;;  %v5035_v28 = vadd.f32 %v1013_v38, %v7125_v15  ;;  %v5038_v26 = vadd.f32 %v1014_v21, %v7126_v9  ;;  %v5040_v24 = vadd.f32 %v1015_v61, %v1007_v30 }
 0x1ca   : >> { %v5043_v13 = vadd.f32 %v1016_v46, %v7127_v48  ;;  %v1033_v40 = vmul.f32 0.5, %v4796_v23  ;;  %v1034_v45 = vmul.f32 0.5, %v4798_v34  ;;  %v1035_v43 = vmul.f32 0.5, %v4800_v33  ;;  %v7132_v23 = vld [vmem:[#allocation69_spill] sm:$0xff]  ;;  %v7134_v33 = vld [vmem:[#allocation59_spill] sm:$0xff] }
 0x1cb   : >> { %v1036_v4 = vmul.f32 0.5, %v4802_v60  ;;  %v1037_v18 = vmul.f32 0.5, %v4804_v11  ;;  %v1038_v3 = vmul.f32 0.5, %v4806_v42  ;;  %v1039_v62 = vmul.f32 0.5, %v4835_v14  ;;  %v7136_v60 = vld [vmem:[#allocation88_spill] sm:$0xff]  ;;  %v7138_v42 = vld [vmem:[#allocation79_spill] sm:$0xff] }
 0x1cc   : >> { %v1040_v6 = vmul.f32 0.5, %v4810_v57  ;;  %v5054_v52 = vadd.f32 %v1033_v40, %v7128_v5  ;;  %v5057_v41 = vadd.f32 %v1034_v45, %v7130_v10  ;;  %v5060_v34 = vadd.f32 %v1035_v43, %v7132_v23  ;;  %v7141_v14 = vld [vmem:[#allocation93_spill] sm:$0xff] }
 0x1cd   : >> { %v5063_v63 = vadd.f32 %v1036_v4, %v7134_v33  ;;  %v5066_v11 = vadd.f32 %v1037_v18, %v7136_v60  ;;  %v5069_v32 = vadd.f32 %v1038_v3, %v7138_v42  ;;  %v5072_v57 = vadd.f32 %v1039_v62, %v4965_v8  ;;  %v7143_v45 = vld [vmem:[#allocation25_spill] sm:$0xff] }
 0x1ce   : >> { %7129 = vst [vmem:[#allocation60_spill] sm:$0xff] %v5054_v52  ;;  %7131 = vst [vmem:[#allocation50_spill] sm:$0xff] %v5057_v41  ;;  %v5075_v30 = vadd.f32 %v1040_v6, %v7141_v14  ;;  %v5079_v38 = vrot.slane %v4947_v53, %v7119_v49  ;;  %v5083_v21 = vrot.slane %v4949_v55, %v7119_v49 }
 0x1cf   : >> { %7133 = vst [vmem:[#allocation72_spill] sm:$0xff] %v5060_v34  ;;  %7135 = vst [vmem:[#allocation43_spill] sm:$0xff] %v5063_v63  ;;  %v5087_v61 = vrot.slane %v4951_v7, %v7119_v49  ;;  %v5091_v46 = vrot.slane %v4953_v58, %v7119_v49  ;;  %v5095_v8 = vrot.slane %v4955_v37, %v7119_v49 }
 0x1d0   : >> { %7137 = vst [vmem:[#allocation32_spill] sm:$0xff] %v5066_v11  ;;  %7139 = vst [vmem:[#allocation61_spill] sm:$0xff] %v5069_v32  ;;  %v1081_v56 = vmul.f32 %v4983_v17, %v977_v2  ;;  %v1082_v50 = vmul.f32 %v4990_v16, %v977_v2  ;;  %v1083_v59 = vmul.f32 %v5015_v22, %v977_v2 }
 0x1d1   : >> { %7140 = vst [vmem:[#allocation51_spill] sm:$0xff] %v5072_v57  ;;  %7142 = vst [vmem:[#allocation80_spill] sm:$0xff] %v5075_v30  ;;  %v1084_v27 = vmul.f32 %v5079_v38, %v977_v2  ;;  %v1085_v15 = vmul.f32 %v5083_v21, %v977_v2  ;;  %v1086_v9 = vmul.f32 %v5087_v61, %v977_v2 }
 0x1d2   : >> { %v1087_v48 = vmul.f32 %v5091_v46, %v977_v2  ;;  %v1088_v40 = vmul.f32 %v5095_v8, %v977_v2  ;;  %v5107_v43 = vrot.slane %v4941_v44, %v7143_v45  ;;  %v5111_v4 = vrot.slane %v4943_v19, %v7143_v45 }
 0x1d3   : >> { %v5115_v18 = vrot.slane %v4945_v12, %v7143_v45  ;;  %v5119_v3 = vrot.slane %v4947_v53, %v7143_v45  ;;  %v5123_v62 = vrot.slane %v4949_v55, %v7143_v45  ;;  %v5127_v2 = vrot.slane %v4951_v7, %v7143_v45 }
 0x1d4   : >> { %v5131_v6 = vrot.slane %v4953_v58, %v7143_v45  ;;  %v5135_v5 = vrot.slane %v4955_v37, %v7143_v45  ;;  %v1121_v10 = vmul.f32 %v5107_v43, %v4994_v31  ;;  %v1122_v23 = vmul.f32 %v5111_v4, %v4994_v31 }
 0x1d5   : >> { %7144 = vst [vmem:[#allocation73_spill] sm:$0xff] %v5119_v3  ;;  %7145 = vst [vmem:[#allocation44_spill] sm:$0xff] %v5123_v62  ;;  %v1123_v33 = vmul.f32 %v5115_v18, %v4994_v31  ;;  %v1124_v60 = vmul.f32 %v5119_v3, %v4994_v31  ;;  %v1125_v42 = vmul.f32 %v5123_v62, %v4994_v31  ;;  %v7148_v3 = vld [vmem:[#allocation26_spill] sm:$0xff] }
 0x1d6   : >> { %7146 = vst [vmem:[#allocation35_spill] sm:$0xff] %v5127_v2  ;;  %7147 = vst [vmem:[#allocation63_spill] sm:$0xff] %v5131_v6  ;;  %v1126_v14 = vmul.f32 %v5127_v2, %v4994_v31  ;;  %v1127_v45 = vmul.f32 %v5131_v6, %v4994_v31  ;;  %v1128_v49 = vmul.f32 %v5135_v5, %v4994_v31 }
 0x1d7   : >> { %v1129_v30 = vadd.f32 %v1121_v10, %v1081_v56  ;;  %v1130_v57 = vadd.f32 %v1122_v23, %v1082_v50  ;;  %v1131_v32 = vadd.f32 %v1123_v33, %v1083_v59  ;;  %v1132_v11 = vadd.f32 %v1124_v60, %v1084_v27 }
 0x1d8   : >> { %v1133_v63 = vadd.f32 %v1125_v42, %v1085_v15  ;;  %v1134_v34 = vadd.f32 %v1126_v14, %v1086_v9  ;;  %v1135_v41 = vadd.f32 %v1127_v45, %v1087_v48  ;;  %v1136_v52 = vadd.f32 %v1128_v49, %v1088_v40 }
 0x1d9   : >> { %v5155_v62 = vrot.slane %v4941_v44, %v7148_v3  ;;  %v5159_v2 = vrot.slane %v4943_v19, %v7148_v3  ;;  %v5163_v6 = vrot.slane %v4945_v12, %v7148_v3  ;;  %v5167_v31 = vrot.slane %v4947_v53, %v7148_v3 }
 0x1da   : >> { %v5171_v56 = vrot.slane %v4949_v55, %v7148_v3  ;;  %v5175_v49 = vrot.slane %v4951_v7, %v7148_v3  ;;  %v5179_v50 = vrot.slane %v4953_v58, %v7148_v3  ;;  %v5183_v59 = vrot.slane %v4955_v37, %v7148_v3 }
 0x1db   : >> { %7149 = vst [vmem:[#allocation52_spill] sm:$0xff] %v5155_v62  ;;  %7150 = vst [vmem:[#allocation81_spill] sm:$0xff] %v5159_v2  ;;  %v1169_v27 = vmul.f32 %v5155_v62, %v4996_v29  ;;  %v1170_v15 = vmul.f32 %v5159_v2, %v4996_v29  ;;  %v1171_v9 = vmul.f32 %v5163_v6, %v4996_v29  ;;  %v7156_v62 = vld [vmem:[#allocation27_spill] sm:$0xff] }
 0x1dc   : >> { %7151 = vst [vmem:[#allocation74_spill] sm:$0xff] %v5163_v6  ;;  %7152 = vst [vmem:[#allocation45_spill] sm:$0xff] %v5167_v31  ;;  %v1172_v48 = vmul.f32 %v5167_v31, %v4996_v29  ;;  %v1173_v40 = vmul.f32 %v5171_v56, %v4996_v29  ;;  %v1174_v45 = vmul.f32 %v5175_v49, %v4996_v29 }
 0x1dd   : >> { %7153 = vst [vmem:[#allocation36_spill] sm:$0xff] %v5171_v56  ;;  %7154 = vst [vmem:[#allocation65_spill] sm:$0xff] %v5175_v49  ;;  %v1175_v10 = vmul.f32 %v5179_v50, %v4996_v29  ;;  %v1176_v23 = vmul.f32 %v5183_v59, %v4996_v29  ;;  %v1177_v33 = vadd.f32 %v1169_v27, %v1129_v30 }
 0x1de   : >> { %7155 = vst [vmem:[#allocation53_spill] sm:$0xff] %v5179_v50  ;;  %v1178_v60 = vadd.f32 %v1170_v15, %v1130_v57  ;;  %v1179_v42 = vadd.f32 %v1171_v9, %v1131_v32  ;;  %v1180_v14 = vadd.f32 %v1172_v48, %v1132_v11  ;;  %v1181_v3 = vadd.f32 %v1173_v40, %v1133_v63 }
 0x1df   : >> { %v1182_v6 = vadd.f32 %v1174_v45, %v1134_v34  ;;  %v1183_v2 = vadd.f32 %v1175_v10, %v1135_v41  ;;  %v1184_v31 = vadd.f32 %v1176_v23, %v1136_v52  ;;  %v5203_v56 = vrot.slane %v4941_v44, %v7156_v62 }
 0x1e0   : >> { %v5207_v49 = vrot.slane %v4943_v19, %v7156_v62  ;;  %v5211_v50 = vrot.slane %v4945_v12, %v7156_v62  ;;  %v5215_v29 = vrot.slane %v4947_v53, %v7156_v62  ;;  %v5219_v41 = vrot.slane %v4949_v55, %v7156_v62 }
 0x1e1   : >> { %7157 = vst [vmem:[#allocation84_spill] sm:$0xff] %v5203_v56  ;;  %v5223_v52 = vrot.slane %v4951_v7, %v7156_v62  ;;  %v5227_v34 = vrot.slane %v4953_v58, %v7156_v62  ;;  %v5231_v63 = vrot.slane %v4955_v37, %v7156_v62  ;;  %v1217_v11 = vmul.f32 %v5203_v56, %v4998_v35  ;;  %v7164_v56 = vld [vmem:[#allocation28_spill] sm:$0xff] }
 0x1e2   : >> { %7158 = vst [vmem:[#allocation75_spill] sm:$0xff] %v5207_v49  ;;  %7159 = vst [vmem:[#allocation46_spill] sm:$0xff] %v5211_v50  ;;  %v1218_v32 = vmul.f32 %v5207_v49, %v4998_v35  ;;  %v1219_v57 = vmul.f32 %v5211_v50, %v4998_v35  ;;  %v1220_v30 = vmul.f32 %v5215_v29, %v4998_v35 }
 0x1e3   : >> { %7160 = vst [vmem:[#allocation37_spill] sm:$0xff] %v5215_v29  ;;  %7161 = vst [vmem:[#allocation66_spill] sm:$0xff] %v5219_v41  ;;  %v1221_v27 = vmul.f32 %v5219_v41, %v4998_v35  ;;  %v1222_v15 = vmul.f32 %v5223_v52, %v4998_v35  ;;  %v1223_v9 = vmul.f32 %v5227_v34, %v4998_v35 }
 0x1e4   : >> { %7162 = vst [vmem:[#allocation56_spill] sm:$0xff] %v5223_v52  ;;  %7163 = vst [vmem:[#allocation85_spill] sm:$0xff] %v5227_v34  ;;  %v1224_v48 = vmul.f32 %v5231_v63, %v4998_v35  ;;  %v1225_v40 = vadd.f32 %v1217_v11, %v1177_v33  ;;  %v1226_v45 = vadd.f32 %v1218_v32, %v1178_v60 }
 0x1e5   : >> { %v1227_v10 = vadd.f32 %v1219_v57, %v1179_v42  ;;  %v1228_v23 = vadd.f32 %v1220_v30, %v1180_v14  ;;  %v1229_v62 = vadd.f32 %v1221_v27, %v1181_v3  ;;  %v1230_v50 = vadd.f32 %v1222_v15, %v1182_v6 }
 0x1e6   : >> { %v1231_v49 = vadd.f32 %v1223_v9, %v1183_v2  ;;  %v1232_v29 = vadd.f32 %v1224_v48, %v1184_v31  ;;  %v5251_v41 = vrot.slane %v4941_v44, %v7164_v56  ;;  %v5255_v52 = vrot.slane %v4943_v19, %v7164_v56 }
 0x1e7   : >> { %v5259_v34 = vrot.slane %v4945_v12, %v7164_v56  ;;  %v5263_v35 = vrot.slane %v4947_v53, %v7164_v56  ;;  %v5267_v3 = vrot.slane %v4949_v55, %v7164_v56  ;;  %v5271_v2 = vrot.slane %v4951_v7, %v7164_v56 }
 0x1e8   : >> { %7165 = vst [vmem:[#allocation76_spill] sm:$0xff] %v5251_v41  ;;  %7166 = vst [vmem:[#allocation91_spill] sm:$0xff] %v5255_v52  ;;  %v5275_v6 = vrot.slane %v4953_v58, %v7164_v56  ;;  %v5279_v31 = vrot.slane %v4955_v37, %v7164_v56  ;;  %v1265_v33 = vmul.f32 %v5251_v41, %v5000_v36  ;;  %v7172_v41 = vld [vmem:[#allocation29_spill] sm:$0xff] }
 0x1e9   : >> { %7167 = vst [vmem:[#allocation47_spill] sm:$0xff] %v5259_v34  ;;  %7168 = vst [vmem:[#allocation38_spill] sm:$0xff] %v5263_v35  ;;  %v1266_v60 = vmul.f32 %v5255_v52, %v5000_v36  ;;  %v1267_v42 = vmul.f32 %v5259_v34, %v5000_v36  ;;  %v1268_v14 = vmul.f32 %v5263_v35, %v5000_v36 }
 0x1ea   : >> { %7169 = vst [vmem:[#allocation67_spill] sm:$0xff] %v5267_v3  ;;  %7170 = vst [vmem:[#allocation57_spill] sm:$0xff] %v5271_v2  ;;  %v1269_v11 = vmul.f32 %v5267_v3, %v5000_v36  ;;  %v1270_v32 = vmul.f32 %v5271_v2, %v5000_v36  ;;  %v1271_v57 = vmul.f32 %v5275_v6, %v5000_v36 }
 0x1eb   : >> { %7171 = vst [vmem:[#allocation86_spill] sm:$0xff] %v5275_v6  ;;  %v1272_v30 = vmul.f32 %v5279_v31, %v5000_v36  ;;  %v1273_v27 = vadd.f32 %v1265_v33, %v1225_v40  ;;  %v1274_v15 = vadd.f32 %v1266_v60, %v1226_v45  ;;  %v1275_v9 = vadd.f32 %v1267_v42, %v1227_v10 }
 0x1ec   : >> { %v1276_v48 = vadd.f32 %v1268_v14, %v1228_v23  ;;  %v1277_v56 = vadd.f32 %v1269_v11, %v1229_v62  ;;  %v1278_v34 = vadd.f32 %v1270_v32, %v1230_v50  ;;  %v1279_v52 = vadd.f32 %v1271_v57, %v1231_v49 }
 0x1ed   : >> { %v1280_v35 = vadd.f32 %v1272_v30, %v1232_v29  ;;  %v5299_v3 = vrot.slane %v4941_v44, %v7172_v41  ;;  %v5303_v2 = vrot.slane %v4943_v19, %v7172_v41  ;;  %v5307_v6 = vrot.slane %v4945_v12, %v7172_v41 }
 0x1ee   : >> { %v5311_v36 = vrot.slane %v4947_v53, %v7172_v41  ;;  %v5315_v62 = vrot.slane %v4949_v55, %v7172_v41  ;;  %v5319_v49 = vrot.slane %v4951_v7, %v7172_v41  ;;  %v5323_v50 = vrot.slane %v4953_v58, %v7172_v41 }
 0x1ef   : >> { %7173 = vst [vmem:[#allocation77_spill] sm:$0xff] %v5299_v3  ;;  %7174 = vst [vmem:[#allocation48_spill] sm:$0xff] %v5303_v2  ;;  %v5327_v29 = vrot.slane %v4955_v37, %v7172_v41  ;;  %v1313_v40 = vmul.f32 %v5299_v3, %v5002_v1  ;;  %v1314_v45 = vmul.f32 %v5303_v2, %v5002_v1  ;;  %v7180_v3 = vld [vmem:[#allocation30_spill] sm:$0xff] }
 0x1f0   : >> { %7175 = vst [vmem:[#allocation39_spill] sm:$0xff] %v5307_v6  ;;  %7176 = vst [vmem:[#allocation68_spill] sm:$0xff] %v5311_v36  ;;  %v1315_v10 = vmul.f32 %v5307_v6, %v5002_v1  ;;  %v1316_v23 = vmul.f32 %v5311_v36, %v5002_v1  ;;  %v1317_v33 = vmul.f32 %v5315_v62, %v5002_v1 }
 0x1f1   : >> { %7177 = vst [vmem:[#allocation58_spill] sm:$0xff] %v5315_v62  ;;  %7178 = vst [vmem:[#allocation87_spill] sm:$0xff] %v5319_v49  ;;  %v1318_v60 = vmul.f32 %v5319_v49, %v5002_v1  ;;  %v1319_v42 = vmul.f32 %v5323_v50, %v5002_v1  ;;  %v1320_v14 = vmul.f32 %v5327_v29, %v5002_v1 }
 0x1f2   : >> { %7179 = vst [vmem:[#allocation78_spill] sm:$0xff] %v5323_v50  ;;  %v1321_v11 = vadd.f32 %v1313_v40, %v1273_v27  ;;  %v1322_v32 = vadd.f32 %v1314_v45, %v1274_v15  ;;  %v1323_v57 = vadd.f32 %v1315_v10, %v1275_v9  ;;  %v1324_v30 = vadd.f32 %v1316_v23, %v1276_v48 }
 0x1f3   : >> { %v1325_v41 = vadd.f32 %v1317_v33, %v1277_v56  ;;  %v1326_v6 = vadd.f32 %v1318_v60, %v1278_v34  ;;  %v1327_v2 = vadd.f32 %v1319_v42, %v1279_v52  ;;  %v1328_v36 = vadd.f32 %v1320_v14, %v1280_v35 }
 0x1f4   : >> { %v5347_v62 = vrot.slane %v4941_v44, %v7180_v3  ;;  %v5351_v49 = vrot.slane %v4943_v19, %v7180_v3  ;;  %v5355_v50 = vrot.slane %v4945_v12, %v7180_v3  ;;  %v5359_v1 = vrot.slane %v4947_v53, %v7180_v3 }
 0x1f5   : >> { %v5363_v56 = vrot.slane %v4949_v55, %v7180_v3  ;;  %v5367_v52 = vrot.slane %v4951_v7, %v7180_v3  ;;  %v5371_v34 = vrot.slane %v4953_v58, %v7180_v3  ;;  %v5375_v35 = vrot.slane %v4955_v37, %v7180_v3 }
 0x1f6   : >> { %7181 = vst [vmem:[#allocation92_spill] sm:$0xff] %v5351_v49  ;;  %7182 = vst [vmem:[#allocation33_spill] sm:$0xff] %v5355_v50  ;;  %v1361_v27 = vmul.f32 %v5347_v62, %v5004_v0  ;;  %v1362_v15 = vmul.f32 %v5351_v49, %v5004_v0  ;;  %v1363_v9 = vmul.f32 %v5355_v50, %v5004_v0 }
 0x1f7   : >> { %7183 = vst [vmem:[#allocation54_spill] sm:$0xff] %v5359_v1  ;;  %7184 = vst [vmem:[#allocation41_spill] sm:$0xff] %v5363_v56  ;;  %v1364_v48 = vmul.f32 %v5359_v1, %v5004_v0  ;;  %v1365_v40 = vmul.f32 %v5363_v56, %v5004_v0  ;;  %v1366_v45 = vmul.f32 %v5367_v52, %v5004_v0 }
 0x1f8   : >> { %7185 = vst [vmem:[#allocation70_spill] sm:$0xff] %v5367_v52  ;;  %7186 = vst [vmem:[#allocation62_spill] sm:$0xff] %v5371_v34  ;;  %v1367_v10 = vmul.f32 %v5371_v34, %v5004_v0  ;;  %v1368_v23 = vmul.f32 %v5375_v35, %v5004_v0  ;;  %v1369_v33 = vadd.f32 %v1361_v27, %v1321_v11 }
 0x1f9   : >> { %v1370_v60 = vadd.f32 %v1362_v15, %v1322_v32  ;;  %v1371_v42 = vadd.f32 %v1363_v9, %v1323_v57  ;;  %v1372_v14 = vadd.f32 %v1364_v48, %v1324_v30  ;;  %v1373_v3 = vadd.f32 %v1365_v40, %v1325_v41 }
 0x1fa   : >> { %v1374_v50 = vadd.f32 %v1366_v45, %v1326_v6  ;;  %v1375_v49 = vadd.f32 %v1367_v10, %v1327_v2  ;;  %v1376_v1 = vadd.f32 %v1368_v23, %v1328_v36  ;;  %v5395_v56 = vrot.slane %v4941_v44, %v4282_v51 }
 0x1fb   : >> { %v5399_v52 = vrot.slane %v4943_v19, %v4282_v51  ;;  %v5403_v34 = vrot.slane %v4945_v12, %v4282_v51  ;;  %v5407_v0 = vrot.slane %v4947_v53, %v4282_v51  ;;  %v5411_v41 = vrot.slane %v4949_v55, %v4282_v51 }
 0x1fc   : >> { %v5415_v44 = vrot.slane %v4951_v7, %v4282_v51  ;;  %v5419_v19 = vrot.slane %v4953_v58, %v4282_v51  ;;  %v5423_v12 = vrot.slane %v4955_v37, %v4282_v51  ;;  %v1409_v53 = vmul.f32 %v5395_v56, %v5006_v39 }
 0x1fd   : >> { %v1410_v2 = vmul.f32 %v5399_v52, %v5006_v39  ;;  %v1411_v55 = vmul.f32 %v5403_v34, %v5006_v39  ;;  %v1412_v7 = vmul.f32 %v5407_v0, %v5006_v39  ;;  %v1413_v58 = vmul.f32 %v5411_v41, %v5006_v39 }
 0x1fe   : >> { %v1414_v6 = vmul.f32 %v5415_v44, %v5006_v39  ;;  %v1415_v37 = vmul.f32 %v5419_v19, %v5006_v39  ;;  %v1416_v36 = vmul.f32 %v5423_v12, %v5006_v39  ;;  %v1417_v11 = vadd.f32 %v1409_v53, %v1369_v33 }
 0x1ff   : >> { %v1418_v32 = vadd.f32 %v1410_v2, %v1370_v60  ;;  %v1419_v57 = vadd.f32 %v1411_v55, %v1371_v42  ;;  %v1420_v30 = vadd.f32 %v1412_v7, %v1372_v14  ;;  %v1421_v27 = vadd.f32 %v1413_v58, %v1373_v3  ;;  %v7188_v60 = vld [vmem:[#allocation44_spill] sm:$0xff]  ;;  %v7189_v42 = vld [vmem:[#allocation35_spill] sm:$0xff] }
 0x200   : >> { %v1422_v15 = vadd.f32 %v1414_v6, %v1374_v50  ;;  %v1423_v9 = vadd.f32 %v1415_v37, %v1375_v49  ;;  %v1424_v48 = vadd.f32 %v1416_v36, %v1376_v1  ;;  %v1425_v40 = vadd.f32 %v1417_v11, %v5023_v47  ;;  %v7187_v1 = vld [vmem:[#allocation73_spill] sm:$0xff]  ;;  %v7190_v14 = vld [vmem:[#allocation63_spill] sm:$0xff]  ;;  %v7191_v58 = vld [vmem:[#allocation52_spill] sm:$0xff] }
 0x201   : >> { %v1426_v45 = vadd.f32 %v1418_v32, %v5026_v54  ;;  %v1427_v10 = vadd.f32 %v1419_v57, %v5029_v25  ;;  %v1428_v23 = vadd.f32 %v1420_v30, %v5032_v20  ;;  %v5446_v51 = vadd.f32 %v1421_v27, %v5035_v28  ;;  %v7192_v6 = vld [vmem:[#allocation81_spill] sm:$0xff]  ;;  %v7193_v36 = vld [vmem:[#allocation74_spill] sm:$0xff]  ;;  %v7195_v30 = vld [vmem:[#allocation36_spill] sm:$0xff] }
 0x202   : >> { %v5449_v39 = vadd.f32 %v1422_v15, %v5038_v26  ;;  %v5452_v33 = vadd.f32 %v1423_v9, %v5040_v24  ;;  %v5455_v3 = vadd.f32 %v1424_v48, %v5043_v13  ;;  %v1433_v47 = vmul.f32 %v1425_v40, %v4983_v17  ;;  %v7194_v32 = vld [vmem:[#allocation45_spill] sm:$0xff] }
 0x203   : >> { %v1434_v54 = vmul.f32 %v1425_v40, %v4990_v16  ;;  %v1435_v25 = vmul.f32 %v1425_v40, %v5015_v22  ;;  %v1436_v20 = vmul.f32 %v1425_v40, %v5079_v38  ;;  %v1437_v28 = vmul.f32 %v1425_v40, %v5083_v21  ;;  %v7196_v15 = vld [vmem:[#allocation65_spill] sm:$0xff] }
 0x204   : >> { %v1438_v49 = vmul.f32 %v1425_v40, %v5087_v61  ;;  %v1439_v26 = vmul.f32 %v1425_v40, %v5091_v46  ;;  %v1440_v24 = vmul.f32 %v1425_v40, %v5095_v8  ;;  %v1441_v50 = vmul.f32 %v1426_v45, %v5107_v43  ;;  %v7197_v9 = vld [vmem:[#allocation53_spill] sm:$0xff] }
 0x205   : >> { %v1442_v13 = vmul.f32 %v1426_v45, %v5111_v4  ;;  %v1443_v17 = vmul.f32 %v1426_v45, %v5115_v18  ;;  %v1444_v16 = vmul.f32 %v1426_v45, %v7187_v1  ;;  %v1445_v22 = vmul.f32 %v1426_v45, %v7188_v60  ;;  %v7200_v1 = vld [vmem:[#allocation46_spill] sm:$0xff]  ;;  %v7201_v60 = vld [vmem:[#allocation37_spill] sm:$0xff] }
 0x206   : >> { %v1446_v38 = vmul.f32 %v1426_v45, %v7189_v42  ;;  %v1447_v21 = vmul.f32 %v1426_v45, %v7190_v14  ;;  %v1448_v61 = vmul.f32 %v1426_v45, %v5135_v5  ;;  %v1449_v53 = vadd.f32 %v1441_v50, %v1433_v47  ;;  %v7202_v42 = vld [vmem:[#allocation66_spill] sm:$0xff]  ;;  %v7203_v14 = vld [vmem:[#allocation56_spill] sm:$0xff] }
 0x207   : >> { %v1450_v46 = vadd.f32 %v1442_v13, %v1434_v54  ;;  %v1451_v2 = vadd.f32 %v1443_v17, %v1435_v25  ;;  %v1452_v8 = vadd.f32 %v1444_v16, %v1436_v20  ;;  %v1453_v55 = vadd.f32 %v1445_v22, %v1437_v28  ;;  %v7199_v13 = vld [vmem:[#allocation75_spill] sm:$0xff] }
 0x208   : >> { %v1454_v43 = vadd.f32 %v1446_v38, %v1438_v49  ;;  %v1455_v7 = vadd.f32 %v1447_v21, %v1439_v26  ;;  %v1456_v4 = vadd.f32 %v1448_v61, %v1440_v24  ;;  %v1457_v18 = vmul.f32 %v1427_v10, %v7191_v58  ;;  %v7198_v24 = vld [vmem:[#allocation84_spill] sm:$0xff] }
 0x209   : >> { %v1458_v37 = vmul.f32 %v1427_v10, %v7192_v6  ;;  %v1459_v11 = vmul.f32 %v1427_v10, %v7193_v36  ;;  %v1460_v57 = vmul.f32 %v1427_v10, %v7194_v32  ;;  %v1461_v27 = vmul.f32 %v1427_v10, %v7195_v30  ;;  %v7205_v58 = vld [vmem:[#allocation76_spill] sm:$0xff]  ;;  %v7206_v6 = vld [vmem:[#allocation91_spill] sm:$0xff]  ;;  %v7208_v32 = vld [vmem:[#allocation38_spill] sm:$0xff] }
 0x20a   : >> { %v1462_v5 = vmul.f32 %v1427_v10, %v7196_v15  ;;  %v1463_v48 = vmul.f32 %v1427_v10, %v7197_v9  ;;  %v1464_v40 = vmul.f32 %v1427_v10, %v5183_v59  ;;  %v1465_v45 = vadd.f32 %v1457_v18, %v1449_v53  ;;  %v7204_v10 = vld [vmem:[#allocation85_spill] sm:$0xff]  ;;  %v7207_v36 = vld [vmem:[#allocation47_spill] sm:$0xff]  ;;  %v7211_v15 = vld [vmem:[#allocation86_spill] sm:$0xff] }
 0x20b   : >> { %v1466_v47 = vadd.f32 %v1458_v37, %v1450_v46  ;;  %v1467_v54 = vadd.f32 %v1459_v11, %v1451_v2  ;;  %v1468_v25 = vadd.f32 %v1460_v57, %v1452_v8  ;;  %v1469_v20 = vadd.f32 %v1461_v27, %v1453_v55  ;;  %v7210_v30 = vld [vmem:[#allocation57_spill] sm:$0xff] }
 0x20c   : >> { %v1470_v28 = vadd.f32 %v1462_v5, %v1454_v43  ;;  %v1471_v49 = vadd.f32 %v1463_v48, %v1455_v7  ;;  %v1472_v26 = vadd.f32 %v1464_v40, %v1456_v4  ;;  %v1473_v50 = vmul.f32 %v1428_v23, %v7198_v24  ;;  %v7213_v24 = vld [vmem:[#allocation48_spill] sm:$0xff] }
 0x20d   : >> { %v1474_v17 = vmul.f32 %v1428_v23, %v7199_v13  ;;  %v1475_v16 = vmul.f32 %v1428_v23, %v7200_v1  ;;  %v1476_v22 = vmul.f32 %v1428_v23, %v7201_v60  ;;  %v1477_v38 = vmul.f32 %v1428_v23, %v7202_v42  ;;  %v7214_v13 = vld [vmem:[#allocation39_spill] sm:$0xff]  ;;  %v7215_v1 = vld [vmem:[#allocation68_spill] sm:$0xff]  ;;  %v7218_v42 = vld [vmem:[#allocation78_spill] sm:$0xff] }
 0x20e   : >> { %v1478_v59 = vmul.f32 %v1428_v23, %v7203_v14  ;;  %v1479_v21 = vmul.f32 %v1428_v23, %v7204_v10  ;;  %v1480_v61 = vmul.f32 %v1428_v23, %v5231_v63  ;;  %v1481_v53 = vadd.f32 %v1473_v50, %v1465_v45  ;;  %v7209_v23 = vld [vmem:[#allocation67_spill] sm:$0xff] }
 0x20f   : >> { %v1482_v46 = vadd.f32 %v1474_v17, %v1466_v47  ;;  %v1483_v2 = vadd.f32 %v1475_v16, %v1467_v54  ;;  %v1484_v8 = vadd.f32 %v1476_v22, %v1468_v25  ;;  %v1485_v55 = vadd.f32 %v1477_v38, %v1469_v20  ;;  %v7217_v60 = vld [vmem:[#allocation87_spill] sm:$0xff] }
 0x210   : >> { %v1486_v43 = vadd.f32 %v1478_v59, %v1470_v28  ;;  %v1487_v7 = vadd.f32 %v1479_v21, %v1471_v49  ;;  %v1488_v4 = vadd.f32 %v1480_v61, %v1472_v26  ;;  %v1489_v18 = vmul.f32 %v5446_v51, %v7205_v58  ;;  %v7212_v49 = vld [vmem:[#allocation77_spill] sm:$0xff] }
 0x211   : >> { %v1490_v37 = vmul.f32 %v5446_v51, %v7206_v6  ;;  %v1491_v11 = vmul.f32 %v5446_v51, %v7207_v36  ;;  %v1492_v63 = vmul.f32 %v5446_v51, %v7208_v32  ;;  %v1493_v57 = vmul.f32 %v5446_v51, %v7209_v23 }
 0x212   : >> { %v1494_v27 = vmul.f32 %v5446_v51, %v7210_v30  ;;  %v1495_v5 = vmul.f32 %v5446_v51, %v7211_v15  ;;  %v1496_v9 = vmul.f32 %v5446_v51, %v5279_v31  ;;  %v1497_v48 = vadd.f32 %v1489_v18, %v1481_v53  ;;  %v7216_v31 = vld [vmem:[#allocation58_spill] sm:$0xff] }
 0x213   : >> { %v1498_v40 = vadd.f32 %v1490_v37, %v1482_v46  ;;  %v1499_v45 = vadd.f32 %v1491_v11, %v1483_v2  ;;  %v1500_v47 = vadd.f32 %v1492_v63, %v1484_v8  ;;  %v1501_v54 = vadd.f32 %v1493_v57, %v1485_v55  ;;  %v7221_v18 = vld [vmem:[#allocation54_spill] sm:$0xff] }
 0x214   : >> { %v1502_v25 = vadd.f32 %v1494_v27, %v1486_v43  ;;  %v1503_v20 = vadd.f32 %v1495_v5, %v1487_v7  ;;  %v1504_v28 = vadd.f32 %v1496_v9, %v1488_v4  ;;  %v1505_v26 = vmul.f32 %v5449_v39, %v7212_v49  ;;  %v7219_v43 = vld [vmem:[#allocation92_spill] sm:$0xff]  ;;  %v7220_v4 = vld [vmem:[#allocation33_spill] sm:$0xff]  ;;  %v7223_v37 = vld [vmem:[#allocation70_spill] sm:$0xff] }
 0x215   : >> { %v1506_v50 = vmul.f32 %v5449_v39, %v7213_v24  ;;  %v1507_v17 = vmul.f32 %v5449_v39, %v7214_v13  ;;  %v1508_v51 = vmul.f32 %v5449_v39, %v7215_v1  ;;  %v1509_v16 = vmul.f32 %v5449_v39, %v7216_v31  ;;  %v7224_v11 = vld [vmem:[#allocation62_spill] sm:$0xff]  ;;  %v7225_v24 = vld [vmem:[#allocation60_spill] sm:$0xff] }
 0x216   : >> { %v1510_v22 = vmul.f32 %v5449_v39, %v7217_v60  ;;  %v1511_v38 = vmul.f32 %v5449_v39, %v7218_v42  ;;  %v1512_v14 = vmul.f32 %v5449_v39, %v5327_v29  ;;  %v1513_v59 = vadd.f32 %v1505_v26, %v1497_v48  ;;  %v7222_v39 = vld [vmem:[#allocation41_spill] sm:$0xff] }
 0x217   : >> { %v1514_v10 = vadd.f32 %v1506_v50, %v1498_v40  ;;  %v1515_v21 = vadd.f32 %v1507_v17, %v1499_v45  ;;  %v1516_v61 = vadd.f32 %v1508_v51, %v1500_v47  ;;  %v1517_v53 = vadd.f32 %v1509_v16, %v1501_v54  ;;  %v7230_v51 = vld [vmem:[#allocation61_spill] sm:$0xff]  ;;  %v7231_v16 = vld [vmem:[#allocation51_spill] sm:$0xff] }
 0x218   : >> { %v1518_v46 = vadd.f32 %v1510_v22, %v1502_v25  ;;  %v1519_v2 = vadd.f32 %v1511_v38, %v1503_v20  ;;  %v1520_v8 = vadd.f32 %v1512_v14, %v1504_v28  ;;  %v1521_v55 = vmul.f32 %v5452_v33, %v5347_v62  ;;  %v7232_v22 = vld [vmem:[#allocation80_spill] sm:$0xff] }
 0x219   : >> { %v1522_v7 = vmul.f32 %v5452_v33, %v7219_v43  ;;  %v1523_v58 = vmul.f32 %v5452_v33, %v7220_v4  ;;  %v1524_v29 = vmul.f32 %v5452_v33, %v7221_v18  ;;  %v1525_v6 = vmul.f32 %v5452_v33, %v7222_v39  ;;  %v7233_v38 = vld [vmem:[#allocation24_spill] sm:$0xff]  ;;  %v7234_v39 = vld [vmem:[#allocation25_spill] sm:$0xff] }
 0x21a   : >> { %v1526_v36 = vmul.f32 %v5452_v33, %v7223_v37  ;;  %v1527_v32 = vmul.f32 %v5452_v33, %v7224_v11  ;;  %v1528_v62 = vmul.f32 %v5452_v33, %v5375_v35  ;;  %v1529_v63 = vadd.f32 %v1521_v55, %v1513_v59 }
 0x21b   : >> { %v1530_v23 = vadd.f32 %v1522_v7, %v1514_v10  ;;  %v1531_v57 = vadd.f32 %v1523_v58, %v1515_v21  ;;  %v1532_v30 = vadd.f32 %v1524_v29, %v1516_v61  ;;  %v1533_v27 = vadd.f32 %v1525_v6, %v1517_v53 }
 0x21c   : >> { %v1534_v15 = vadd.f32 %v1526_v36, %v1518_v46  ;;  %v1535_v5 = vadd.f32 %v1527_v32, %v1519_v2  ;;  %v1536_v9 = vadd.f32 %v1528_v62, %v1520_v8  ;;  %v1537_v48 = vmul.f32 %v5455_v3, %v5395_v56 }
 0x21d   : >> { %v1538_v40 = vmul.f32 %v5455_v3, %v5399_v52  ;;  %v1539_v45 = vmul.f32 %v5455_v3, %v5403_v34  ;;  %v1540_v35 = vmul.f32 %v5455_v3, %v5407_v0  ;;  %v1541_v33 = vmul.f32 %v5455_v3, %v5411_v41  ;;  %v7226_v41 = vld [vmem:[#allocation50_spill] sm:$0xff] }
 0x21e   : >> { %v1542_v47 = vmul.f32 %v5455_v3, %v5415_v44  ;;  %v1543_v54 = vmul.f32 %v5455_v3, %v5419_v19  ;;  %v1544_v56 = vmul.f32 %v5455_v3, %v5423_v12  ;;  %v1545_v25 = vadd.f32 %v1537_v48, %v1529_v63  ;;  %v7227_v44 = vld [vmem:[#allocation72_spill] sm:$0xff]  ;;  %v7228_v19 = vld [vmem:[#allocation43_spill] sm:$0xff] }
 0x21f   : >> { %v1546_v52 = vadd.f32 %v1538_v40, %v1530_v23  ;;  %v1547_v20 = vadd.f32 %v1539_v45, %v1531_v57  ;;  %v1548_v28 = vadd.f32 %v1540_v35, %v1532_v30  ;;  %v1549_v34 = vadd.f32 %v1541_v33, %v1533_v27  ;;  %v7229_v12 = vld [vmem:[#allocation32_spill] sm:$0xff] }
 0x220   : >> { %v1550_v49 = vadd.f32 %v1542_v47, %v1534_v15  ;;  %v1551_v26 = vadd.f32 %v1543_v54, %v1535_v5  ;;  %v1552_v0 = vadd.f32 %v1544_v56, %v1536_v9  ;;  %v5554_v50 = vadd.f32 %v1545_v25, %v7225_v24 }
 0x221   : >> { %v5557_v13 = vadd.f32 %v1546_v52, %v7226_v41  ;;  %v5560_v17 = vadd.f32 %v1547_v20, %v7227_v44  ;;  %v5563_v1 = vadd.f32 %v1548_v28, %v7228_v19  ;;  %v5566_v3 = vadd.f32 %v1549_v34, %v7229_v12  ;;  %v7235_v20 = vld [vmem:[#allocation26_spill] sm:$0xff] }
 0x222   : >> { %v5569_v31 = vadd.f32 %v1550_v49, %v7230_v51  ;;  %v5572_v60 = vadd.f32 %v1551_v26, %v7231_v16  ;;  %v5575_v42 = vadd.f32 %v1552_v0, %v7232_v22  ;;  %v1564_v14 = vrot.slane %v5554_v50, %v7233_v38 }
 0x223   : >> { %v1568_v59 = vrot.slane %v5557_v13, %v7233_v38  ;;  %v1572_v10 = vrot.slane %v5560_v17, %v7233_v38  ;;  %v1576_v21 = vrot.slane %v5563_v1, %v7233_v38  ;;  %v1580_v61 = vrot.slane %v5566_v3, %v7233_v38 }
 0x224   : >> { %v1584_v53 = vrot.slane %v5569_v31, %v7233_v38  ;;  %v1588_v46 = vrot.slane %v5572_v60, %v7233_v38  ;;  %v1592_v2 = vrot.slane %v5575_v42, %v7233_v38  ;;  %v1593_v8 = vmul.f32 %v1564_v14, %v5554_v50 }
 0x225   : >> { %v1594_v55 = vmul.f32 %v1568_v59, %v5554_v50  ;;  %v1595_v43 = vmul.f32 %v1572_v10, %v5554_v50  ;;  %v1596_v7 = vmul.f32 %v1576_v21, %v5554_v50  ;;  %v1597_v4 = vmul.f32 %v1580_v61, %v5554_v50 }
 0x226   : >> { %v1598_v58 = vmul.f32 %v1584_v53, %v5554_v50  ;;  %v1599_v18 = vmul.f32 %v1588_v46, %v5554_v50  ;;  %v1600_v29 = vmul.f32 %v1592_v2, %v5554_v50  ;;  %v1604_v6 = vrot.slane %v5554_v50, %v7234_v39 }
 0x227   : >> { %v1608_v37 = vrot.slane %v5557_v13, %v7234_v39  ;;  %v1612_v36 = vrot.slane %v5560_v17, %v7234_v39  ;;  %v1616_v11 = vrot.slane %v5563_v1, %v7234_v39  ;;  %v1620_v32 = vrot.slane %v5566_v3, %v7234_v39 }
 0x228   : >> { %v1624_v62 = vrot.slane %v5569_v31, %v7234_v39  ;;  %v1628_v63 = vrot.slane %v5572_v60, %v7234_v39  ;;  %v1632_v23 = vrot.slane %v5575_v42, %v7234_v39  ;;  %v1633_v57 = vmul.f32 %v1604_v6, %v5557_v13 }
 0x229   : >> { %v1634_v30 = vmul.f32 %v1608_v37, %v5557_v13  ;;  %v1635_v27 = vmul.f32 %v1612_v36, %v5557_v13  ;;  %v1636_v15 = vmul.f32 %v1616_v11, %v5557_v13  ;;  %v1637_v5 = vmul.f32 %v1620_v32, %v5557_v13 }
 0x22a   : >> { %v1638_v9 = vmul.f32 %v1624_v62, %v5557_v13  ;;  %v1639_v48 = vmul.f32 %v1628_v63, %v5557_v13  ;;  %v1640_v40 = vmul.f32 %v1632_v23, %v5557_v13  ;;  %v1641_v45 = vadd.f32 %v1633_v57, %v1593_v8 }
 0x22b   : >> { %v1642_v35 = vadd.f32 %v1634_v30, %v1594_v55  ;;  %v1643_v33 = vadd.f32 %v1635_v27, %v1595_v43  ;;  %v1644_v47 = vadd.f32 %v1636_v15, %v1596_v7  ;;  %v1645_v54 = vadd.f32 %v1637_v5, %v1597_v4  ;;  %v7236_v7 = vld [vmem:[#allocation27_spill] sm:$0xff] }
 0x22c   : >> { %v1646_v56 = vadd.f32 %v1638_v9, %v1598_v58  ;;  %v1647_v25 = vadd.f32 %v1639_v48, %v1599_v18  ;;  %v1648_v52 = vadd.f32 %v1640_v40, %v1600_v29  ;;  %v1652_v28 = vrot.slane %v5554_v50, %v7235_v20 }
 0x22d   : >> { %v1656_v34 = vrot.slane %v5557_v13, %v7235_v20  ;;  %v1660_v49 = vrot.slane %v5560_v17, %v7235_v20  ;;  %v1664_v26 = vrot.slane %v5563_v1, %v7235_v20  ;;  %v1668_v0 = vrot.slane %v5566_v3, %v7235_v20 }
 0x22e   : >> { %v1672_v24 = vrot.slane %v5569_v31, %v7235_v20  ;;  %v1676_v41 = vrot.slane %v5572_v60, %v7235_v20  ;;  %v1680_v44 = vrot.slane %v5575_v42, %v7235_v20  ;;  %v1681_v19 = vmul.f32 %v1652_v28, %v5560_v17 }
 0x22f   : >> { %v1682_v12 = vmul.f32 %v1656_v34, %v5560_v17  ;;  %v1683_v51 = vmul.f32 %v1660_v49, %v5560_v17  ;;  %v1684_v16 = vmul.f32 %v1664_v26, %v5560_v17  ;;  %v1685_v22 = vmul.f32 %v1668_v0, %v5560_v17 }
 0x230   : >> { %v1686_v14 = vmul.f32 %v1672_v24, %v5560_v17  ;;  %v1687_v59 = vmul.f32 %v1676_v41, %v5560_v17  ;;  %v1688_v10 = vmul.f32 %v1680_v44, %v5560_v17  ;;  %v1689_v21 = vadd.f32 %v1681_v19, %v1641_v45 }
 0x231   : >> { %v1690_v61 = vadd.f32 %v1682_v12, %v1642_v35  ;;  %v1691_v53 = vadd.f32 %v1683_v51, %v1643_v33  ;;  %v1692_v46 = vadd.f32 %v1684_v16, %v1644_v47  ;;  %v1693_v2 = vadd.f32 %v1685_v22, %v1645_v54  ;;  %v7237_v54 = vld [vmem:[#allocation28_spill] sm:$0xff] }
 0x232   : >> { %v1694_v8 = vadd.f32 %v1686_v14, %v1646_v56  ;;  %v1695_v55 = vadd.f32 %v1687_v59, %v1647_v25  ;;  %v1696_v43 = vadd.f32 %v1688_v10, %v1648_v52  ;;  %v1700_v4 = vrot.slane %v5554_v50, %v7236_v7 }
 0x233   : >> { %v1704_v58 = vrot.slane %v5557_v13, %v7236_v7  ;;  %v1708_v18 = vrot.slane %v5560_v17, %v7236_v7  ;;  %v1712_v29 = vrot.slane %v5563_v1, %v7236_v7  ;;  %v1716_v6 = vrot.slane %v5566_v3, %v7236_v7 }
 0x234   : >> { %v1720_v37 = vrot.slane %v5569_v31, %v7236_v7  ;;  %v1724_v36 = vrot.slane %v5572_v60, %v7236_v7  ;;  %v1728_v11 = vrot.slane %v5575_v42, %v7236_v7  ;;  %v1729_v32 = vmul.f32 %v1700_v4, %v5563_v1 }
 0x235   : >> { %v1730_v62 = vmul.f32 %v1704_v58, %v5563_v1  ;;  %v1731_v63 = vmul.f32 %v1708_v18, %v5563_v1  ;;  %v1732_v23 = vmul.f32 %v1712_v29, %v5563_v1  ;;  %v1733_v57 = vmul.f32 %v1716_v6, %v5563_v1 }
 0x236   : >> { %v1734_v30 = vmul.f32 %v1720_v37, %v5563_v1  ;;  %v1735_v27 = vmul.f32 %v1724_v36, %v5563_v1  ;;  %v1736_v15 = vmul.f32 %v1728_v11, %v5563_v1  ;;  %v1737_v5 = vadd.f32 %v1729_v32, %v1689_v21 }
 0x237   : >> { %v1738_v9 = vadd.f32 %v1730_v62, %v1690_v61  ;;  %v1739_v48 = vadd.f32 %v1731_v63, %v1691_v53  ;;  %v1740_v40 = vadd.f32 %v1732_v23, %v1692_v46  ;;  %v1741_v45 = vadd.f32 %v1733_v57, %v1693_v2 }
 0x238   : >> { %v1742_v35 = vadd.f32 %v1734_v30, %v1694_v8  ;;  %v1743_v33 = vadd.f32 %v1735_v27, %v1695_v55  ;;  %v1744_v47 = vadd.f32 %v1736_v15, %v1696_v43  ;;  %v1748_v56 = vrot.slane %v5554_v50, %v7237_v54  ;;  %v7238_v8 = vld [vmem:[#allocation29_spill] sm:$0xff] }
 0x239   : >> { %v1752_v25 = vrot.slane %v5557_v13, %v7237_v54  ;;  %v1756_v52 = vrot.slane %v5560_v17, %v7237_v54  ;;  %v1760_v28 = vrot.slane %v5563_v1, %v7237_v54  ;;  %v1764_v34 = vrot.slane %v5566_v3, %v7237_v54 }
 0x23a   : >> { %v1768_v49 = vrot.slane %v5569_v31, %v7237_v54  ;;  %v1772_v26 = vrot.slane %v5572_v60, %v7237_v54  ;;  %v1776_v0 = vrot.slane %v5575_v42, %v7237_v54  ;;  %v1777_v24 = vmul.f32 %v1748_v56, %v5566_v3 }
 0x23b   : >> { %v1778_v41 = vmul.f32 %v1752_v25, %v5566_v3  ;;  %v1779_v44 = vmul.f32 %v1756_v52, %v5566_v3  ;;  %v1780_v19 = vmul.f32 %v1760_v28, %v5566_v3  ;;  %v1781_v12 = vmul.f32 %v1764_v34, %v5566_v3 }
 0x23c   : >> { %v1782_v51 = vmul.f32 %v1768_v49, %v5566_v3  ;;  %v1783_v16 = vmul.f32 %v1772_v26, %v5566_v3  ;;  %v1784_v22 = vmul.f32 %v1776_v0, %v5566_v3  ;;  %v1785_v14 = vadd.f32 %v1777_v24, %v1737_v5 }
 0x23d   : >> { %v1786_v59 = vadd.f32 %v1778_v41, %v1738_v9  ;;  %v1787_v10 = vadd.f32 %v1779_v44, %v1739_v48  ;;  %v1788_v21 = vadd.f32 %v1780_v19, %v1740_v40  ;;  %v1789_v61 = vadd.f32 %v1781_v12, %v1741_v45 }
 0x23e   : >> { %v1790_v53 = vadd.f32 %v1782_v51, %v1742_v35  ;;  %v1791_v46 = vadd.f32 %v1783_v16, %v1743_v33  ;;  %v1792_v2 = vadd.f32 %v1784_v22, %v1744_v47  ;;  %v1796_v55 = vrot.slane %v5554_v50, %v7238_v8  ;;  %v7239_v33 = vld [vmem:[#allocation30_spill] sm:$0xff] }
 0x23f   : >> { %v1800_v43 = vrot.slane %v5557_v13, %v7238_v8  ;;  %v1804_v4 = vrot.slane %v5560_v17, %v7238_v8  ;;  %v1808_v58 = vrot.slane %v5563_v1, %v7238_v8  ;;  %v1812_v18 = vrot.slane %v5566_v3, %v7238_v8 }
 0x240   : >> { %v1816_v29 = vrot.slane %v5569_v31, %v7238_v8  ;;  %v1820_v6 = vrot.slane %v5572_v60, %v7238_v8  ;;  %v1824_v37 = vrot.slane %v5575_v42, %v7238_v8  ;;  %v1825_v36 = vmul.f32 %v1796_v55, %v5569_v31 }
 0x241   : >> { %v1826_v11 = vmul.f32 %v1800_v43, %v5569_v31  ;;  %v1827_v32 = vmul.f32 %v1804_v4, %v5569_v31  ;;  %v1828_v62 = vmul.f32 %v1808_v58, %v5569_v31  ;;  %v1829_v63 = vmul.f32 %v1812_v18, %v5569_v31 }
 0x242   : >> { %v1830_v23 = vmul.f32 %v1816_v29, %v5569_v31  ;;  %v1831_v57 = vmul.f32 %v1820_v6, %v5569_v31  ;;  %v1832_v30 = vmul.f32 %v1824_v37, %v5569_v31  ;;  %v1833_v27 = vadd.f32 %v1825_v36, %v1785_v14 }
 0x243   : >> { %v1834_v15 = vadd.f32 %v1826_v11, %v1786_v59  ;;  %v1835_v5 = vadd.f32 %v1827_v32, %v1787_v10  ;;  %v1836_v9 = vadd.f32 %v1828_v62, %v1788_v21  ;;  %v1837_v48 = vadd.f32 %v1829_v63, %v1789_v61 }
 0x244   : >> { %v1838_v40 = vadd.f32 %v1830_v23, %v1790_v53  ;;  %v1839_v45 = vadd.f32 %v1831_v57, %v1791_v46  ;;  %v1840_v35 = vadd.f32 %v1832_v30, %v1792_v2  ;;  %v1844_v47 = vrot.slane %v5554_v50, %v7239_v33  ;;  %v7240_v2 = vld [vmem:[#allocation31_spill] sm:$0xff] }
 0x245   : >> { %v1848_v56 = vrot.slane %v5557_v13, %v7239_v33  ;;  %v1852_v25 = vrot.slane %v5560_v17, %v7239_v33  ;;  %v1856_v52 = vrot.slane %v5563_v1, %v7239_v33  ;;  %v1860_v28 = vrot.slane %v5566_v3, %v7239_v33 }
 0x246   : >> { %v1864_v34 = vrot.slane %v5569_v31, %v7239_v33  ;;  %v1868_v49 = vrot.slane %v5572_v60, %v7239_v33  ;;  %v1872_v26 = vrot.slane %v5575_v42, %v7239_v33  ;;  %v1873_v0 = vmul.f32 %v1844_v47, %v5572_v60 }
 0x247   : >> { %v1874_v24 = vmul.f32 %v1848_v56, %v5572_v60  ;;  %v1875_v41 = vmul.f32 %v1852_v25, %v5572_v60  ;;  %v1876_v44 = vmul.f32 %v1856_v52, %v5572_v60  ;;  %v1877_v19 = vmul.f32 %v1860_v28, %v5572_v60 }
 0x248   : >> { %v1878_v12 = vmul.f32 %v1864_v34, %v5572_v60  ;;  %v1879_v51 = vmul.f32 %v1868_v49, %v5572_v60  ;;  %v1880_v16 = vmul.f32 %v1872_v26, %v5572_v60  ;;  %v1881_v22 = vadd.f32 %v1873_v0, %v1833_v27 }
 0x249   : >> { %v1882_v14 = vadd.f32 %v1874_v24, %v1834_v15  ;;  %v1883_v59 = vadd.f32 %v1875_v41, %v1835_v5  ;;  %v1884_v10 = vadd.f32 %v1876_v44, %v1836_v9  ;;  %v1885_v21 = vadd.f32 %v1877_v19, %v1837_v48 }
 0x24a   : >> { %v1886_v61 = vadd.f32 %v1878_v12, %v1838_v40  ;;  %v1887_v53 = vadd.f32 %v1879_v51, %v1839_v45  ;;  %v1888_v46 = vadd.f32 %v1880_v16, %v1840_v35  ;;  %v1892_v55 = vrot.slane %v5554_v50, %v7240_v2 }
 0x24b   : >> { %v1896_v43 = vrot.slane %v5557_v13, %v7240_v2  ;;  %v1900_v4 = vrot.slane %v5560_v17, %v7240_v2  ;;  %v1904_v58 = vrot.slane %v5563_v1, %v7240_v2  ;;  %v1908_v18 = vrot.slane %v5566_v3, %v7240_v2 }
 0x24c   : >> { %v1912_v29 = vrot.slane %v5569_v31, %v7240_v2  ;;  %v1916_v6 = vrot.slane %v5572_v60, %v7240_v2  ;;  %v1920_v50 = vrot.slane %v5575_v42, %v7240_v2  ;;  %v1921_v13 = vmul.f32 %v1892_v55, %v5575_v42 }
 0x24d   : >> { %v1922_v37 = vmul.f32 %v1896_v43, %v5575_v42  ;;  %v1923_v17 = vmul.f32 %v1900_v4, %v5575_v42  ;;  %v1924_v1 = vmul.f32 %v1904_v58, %v5575_v42  ;;  %v1925_v36 = vmul.f32 %v1908_v18, %v5575_v42 }
 0x24e   : >> { %v1926_v3 = vmul.f32 %v1912_v29, %v5575_v42  ;;  %v1927_v31 = vmul.f32 %v1916_v6, %v5575_v42  ;;  %v1928_v11 = vmul.f32 %v1920_v50, %v5575_v42  ;;  %v5769_v60 = vadd.f32 %v1921_v13, %v1881_v22 }
 0x24f   : >> { %v5771_v32 = vadd.f32 %v1922_v37, %v1882_v14  ;;  %v5773_v62 = vadd.f32 %v1923_v17, %v1883_v59  ;;  %v5775_v63 = vadd.f32 %v1924_v1, %v1884_v10  ;;  %v5777_v23 = vadd.f32 %v1925_v36, %v1885_v21 }
 0x250   : >> { %v5779_v57 = vadd.f32 %v1926_v3, %v1886_v61  ;;  %v5781_v30 = vadd.f32 %v1927_v31, %v1887_v53  ;;  %v5783_v27 = vadd.f32 %v1928_v11, %v1888_v46  ;;  %v1940_v15 = vrot.slane %v5769_v60, %v7233_v38 }
 0x251   : >> { %v1944_v42 = vrot.slane %v5771_v32, %v7233_v38  ;;  %v1948_v5 = vrot.slane %v5773_v62, %v7233_v38  ;;  %v1952_v9 = vrot.slane %v5775_v63, %v7233_v38  ;;  %v1956_v48 = vrot.slane %v5777_v23, %v7233_v38 }
 0x252   : >> { %v1960_v40 = vrot.slane %v5779_v57, %v7233_v38  ;;  %v1964_v45 = vrot.slane %v5781_v30, %v7233_v38  ;;  %v1968_v35 = vrot.slane %v5783_v27, %v7233_v38  ;;  %v1969_v47 = vmul.f32 %v1940_v15, %v5769_v60 }
 0x253   : >> { %v1970_v56 = vmul.f32 %v1944_v42, %v5769_v60  ;;  %v1971_v25 = vmul.f32 %v1948_v5, %v5769_v60  ;;  %v1972_v52 = vmul.f32 %v1952_v9, %v5769_v60  ;;  %v1973_v28 = vmul.f32 %v1956_v48, %v5769_v60 }
 0x254   : >> { %v1974_v34 = vmul.f32 %v1960_v40, %v5769_v60  ;;  %v1975_v49 = vmul.f32 %v1964_v45, %v5769_v60  ;;  %v1976_v26 = vmul.f32 %v1968_v35, %v5769_v60  ;;  %v1980_v0 = vrot.slane %v5769_v60, %v7234_v39 }
 0x255   : >> { %v1984_v24 = vrot.slane %v5771_v32, %v7234_v39  ;;  %v1988_v41 = vrot.slane %v5773_v62, %v7234_v39  ;;  %v1992_v44 = vrot.slane %v5775_v63, %v7234_v39  ;;  %v1996_v19 = vrot.slane %v5777_v23, %v7234_v39 }
 0x256   : >> { %v2000_v12 = vrot.slane %v5779_v57, %v7234_v39  ;;  %v2004_v51 = vrot.slane %v5781_v30, %v7234_v39  ;;  %v2008_v16 = vrot.slane %v5783_v27, %v7234_v39  ;;  %v2009_v22 = vmul.f32 %v1980_v0, %v5771_v32 }
 0x257   : >> { %v2010_v14 = vmul.f32 %v1984_v24, %v5771_v32  ;;  %v2011_v59 = vmul.f32 %v1988_v41, %v5771_v32  ;;  %v2012_v10 = vmul.f32 %v1992_v44, %v5771_v32  ;;  %v2013_v21 = vmul.f32 %v1996_v19, %v5771_v32 }
 0x258   : >> { %v2014_v61 = vmul.f32 %v2000_v12, %v5771_v32  ;;  %v2015_v53 = vmul.f32 %v2004_v51, %v5771_v32  ;;  %v2016_v46 = vmul.f32 %v2008_v16, %v5771_v32  ;;  %v2017_v55 = vadd.f32 %v2009_v22, %v1969_v47 }
 0x259   : >> { %v2018_v43 = vadd.f32 %v2010_v14, %v1970_v56  ;;  %v2019_v4 = vadd.f32 %v2011_v59, %v1971_v25  ;;  %v2020_v58 = vadd.f32 %v2012_v10, %v1972_v52  ;;  %v2021_v18 = vadd.f32 %v2013_v21, %v1973_v28 }
 0x25a   : >> { %v2022_v29 = vadd.f32 %v2014_v61, %v1974_v34  ;;  %v2023_v6 = vadd.f32 %v2015_v53, %v1975_v49  ;;  %v2024_v50 = vadd.f32 %v2016_v46, %v1976_v26  ;;  %v2028_v13 = vrot.slane %v5769_v60, %v7235_v20 }
 0x25b   : >> { %v2032_v37 = vrot.slane %v5771_v32, %v7235_v20  ;;  %v2036_v17 = vrot.slane %v5773_v62, %v7235_v20  ;;  %v2040_v1 = vrot.slane %v5775_v63, %v7235_v20  ;;  %v2044_v36 = vrot.slane %v5777_v23, %v7235_v20 }
 0x25c   : >> { %v2048_v3 = vrot.slane %v5779_v57, %v7235_v20  ;;  %v2052_v31 = vrot.slane %v5781_v30, %v7235_v20  ;;  %v2056_v11 = vrot.slane %v5783_v27, %v7235_v20  ;;  %v2057_v15 = vmul.f32 %v2028_v13, %v5773_v62 }
 0x25d   : >> { %v2058_v42 = vmul.f32 %v2032_v37, %v5773_v62  ;;  %v2059_v5 = vmul.f32 %v2036_v17, %v5773_v62  ;;  %v2060_v9 = vmul.f32 %v2040_v1, %v5773_v62  ;;  %v2061_v48 = vmul.f32 %v2044_v36, %v5773_v62 }
 0x25e   : >> { %v2062_v40 = vmul.f32 %v2048_v3, %v5773_v62  ;;  %v2063_v45 = vmul.f32 %v2052_v31, %v5773_v62  ;;  %v2064_v35 = vmul.f32 %v2056_v11, %v5773_v62  ;;  %v2065_v47 = vadd.f32 %v2057_v15, %v2017_v55 }
 0x25f   : >> { %v2066_v56 = vadd.f32 %v2058_v42, %v2018_v43  ;;  %v2067_v25 = vadd.f32 %v2059_v5, %v2019_v4  ;;  %v2068_v52 = vadd.f32 %v2060_v9, %v2020_v58  ;;  %v2069_v28 = vadd.f32 %v2061_v48, %v2021_v18 }
 0x260   : >> { %v2070_v34 = vadd.f32 %v2062_v40, %v2022_v29  ;;  %v2071_v49 = vadd.f32 %v2063_v45, %v2023_v6  ;;  %v2072_v26 = vadd.f32 %v2064_v35, %v2024_v50  ;;  %v2076_v0 = vrot.slane %v5769_v60, %v7236_v7 }
 0x261   : >> { %v2080_v24 = vrot.slane %v5771_v32, %v7236_v7  ;;  %v2084_v41 = vrot.slane %v5773_v62, %v7236_v7  ;;  %v2088_v44 = vrot.slane %v5775_v63, %v7236_v7  ;;  %v2092_v19 = vrot.slane %v5777_v23, %v7236_v7 }
 0x262   : >> { %v2096_v12 = vrot.slane %v5779_v57, %v7236_v7  ;;  %v2100_v51 = vrot.slane %v5781_v30, %v7236_v7  ;;  %v2104_v16 = vrot.slane %v5783_v27, %v7236_v7  ;;  %v2105_v22 = vmul.f32 %v2076_v0, %v5775_v63 }
 0x263   : >> { %v2106_v14 = vmul.f32 %v2080_v24, %v5775_v63  ;;  %v2107_v59 = vmul.f32 %v2084_v41, %v5775_v63  ;;  %v2108_v10 = vmul.f32 %v2088_v44, %v5775_v63  ;;  %v2109_v21 = vmul.f32 %v2092_v19, %v5775_v63 }
 0x264   : >> { %v2110_v61 = vmul.f32 %v2096_v12, %v5775_v63  ;;  %v2111_v53 = vmul.f32 %v2100_v51, %v5775_v63  ;;  %v2112_v46 = vmul.f32 %v2104_v16, %v5775_v63  ;;  %v2113_v55 = vadd.f32 %v2105_v22, %v2065_v47 }
 0x265   : >> { %v2114_v43 = vadd.f32 %v2106_v14, %v2066_v56  ;;  %v2115_v4 = vadd.f32 %v2107_v59, %v2067_v25  ;;  %v2116_v58 = vadd.f32 %v2108_v10, %v2068_v52  ;;  %v2117_v18 = vadd.f32 %v2109_v21, %v2069_v28 }
 0x266   : >> { %v2118_v29 = vadd.f32 %v2110_v61, %v2070_v34  ;;  %v2119_v6 = vadd.f32 %v2111_v53, %v2071_v49  ;;  %v2120_v50 = vadd.f32 %v2112_v46, %v2072_v26  ;;  %v2124_v13 = vrot.slane %v5769_v60, %v7237_v54 }
 0x267   : >> { %v2128_v37 = vrot.slane %v5771_v32, %v7237_v54  ;;  %v2132_v17 = vrot.slane %v5773_v62, %v7237_v54  ;;  %v2136_v1 = vrot.slane %v5775_v63, %v7237_v54  ;;  %v2140_v36 = vrot.slane %v5777_v23, %v7237_v54 }
 0x268   : >> { %v2144_v3 = vrot.slane %v5779_v57, %v7237_v54  ;;  %v2148_v31 = vrot.slane %v5781_v30, %v7237_v54  ;;  %v2152_v11 = vrot.slane %v5783_v27, %v7237_v54  ;;  %v2153_v15 = vmul.f32 %v2124_v13, %v5777_v23 }
 0x269   : >> { %v2154_v42 = vmul.f32 %v2128_v37, %v5777_v23  ;;  %v2155_v5 = vmul.f32 %v2132_v17, %v5777_v23  ;;  %v2156_v9 = vmul.f32 %v2136_v1, %v5777_v23  ;;  %v2157_v48 = vmul.f32 %v2140_v36, %v5777_v23 }
 0x26a   : >> { %v2158_v40 = vmul.f32 %v2144_v3, %v5777_v23  ;;  %v2159_v45 = vmul.f32 %v2148_v31, %v5777_v23  ;;  %v2160_v35 = vmul.f32 %v2152_v11, %v5777_v23  ;;  %v2161_v47 = vadd.f32 %v2153_v15, %v2113_v55 }
 0x26b   : >> { %v2162_v56 = vadd.f32 %v2154_v42, %v2114_v43  ;;  %v2163_v25 = vadd.f32 %v2155_v5, %v2115_v4  ;;  %v2164_v52 = vadd.f32 %v2156_v9, %v2116_v58  ;;  %v2165_v28 = vadd.f32 %v2157_v48, %v2117_v18 }
 0x26c   : >> { %v2166_v34 = vadd.f32 %v2158_v40, %v2118_v29  ;;  %v2167_v49 = vadd.f32 %v2159_v45, %v2119_v6  ;;  %v2168_v26 = vadd.f32 %v2160_v35, %v2120_v50  ;;  %v2172_v0 = vrot.slane %v5769_v60, %v7238_v8 }
 0x26d   : >> { %v2176_v24 = vrot.slane %v5771_v32, %v7238_v8  ;;  %v2180_v41 = vrot.slane %v5773_v62, %v7238_v8  ;;  %v2184_v44 = vrot.slane %v5775_v63, %v7238_v8  ;;  %v2188_v19 = vrot.slane %v5777_v23, %v7238_v8 }
 0x26e   : >> { %v2192_v12 = vrot.slane %v5779_v57, %v7238_v8  ;;  %v2196_v51 = vrot.slane %v5781_v30, %v7238_v8  ;;  %v2200_v16 = vrot.slane %v5783_v27, %v7238_v8  ;;  %v2201_v22 = vmul.f32 %v2172_v0, %v5779_v57 }
 0x26f   : >> { %v2202_v14 = vmul.f32 %v2176_v24, %v5779_v57  ;;  %v2203_v59 = vmul.f32 %v2180_v41, %v5779_v57  ;;  %v2204_v10 = vmul.f32 %v2184_v44, %v5779_v57  ;;  %v2205_v21 = vmul.f32 %v2188_v19, %v5779_v57 }
 0x270   : >> { %v2206_v61 = vmul.f32 %v2192_v12, %v5779_v57  ;;  %v2207_v53 = vmul.f32 %v2196_v51, %v5779_v57  ;;  %v2208_v46 = vmul.f32 %v2200_v16, %v5779_v57  ;;  %v2209_v55 = vadd.f32 %v2201_v22, %v2161_v47 }
 0x271   : >> { %v2210_v43 = vadd.f32 %v2202_v14, %v2162_v56  ;;  %v2211_v4 = vadd.f32 %v2203_v59, %v2163_v25  ;;  %v2212_v58 = vadd.f32 %v2204_v10, %v2164_v52  ;;  %v2213_v18 = vadd.f32 %v2205_v21, %v2165_v28 }
 0x272   : >> { %v2214_v29 = vadd.f32 %v2206_v61, %v2166_v34  ;;  %v2215_v6 = vadd.f32 %v2207_v53, %v2167_v49  ;;  %v2216_v50 = vadd.f32 %v2208_v46, %v2168_v26  ;;  %v2220_v13 = vrot.slane %v5769_v60, %v7239_v33 }
 0x273   : >> { %v2224_v37 = vrot.slane %v5771_v32, %v7239_v33  ;;  %v2228_v17 = vrot.slane %v5773_v62, %v7239_v33  ;;  %v2232_v1 = vrot.slane %v5775_v63, %v7239_v33  ;;  %v2236_v36 = vrot.slane %v5777_v23, %v7239_v33 }
 0x274   : >> { %v2240_v3 = vrot.slane %v5779_v57, %v7239_v33  ;;  %v2244_v31 = vrot.slane %v5781_v30, %v7239_v33  ;;  %v2248_v11 = vrot.slane %v5783_v27, %v7239_v33  ;;  %v2249_v15 = vmul.f32 %v2220_v13, %v5781_v30 }
 0x275   : >> { %v2250_v42 = vmul.f32 %v2224_v37, %v5781_v30  ;;  %v2251_v5 = vmul.f32 %v2228_v17, %v5781_v30  ;;  %v2252_v9 = vmul.f32 %v2232_v1, %v5781_v30  ;;  %v2253_v48 = vmul.f32 %v2236_v36, %v5781_v30 }
 0x276   : >> { %v2254_v40 = vmul.f32 %v2240_v3, %v5781_v30  ;;  %v2255_v45 = vmul.f32 %v2244_v31, %v5781_v30  ;;  %v2256_v35 = vmul.f32 %v2248_v11, %v5781_v30  ;;  %v2257_v47 = vadd.f32 %v2249_v15, %v2209_v55 }
 0x277   : >> { %v2258_v56 = vadd.f32 %v2250_v42, %v2210_v43  ;;  %v2259_v25 = vadd.f32 %v2251_v5, %v2211_v4  ;;  %v2260_v52 = vadd.f32 %v2252_v9, %v2212_v58  ;;  %v2261_v28 = vadd.f32 %v2253_v48, %v2213_v18 }
 0x278   : >> { %v2262_v34 = vadd.f32 %v2254_v40, %v2214_v29  ;;  %v2263_v49 = vadd.f32 %v2255_v45, %v2215_v6  ;;  %v2264_v26 = vadd.f32 %v2256_v35, %v2216_v50  ;;  %v2268_v0 = vrot.slane %v5769_v60, %v7240_v2 }
 0x279   : >> { %v2272_v24 = vrot.slane %v5771_v32, %v7240_v2  ;;  %v2276_v41 = vrot.slane %v5773_v62, %v7240_v2  ;;  %v2280_v44 = vrot.slane %v5775_v63, %v7240_v2  ;;  %v2284_v19 = vrot.slane %v5777_v23, %v7240_v2 }
 0x27a   : >> { %v2288_v12 = vrot.slane %v5779_v57, %v7240_v2  ;;  %v2292_v51 = vrot.slane %v5781_v30, %v7240_v2  ;;  %v2296_v60 = vrot.slane %v5783_v27, %v7240_v2  ;;  %v2297_v32 = vmul.f32 %v2268_v0, %v5783_v27 }
 0x27b   : >> { %v2298_v16 = vmul.f32 %v2272_v24, %v5783_v27  ;;  %v2299_v62 = vmul.f32 %v2276_v41, %v5783_v27  ;;  %v2300_v63 = vmul.f32 %v2280_v44, %v5783_v27  ;;  %v2301_v22 = vmul.f32 %v2284_v19, %v5783_v27 }
 0x27c   : >> { %v2302_v23 = vmul.f32 %v2288_v12, %v5783_v27  ;;  %v2303_v57 = vmul.f32 %v2292_v51, %v5783_v27  ;;  %v2304_v14 = vmul.f32 %v2296_v60, %v5783_v27  ;;  %v5977_v30 = vadd.f32 %v2297_v32, %v2257_v47 }
 0x27d   : >> { %v5979_v59 = vadd.f32 %v2298_v16, %v2258_v56  ;;  %v5981_v10 = vadd.f32 %v2299_v62, %v2259_v25  ;;  %v5983_v21 = vadd.f32 %v2300_v63, %v2260_v52  ;;  %v5985_v61 = vadd.f32 %v2301_v22, %v2261_v28 }
 0x27e   : >> { %v5987_v53 = vadd.f32 %v2302_v23, %v2262_v34  ;;  %v5989_v46 = vadd.f32 %v2303_v57, %v2263_v49  ;;  %v5991_v55 = vadd.f32 %v2304_v14, %v2264_v26  ;;  %v2316_v43 = vrot.slane %v5977_v30, %v7233_v38 }
 0x27f   : >> { %v4074_v27 = vmov 0.0   ;;  %v2320_v4 = vrot.slane %v5979_v59, %v7233_v38  ;;  %v2324_v58 = vrot.slane %v5981_v10, %v7233_v38  ;;  %v2328_v18 = vrot.slane %v5983_v21, %v7233_v38 }
 0x280   : >> { %4015 = vmatprep.subr.mxu1 %v4074_v27  ;;  %v2332_v29 = vrot.slane %v5985_v61, %v7233_v38  ;;  %v2336_v6 = vrot.slane %v5987_v53, %v7233_v38  ;;  %v2340_v50 = vrot.slane %v5989_v46, %v7233_v38  ;;  %v2344_v13 = vrot.slane %v5991_v55, %v7233_v38 }
 0x281   : >> { %v2345_v37 = vmul.f32 %v2316_v43, %v5977_v30  ;;  %v2346_v17 = vmul.f32 %v2320_v4, %v5977_v30  ;;  %v2347_v1 = vmul.f32 %v2324_v58, %v5977_v30  ;;  %v2348_v36 = vmul.f32 %v2328_v18, %v5977_v30  ;;  %4031 = vmatprep.mubr.msk.f32.mxu1 %vm4075_vm9, %v4074_v27 }
 0x282   : >> { %v2349_v3 = vmul.f32 %v2332_v29, %v5977_v30  ;;  %v2350_v31 = vmul.f32 %v2336_v6, %v5977_v30  ;;  %v2351_v11 = vmul.f32 %v2340_v50, %v5977_v30  ;;  %v2352_v15 = vmul.f32 %v2344_v13, %v5977_v30 }
 0x283   : >> { %v2356_v42 = vrot.slane %v5977_v30, %v7234_v39  ;;  %v2360_v5 = vrot.slane %v5979_v59, %v7234_v39  ;;  %v2364_v9 = vrot.slane %v5981_v10, %v7234_v39  ;;  %v2368_v48 = vrot.slane %v5983_v21, %v7234_v39 }
 0x284   : >> { %v2372_v40 = vrot.slane %v5985_v61, %v7234_v39  ;;  %v2376_v45 = vrot.slane %v5987_v53, %v7234_v39  ;;  %v2380_v35 = vrot.slane %v5989_v46, %v7234_v39  ;;  %v2384_v47 = vrot.slane %v5991_v55, %v7234_v39 }
 0x285   : >> { %v2385_v56 = vmul.f32 %v2356_v42, %v5979_v59  ;;  %v2386_v25 = vmul.f32 %v2360_v5, %v5979_v59  ;;  %v2387_v52 = vmul.f32 %v2364_v9, %v5979_v59  ;;  %v2388_v28 = vmul.f32 %v2368_v48, %v5979_v59 }
 0x286   : >> { %v2389_v34 = vmul.f32 %v2372_v40, %v5979_v59  ;;  %v2390_v49 = vmul.f32 %v2376_v45, %v5979_v59  ;;  %v2391_v26 = vmul.f32 %v2380_v35, %v5979_v59  ;;  %v2392_v0 = vmul.f32 %v2384_v47, %v5979_v59 }
 0x287   : >> { %v2393_v24 = vadd.f32 %v2385_v56, %v2345_v37  ;;  %v2394_v41 = vadd.f32 %v2386_v25, %v2346_v17  ;;  %v2395_v44 = vadd.f32 %v2387_v52, %v2347_v1  ;;  %v2396_v19 = vadd.f32 %v2388_v28, %v2348_v36 }
 0x288   : >> { %v2397_v12 = vadd.f32 %v2389_v34, %v2349_v3  ;;  %v2398_v51 = vadd.f32 %v2390_v49, %v2350_v31  ;;  %v2399_v60 = vadd.f32 %v2391_v26, %v2351_v11  ;;  %v2400_v32 = vadd.f32 %v2392_v0, %v2352_v15 }
 0x289   : >> { %v2404_v16 = vrot.slane %v5977_v30, %v7235_v20  ;;  %v2408_v62 = vrot.slane %v5979_v59, %v7235_v20  ;;  %v2412_v63 = vrot.slane %v5981_v10, %v7235_v20  ;;  %v2416_v22 = vrot.slane %v5983_v21, %v7235_v20 }
 0x28a   : >> { %v2420_v23 = vrot.slane %v5985_v61, %v7235_v20  ;;  %v2424_v57 = vrot.slane %v5987_v53, %v7235_v20  ;;  %v2428_v14 = vrot.slane %v5989_v46, %v7235_v20  ;;  %v2432_v43 = vrot.slane %v5991_v55, %v7235_v20 }
 0x28b   : >> { %v2433_v4 = vmul.f32 %v2404_v16, %v5981_v10  ;;  %v2434_v58 = vmul.f32 %v2408_v62, %v5981_v10  ;;  %v2435_v18 = vmul.f32 %v2412_v63, %v5981_v10  ;;  %v2436_v29 = vmul.f32 %v2416_v22, %v5981_v10 }
 0x28c   : >> { %v2437_v6 = vmul.f32 %v2420_v23, %v5981_v10  ;;  %v2438_v50 = vmul.f32 %v2424_v57, %v5981_v10  ;;  %v2439_v13 = vmul.f32 %v2428_v14, %v5981_v10  ;;  %v2440_v37 = vmul.f32 %v2432_v43, %v5981_v10 }
 0x28d   : >> { %v2441_v17 = vadd.f32 %v2433_v4, %v2393_v24  ;;  %v2442_v1 = vadd.f32 %v2434_v58, %v2394_v41  ;;  %v2443_v36 = vadd.f32 %v2435_v18, %v2395_v44  ;;  %v2444_v3 = vadd.f32 %v2436_v29, %v2396_v19 }
 0x28e   : >> { %v2445_v31 = vadd.f32 %v2437_v6, %v2397_v12  ;;  %v2446_v11 = vadd.f32 %v2438_v50, %v2398_v51  ;;  %v2447_v15 = vadd.f32 %v2439_v13, %v2399_v60  ;;  %v2448_v42 = vadd.f32 %v2440_v37, %v2400_v32 }
 0x28f   : >> { %v2452_v5 = vrot.slane %v5977_v30, %v7236_v7  ;;  %v2456_v9 = vrot.slane %v5979_v59, %v7236_v7  ;;  %v2460_v48 = vrot.slane %v5981_v10, %v7236_v7  ;;  %v2464_v40 = vrot.slane %v5983_v21, %v7236_v7 }
 0x290   : >> { %v2468_v45 = vrot.slane %v5985_v61, %v7236_v7  ;;  %v2472_v35 = vrot.slane %v5987_v53, %v7236_v7  ;;  %v2476_v47 = vrot.slane %v5989_v46, %v7236_v7  ;;  %v2480_v56 = vrot.slane %v5991_v55, %v7236_v7 }
 0x291   : >> { %v2481_v25 = vmul.f32 %v2452_v5, %v5983_v21  ;;  %v2482_v52 = vmul.f32 %v2456_v9, %v5983_v21  ;;  %v2483_v28 = vmul.f32 %v2460_v48, %v5983_v21  ;;  %v2484_v34 = vmul.f32 %v2464_v40, %v5983_v21 }
 0x292   : >> { %v2485_v49 = vmul.f32 %v2468_v45, %v5983_v21  ;;  %v2486_v26 = vmul.f32 %v2472_v35, %v5983_v21  ;;  %v2487_v0 = vmul.f32 %v2476_v47, %v5983_v21  ;;  %v2488_v24 = vmul.f32 %v2480_v56, %v5983_v21 }
 0x293   : >> { %v2489_v41 = vadd.f32 %v2481_v25, %v2441_v17  ;;  %v2490_v44 = vadd.f32 %v2482_v52, %v2442_v1  ;;  %v2491_v19 = vadd.f32 %v2483_v28, %v2443_v36  ;;  %v2492_v12 = vadd.f32 %v2484_v34, %v2444_v3 }
 0x294   : >> { %v2493_v51 = vadd.f32 %v2485_v49, %v2445_v31  ;;  %v2494_v60 = vadd.f32 %v2486_v26, %v2446_v11  ;;  %v2495_v32 = vadd.f32 %v2487_v0, %v2447_v15  ;;  %v2496_v16 = vadd.f32 %v2488_v24, %v2448_v42 }
 0x295   : >> { %v2500_v62 = vrot.slane %v5977_v30, %v7237_v54  ;;  %v2504_v63 = vrot.slane %v5979_v59, %v7237_v54  ;;  %v2508_v22 = vrot.slane %v5981_v10, %v7237_v54  ;;  %v2512_v23 = vrot.slane %v5983_v21, %v7237_v54 }
 0x296   : >> { %v2516_v57 = vrot.slane %v5985_v61, %v7237_v54  ;;  %v2520_v14 = vrot.slane %v5987_v53, %v7237_v54  ;;  %v2524_v43 = vrot.slane %v5989_v46, %v7237_v54  ;;  %v2528_v4 = vrot.slane %v5991_v55, %v7237_v54 }
 0x297   : >> { %v2529_v58 = vmul.f32 %v2500_v62, %v5985_v61  ;;  %v2530_v18 = vmul.f32 %v2504_v63, %v5985_v61  ;;  %v2531_v29 = vmul.f32 %v2508_v22, %v5985_v61  ;;  %v2532_v6 = vmul.f32 %v2512_v23, %v5985_v61 }
 0x298   : >> { %v2533_v50 = vmul.f32 %v2516_v57, %v5985_v61  ;;  %v2534_v13 = vmul.f32 %v2520_v14, %v5985_v61  ;;  %v2535_v37 = vmul.f32 %v2524_v43, %v5985_v61  ;;  %v2536_v17 = vmul.f32 %v2528_v4, %v5985_v61 }
 0x299   : >> { %v2537_v1 = vadd.f32 %v2529_v58, %v2489_v41  ;;  %v2538_v36 = vadd.f32 %v2530_v18, %v2490_v44  ;;  %v2539_v3 = vadd.f32 %v2531_v29, %v2491_v19  ;;  %v2540_v31 = vadd.f32 %v2532_v6, %v2492_v12 }
 0x29a   : >> { %v2541_v11 = vadd.f32 %v2533_v50, %v2493_v51  ;;  %v2542_v15 = vadd.f32 %v2534_v13, %v2494_v60  ;;  %v2543_v42 = vadd.f32 %v2535_v37, %v2495_v32  ;;  %v2544_v5 = vadd.f32 %v2536_v17, %v2496_v16 }
 0x29b   : >> { %v2548_v9 = vrot.slane %v5977_v30, %v7238_v8  ;;  %v2552_v48 = vrot.slane %v5979_v59, %v7238_v8  ;;  %v2556_v40 = vrot.slane %v5981_v10, %v7238_v8  ;;  %v2560_v45 = vrot.slane %v5983_v21, %v7238_v8 }
 0x29c   : >> { %v2564_v35 = vrot.slane %v5985_v61, %v7238_v8  ;;  %v2568_v47 = vrot.slane %v5987_v53, %v7238_v8  ;;  %v2572_v56 = vrot.slane %v5989_v46, %v7238_v8  ;;  %v2576_v25 = vrot.slane %v5991_v55, %v7238_v8 }
 0x29d   : >> { %v2577_v52 = vmul.f32 %v2548_v9, %v5987_v53  ;;  %v2578_v28 = vmul.f32 %v2552_v48, %v5987_v53  ;;  %v2579_v34 = vmul.f32 %v2556_v40, %v5987_v53  ;;  %v2580_v49 = vmul.f32 %v2560_v45, %v5987_v53 }
 0x29e   : >> { %v2581_v26 = vmul.f32 %v2564_v35, %v5987_v53  ;;  %v2582_v0 = vmul.f32 %v2568_v47, %v5987_v53  ;;  %v2583_v24 = vmul.f32 %v2572_v56, %v5987_v53  ;;  %v2584_v41 = vmul.f32 %v2576_v25, %v5987_v53 }
 0x29f   : >> { %v2585_v44 = vadd.f32 %v2577_v52, %v2537_v1  ;;  %v2586_v19 = vadd.f32 %v2578_v28, %v2538_v36  ;;  %v2587_v12 = vadd.f32 %v2579_v34, %v2539_v3  ;;  %v2588_v51 = vadd.f32 %v2580_v49, %v2540_v31 }
 0x2a0   : >> { %v2589_v60 = vadd.f32 %v2581_v26, %v2541_v11  ;;  %v2590_v32 = vadd.f32 %v2582_v0, %v2542_v15  ;;  %v2591_v16 = vadd.f32 %v2583_v24, %v2543_v42  ;;  %v2592_v62 = vadd.f32 %v2584_v41, %v2544_v5 }
 0x2a1   : >> { %v2596_v63 = vrot.slane %v5977_v30, %v7239_v33  ;;  %v2600_v22 = vrot.slane %v5979_v59, %v7239_v33  ;;  %v2604_v23 = vrot.slane %v5981_v10, %v7239_v33  ;;  %v2608_v57 = vrot.slane %v5983_v21, %v7239_v33 }
 0x2a2   : >> { %v2612_v14 = vrot.slane %v5985_v61, %v7239_v33  ;;  %v2616_v43 = vrot.slane %v5987_v53, %v7239_v33  ;;  %v2620_v4 = vrot.slane %v5989_v46, %v7239_v33  ;;  %v2624_v58 = vrot.slane %v5991_v55, %v7239_v33 }
 0x2a3   : >> { %v2625_v18 = vmul.f32 %v2596_v63, %v5989_v46  ;;  %v2626_v29 = vmul.f32 %v2600_v22, %v5989_v46  ;;  %v2627_v6 = vmul.f32 %v2604_v23, %v5989_v46  ;;  %v2628_v50 = vmul.f32 %v2608_v57, %v5989_v46 }
 0x2a4   : >> { %v2629_v13 = vmul.f32 %v2612_v14, %v5989_v46  ;;  %v2630_v37 = vmul.f32 %v2616_v43, %v5989_v46  ;;  %v2631_v17 = vmul.f32 %v2620_v4, %v5989_v46  ;;  %v2632_v1 = vmul.f32 %v2624_v58, %v5989_v46 }
 0x2a5   : >> { %v2633_v36 = vadd.f32 %v2625_v18, %v2585_v44  ;;  %v2634_v3 = vadd.f32 %v2626_v29, %v2586_v19  ;;  %v2635_v31 = vadd.f32 %v2627_v6, %v2587_v12  ;;  %v2636_v11 = vadd.f32 %v2628_v50, %v2588_v51 }
 0x2a6   : >> { %v2637_v15 = vadd.f32 %v2629_v13, %v2589_v60  ;;  %v2638_v42 = vadd.f32 %v2630_v37, %v2590_v32  ;;  %v2639_v5 = vadd.f32 %v2631_v17, %v2591_v16  ;;  %v2640_v9 = vadd.f32 %v2632_v1, %v2592_v62 }
 0x2a7   : >> { %v2644_v48 = vrot.slane %v5977_v30, %v7240_v2  ;;  %v2648_v40 = vrot.slane %v5979_v59, %v7240_v2  ;;  %v2652_v45 = vrot.slane %v5981_v10, %v7240_v2  ;;  %v2656_v35 = vrot.slane %v5983_v21, %v7240_v2 }
 0x2a8   : >> { %v2660_v47 = vrot.slane %v5985_v61, %v7240_v2  ;;  %v2664_v56 = vrot.slane %v5987_v53, %v7240_v2  ;;  %v2668_v25 = vrot.slane %v5989_v46, %v7240_v2  ;;  %v2672_v30 = vrot.slane %v5991_v55, %v7240_v2 }
 0x2a9   : >> { %v2673_v59 = vmul.f32 %v2644_v48, %v5991_v55  ;;  %v2674_v52 = vmul.f32 %v2648_v40, %v5991_v55  ;;  %v2675_v10 = vmul.f32 %v2652_v45, %v5991_v55  ;;  %v2676_v21 = vmul.f32 %v2656_v35, %v5991_v55 }
 0x2aa   : >> { %v2677_v28 = vmul.f32 %v2660_v47, %v5991_v55  ;;  %v2678_v61 = vmul.f32 %v2664_v56, %v5991_v55  ;;  %v2679_v53 = vmul.f32 %v2668_v25, %v5991_v55  ;;  %v2680_v34 = vmul.f32 %v2672_v30, %v5991_v55 }
 0x2ab   : >> { %v6186_v46 = vadd.f32 %v2673_v59, %v2633_v36  ;;  %v6188_v49 = vadd.f32 %v2674_v52, %v2634_v3  ;;  %v6190_v26 = vadd.f32 %v2675_v10, %v2635_v31  ;;  %v6192_v0 = vadd.f32 %v2676_v21, %v2636_v11 }
 0x2ac   : >> { %v6194_v24 = vadd.f32 %v2677_v28, %v2637_v15  ;;  %v6196_v41 = vadd.f32 %v2678_v61, %v2638_v42  ;;  %v6198_v44 = vadd.f32 %v2679_v53, %v2639_v5  ;;  %v6200_v19 = vadd.f32 %v2680_v34, %v2640_v9 }
 0x2ad   : >> { %v2692_v12 = vrot.slane %v6186_v46, %v7233_v38  ;;  %v2696_v55 = vrot.slane %v6188_v49, %v7233_v38  ;;  %v2700_v51 = vrot.slane %v6190_v26, %v7233_v38  ;;  %v2704_v60 = vrot.slane %v6192_v0, %v7233_v38 }
 0x2ae   : >> { %v2708_v32 = vrot.slane %v6194_v24, %v7233_v38  ;;  %v2712_v16 = vrot.slane %v6196_v41, %v7233_v38  ;;  %v2716_v62 = vrot.slane %v6198_v44, %v7233_v38  ;;  %v2720_v63 = vrot.slane %v6200_v19, %v7233_v38 }
 0x2af   : >> { %v2721_v22 = vmul.f32 %v2692_v12, %v6186_v46  ;;  %v2722_v23 = vmul.f32 %v2696_v55, %v6186_v46  ;;  %v2723_v57 = vmul.f32 %v2700_v51, %v6186_v46  ;;  %v2724_v14 = vmul.f32 %v2704_v60, %v6186_v46 }
 0x2b0   : >> { %v2725_v43 = vmul.f32 %v2708_v32, %v6186_v46  ;;  %v2726_v4 = vmul.f32 %v2712_v16, %v6186_v46  ;;  %v2727_v58 = vmul.f32 %v2716_v62, %v6186_v46  ;;  %v2728_v18 = vmul.f32 %v2720_v63, %v6186_v46 }
 0x2b1   : >> { %v2732_v29 = vrot.slane %v6186_v46, %v7234_v39  ;;  %v2736_v6 = vrot.slane %v6188_v49, %v7234_v39  ;;  %v2740_v50 = vrot.slane %v6190_v26, %v7234_v39  ;;  %v2744_v13 = vrot.slane %v6192_v0, %v7234_v39 }
 0x2b2   : >> { %v2748_v37 = vrot.slane %v6194_v24, %v7234_v39  ;;  %v2752_v17 = vrot.slane %v6196_v41, %v7234_v39  ;;  %v2756_v1 = vrot.slane %v6198_v44, %v7234_v39  ;;  %v2760_v36 = vrot.slane %v6200_v19, %v7234_v39 }
 0x2b3   : >> { %v2761_v3 = vmul.f32 %v2732_v29, %v6188_v49  ;;  %v2762_v31 = vmul.f32 %v2736_v6, %v6188_v49  ;;  %v2763_v11 = vmul.f32 %v2740_v50, %v6188_v49  ;;  %v2764_v15 = vmul.f32 %v2744_v13, %v6188_v49 }
 0x2b4   : >> { %v2765_v42 = vmul.f32 %v2748_v37, %v6188_v49  ;;  %v2766_v5 = vmul.f32 %v2752_v17, %v6188_v49  ;;  %v2767_v9 = vmul.f32 %v2756_v1, %v6188_v49  ;;  %v2768_v48 = vmul.f32 %v2760_v36, %v6188_v49 }
 0x2b5   : >> { %v2769_v40 = vadd.f32 %v2761_v3, %v2721_v22  ;;  %v2770_v45 = vadd.f32 %v2762_v31, %v2722_v23  ;;  %v2771_v35 = vadd.f32 %v2763_v11, %v2723_v57  ;;  %v2772_v47 = vadd.f32 %v2764_v15, %v2724_v14 }
 0x2b6   : >> { %v2773_v56 = vadd.f32 %v2765_v42, %v2725_v43  ;;  %v2774_v25 = vadd.f32 %v2766_v5, %v2726_v4  ;;  %v2775_v30 = vadd.f32 %v2767_v9, %v2727_v58  ;;  %v2776_v59 = vadd.f32 %v2768_v48, %v2728_v18 }
 0x2b7   : >> { %v2780_v52 = vrot.slane %v6186_v46, %v7235_v20  ;;  %v2784_v10 = vrot.slane %v6188_v49, %v7235_v20  ;;  %v2788_v21 = vrot.slane %v6190_v26, %v7235_v20  ;;  %v2792_v28 = vrot.slane %v6192_v0, %v7235_v20 }
 0x2b8   : >> { %v2796_v61 = vrot.slane %v6194_v24, %v7235_v20  ;;  %v2800_v53 = vrot.slane %v6196_v41, %v7235_v20  ;;  %v2804_v34 = vrot.slane %v6198_v44, %v7235_v20  ;;  %v2808_v12 = vrot.slane %v6200_v19, %v7235_v20 }
 0x2b9   : >> { %v2809_v55 = vmul.f32 %v2780_v52, %v6190_v26  ;;  %v2810_v51 = vmul.f32 %v2784_v10, %v6190_v26  ;;  %v2811_v60 = vmul.f32 %v2788_v21, %v6190_v26  ;;  %v2812_v32 = vmul.f32 %v2792_v28, %v6190_v26 }
 0x2ba   : >> { %v2813_v16 = vmul.f32 %v2796_v61, %v6190_v26  ;;  %v2814_v62 = vmul.f32 %v2800_v53, %v6190_v26  ;;  %v2815_v63 = vmul.f32 %v2804_v34, %v6190_v26  ;;  %v2816_v22 = vmul.f32 %v2808_v12, %v6190_v26 }
 0x2bb   : >> { %v2817_v23 = vadd.f32 %v2809_v55, %v2769_v40  ;;  %v2818_v57 = vadd.f32 %v2810_v51, %v2770_v45  ;;  %v2819_v14 = vadd.f32 %v2811_v60, %v2771_v35  ;;  %v2820_v43 = vadd.f32 %v2812_v32, %v2772_v47 }
 0x2bc   : >> { %v2821_v4 = vadd.f32 %v2813_v16, %v2773_v56  ;;  %v2822_v58 = vadd.f32 %v2814_v62, %v2774_v25  ;;  %v2823_v18 = vadd.f32 %v2815_v63, %v2775_v30  ;;  %v2824_v29 = vadd.f32 %v2816_v22, %v2776_v59 }
 0x2bd   : >> { %v2828_v6 = vrot.slane %v6186_v46, %v7236_v7  ;;  %v2832_v50 = vrot.slane %v6188_v49, %v7236_v7  ;;  %v2836_v13 = vrot.slane %v6190_v26, %v7236_v7  ;;  %v2840_v37 = vrot.slane %v6192_v0, %v7236_v7 }
 0x2be   : >> { %v2844_v17 = vrot.slane %v6194_v24, %v7236_v7  ;;  %v2848_v1 = vrot.slane %v6196_v41, %v7236_v7  ;;  %v2852_v36 = vrot.slane %v6198_v44, %v7236_v7  ;;  %v2856_v3 = vrot.slane %v6200_v19, %v7236_v7 }
 0x2bf   : >> { %v2857_v31 = vmul.f32 %v2828_v6, %v6192_v0  ;;  %v2858_v11 = vmul.f32 %v2832_v50, %v6192_v0  ;;  %v2859_v15 = vmul.f32 %v2836_v13, %v6192_v0  ;;  %v2860_v42 = vmul.f32 %v2840_v37, %v6192_v0 }
 0x2c0   : >> { %v2861_v5 = vmul.f32 %v2844_v17, %v6192_v0  ;;  %v2862_v9 = vmul.f32 %v2848_v1, %v6192_v0  ;;  %v2863_v48 = vmul.f32 %v2852_v36, %v6192_v0  ;;  %v2864_v40 = vmul.f32 %v2856_v3, %v6192_v0 }
 0x2c1   : >> { %v2865_v45 = vadd.f32 %v2857_v31, %v2817_v23  ;;  %v2866_v35 = vadd.f32 %v2858_v11, %v2818_v57  ;;  %v2867_v47 = vadd.f32 %v2859_v15, %v2819_v14  ;;  %v2868_v56 = vadd.f32 %v2860_v42, %v2820_v43 }
 0x2c2   : >> { %v2869_v25 = vadd.f32 %v2861_v5, %v2821_v4  ;;  %v2870_v30 = vadd.f32 %v2862_v9, %v2822_v58  ;;  %v2871_v59 = vadd.f32 %v2863_v48, %v2823_v18  ;;  %v2872_v52 = vadd.f32 %v2864_v40, %v2824_v29 }
 0x2c3   : >> { %v2876_v10 = vrot.slane %v6186_v46, %v7237_v54  ;;  %v2880_v21 = vrot.slane %v6188_v49, %v7237_v54  ;;  %v2884_v28 = vrot.slane %v6190_v26, %v7237_v54  ;;  %v2888_v61 = vrot.slane %v6192_v0, %v7237_v54 }
 0x2c4   : >> { %v2892_v53 = vrot.slane %v6194_v24, %v7237_v54  ;;  %v2896_v34 = vrot.slane %v6196_v41, %v7237_v54  ;;  %v2900_v12 = vrot.slane %v6198_v44, %v7237_v54  ;;  %v2904_v55 = vrot.slane %v6200_v19, %v7237_v54 }
 0x2c5   : >> { %v2905_v51 = vmul.f32 %v2876_v10, %v6194_v24  ;;  %v2906_v60 = vmul.f32 %v2880_v21, %v6194_v24  ;;  %v2907_v32 = vmul.f32 %v2884_v28, %v6194_v24  ;;  %v2908_v16 = vmul.f32 %v2888_v61, %v6194_v24 }
 0x2c6   : >> { %v2909_v62 = vmul.f32 %v2892_v53, %v6194_v24  ;;  %v2910_v63 = vmul.f32 %v2896_v34, %v6194_v24  ;;  %v2911_v22 = vmul.f32 %v2900_v12, %v6194_v24  ;;  %v2912_v23 = vmul.f32 %v2904_v55, %v6194_v24 }
 0x2c7   : >> { %v2913_v57 = vadd.f32 %v2905_v51, %v2865_v45  ;;  %v2914_v14 = vadd.f32 %v2906_v60, %v2866_v35  ;;  %v2915_v43 = vadd.f32 %v2907_v32, %v2867_v47  ;;  %v2916_v4 = vadd.f32 %v2908_v16, %v2868_v56 }
 0x2c8   : >> { %v2917_v58 = vadd.f32 %v2909_v62, %v2869_v25  ;;  %v2918_v18 = vadd.f32 %v2910_v63, %v2870_v30  ;;  %v2919_v29 = vadd.f32 %v2911_v22, %v2871_v59  ;;  %v2920_v6 = vadd.f32 %v2912_v23, %v2872_v52 }
 0x2c9   : >> { %v2924_v50 = vrot.slane %v6186_v46, %v7238_v8  ;;  %v2928_v13 = vrot.slane %v6188_v49, %v7238_v8  ;;  %v2932_v37 = vrot.slane %v6190_v26, %v7238_v8  ;;  %v2936_v17 = vrot.slane %v6192_v0, %v7238_v8 }
 0x2ca   : >> { %v2940_v1 = vrot.slane %v6194_v24, %v7238_v8  ;;  %v2944_v36 = vrot.slane %v6196_v41, %v7238_v8  ;;  %v2948_v3 = vrot.slane %v6198_v44, %v7238_v8  ;;  %v2952_v31 = vrot.slane %v6200_v19, %v7238_v8 }
 0x2cb   : >> { %v2953_v11 = vmul.f32 %v2924_v50, %v6196_v41  ;;  %v2954_v15 = vmul.f32 %v2928_v13, %v6196_v41  ;;  %v2955_v42 = vmul.f32 %v2932_v37, %v6196_v41  ;;  %v2956_v5 = vmul.f32 %v2936_v17, %v6196_v41 }
 0x2cc   : >> { %v2957_v9 = vmul.f32 %v2940_v1, %v6196_v41  ;;  %v2958_v48 = vmul.f32 %v2944_v36, %v6196_v41  ;;  %v2959_v40 = vmul.f32 %v2948_v3, %v6196_v41  ;;  %v2960_v45 = vmul.f32 %v2952_v31, %v6196_v41 }
 0x2cd   : >> { %v2961_v35 = vadd.f32 %v2953_v11, %v2913_v57  ;;  %v2962_v47 = vadd.f32 %v2954_v15, %v2914_v14  ;;  %v2963_v56 = vadd.f32 %v2955_v42, %v2915_v43  ;;  %v2964_v25 = vadd.f32 %v2956_v5, %v2916_v4 }
 0x2ce   : >> { %v2965_v30 = vadd.f32 %v2957_v9, %v2917_v58  ;;  %v2966_v59 = vadd.f32 %v2958_v48, %v2918_v18  ;;  %v2967_v52 = vadd.f32 %v2959_v40, %v2919_v29  ;;  %v2968_v10 = vadd.f32 %v2960_v45, %v2920_v6 }
 0x2cf   : >> { %v2972_v21 = vrot.slane %v6186_v46, %v7239_v33  ;;  %v2976_v28 = vrot.slane %v6188_v49, %v7239_v33  ;;  %v2980_v61 = vrot.slane %v6190_v26, %v7239_v33  ;;  %v2984_v53 = vrot.slane %v6192_v0, %v7239_v33 }
 0x2d0   : >> { %v2988_v34 = vrot.slane %v6194_v24, %v7239_v33  ;;  %v2992_v12 = vrot.slane %v6196_v41, %v7239_v33  ;;  %v2996_v55 = vrot.slane %v6198_v44, %v7239_v33  ;;  %v3000_v51 = vrot.slane %v6200_v19, %v7239_v33 }
 0x2d1   : >> { %v3001_v60 = vmul.f32 %v2972_v21, %v6198_v44  ;;  %v3002_v32 = vmul.f32 %v2976_v28, %v6198_v44  ;;  %v3003_v16 = vmul.f32 %v2980_v61, %v6198_v44  ;;  %v3004_v62 = vmul.f32 %v2984_v53, %v6198_v44 }
 0x2d2   : >> { %v3005_v63 = vmul.f32 %v2988_v34, %v6198_v44  ;;  %v3006_v22 = vmul.f32 %v2992_v12, %v6198_v44  ;;  %v3007_v23 = vmul.f32 %v2996_v55, %v6198_v44  ;;  %v3008_v57 = vmul.f32 %v3000_v51, %v6198_v44 }
 0x2d3   : >> { %v3009_v14 = vadd.f32 %v3001_v60, %v2961_v35  ;;  %v3010_v43 = vadd.f32 %v3002_v32, %v2962_v47  ;;  %v3011_v4 = vadd.f32 %v3003_v16, %v2963_v56  ;;  %v3012_v58 = vadd.f32 %v3004_v62, %v2964_v25 }
 0x2d4   : >> { %v3013_v18 = vadd.f32 %v3005_v63, %v2965_v30  ;;  %v3014_v29 = vadd.f32 %v3006_v22, %v2966_v59  ;;  %v3015_v6 = vadd.f32 %v3007_v23, %v2967_v52  ;;  %v3016_v50 = vadd.f32 %v3008_v57, %v2968_v10 }
 0x2d5   : >> { %v3020_v13 = vrot.slane %v6186_v46, %v7240_v2  ;;  %v3024_v37 = vrot.slane %v6188_v49, %v7240_v2  ;;  %v3028_v17 = vrot.slane %v6190_v26, %v7240_v2  ;;  %v3032_v1 = vrot.slane %v6192_v0, %v7240_v2 }
 0x2d6   : >> { %v3036_v36 = vrot.slane %v6194_v24, %v7240_v2  ;;  %v3040_v3 = vrot.slane %v6196_v41, %v7240_v2  ;;  %v3044_v31 = vrot.slane %v6198_v44, %v7240_v2  ;;  %v3048_v46 = vrot.slane %v6200_v19, %v7240_v2 }
 0x2d7   : >> { %v3049_v49 = vmul.f32 %v3020_v13, %v6200_v19  ;;  %v3050_v11 = vmul.f32 %v3024_v37, %v6200_v19  ;;  %v3051_v26 = vmul.f32 %v3028_v17, %v6200_v19  ;;  %v3052_v0 = vmul.f32 %v3032_v1, %v6200_v19 }
 0x2d8   : >> { %v3053_v15 = vmul.f32 %v3036_v36, %v6200_v19  ;;  %v3054_v24 = vmul.f32 %v3040_v3, %v6200_v19  ;;  %v3055_v41 = vmul.f32 %v3044_v31, %v6200_v19  ;;  %v3056_v42 = vmul.f32 %v3048_v46, %v6200_v19 }
 0x2d9   : >> { %v6394_v44 = vadd.f32 %v3049_v49, %v3009_v14  ;;  %v6396_v5 = vadd.f32 %v3050_v11, %v3010_v43  ;;  %v6398_v9 = vadd.f32 %v3051_v26, %v3011_v4  ;;  %v6400_v48 = vadd.f32 %v3052_v0, %v3012_v58 }
 0x2da   : >> { %v6402_v40 = vadd.f32 %v3053_v15, %v3013_v18  ;;  %v6404_v45 = vadd.f32 %v3054_v24, %v3014_v29  ;;  %v6406_v35 = vadd.f32 %v3055_v41, %v3015_v6  ;;  %v6408_v47 = vadd.f32 %v3056_v42, %v3016_v50 }
 0x2db   : >> { %v3068_v56 = vrot.slane %v6394_v44, %v7233_v38  ;;  %v3072_v19 = vrot.slane %v6396_v5, %v7233_v38  ;;  %v3076_v25 = vrot.slane %v6398_v9, %v7233_v38  ;;  %v3080_v30 = vrot.slane %v6400_v48, %v7233_v38 }
 0x2dc   : >> { %v3084_v59 = vrot.slane %v6402_v40, %v7233_v38  ;;  %v3088_v52 = vrot.slane %v6404_v45, %v7233_v38  ;;  %v3092_v10 = vrot.slane %v6406_v35, %v7233_v38  ;;  %v3096_v21 = vrot.slane %v6408_v47, %v7233_v38 }
 0x2dd   : >> { %v3097_v28 = vmul.f32 %v3068_v56, %v6394_v44  ;;  %v3098_v61 = vmul.f32 %v3072_v19, %v6394_v44  ;;  %v3099_v53 = vmul.f32 %v3076_v25, %v6394_v44  ;;  %v3100_v34 = vmul.f32 %v3080_v30, %v6394_v44 }
 0x2de   : >> { %v3101_v12 = vmul.f32 %v3084_v59, %v6394_v44  ;;  %v3102_v55 = vmul.f32 %v3088_v52, %v6394_v44  ;;  %v3103_v51 = vmul.f32 %v3092_v10, %v6394_v44  ;;  %v3104_v60 = vmul.f32 %v3096_v21, %v6394_v44 }
 0x2df   : >> { %v3108_v32 = vrot.slane %v6394_v44, %v7234_v39  ;;  %v3112_v16 = vrot.slane %v6396_v5, %v7234_v39  ;;  %v3116_v62 = vrot.slane %v6398_v9, %v7234_v39  ;;  %v3120_v63 = vrot.slane %v6400_v48, %v7234_v39 }
 0x2e0   : >> { %v3124_v22 = vrot.slane %v6402_v40, %v7234_v39  ;;  %v3128_v23 = vrot.slane %v6404_v45, %v7234_v39  ;;  %v3132_v57 = vrot.slane %v6406_v35, %v7234_v39  ;;  %v3136_v14 = vrot.slane %v6408_v47, %v7234_v39 }
 0x2e1   : >> { %v3137_v43 = vmul.f32 %v3108_v32, %v6396_v5  ;;  %v3138_v4 = vmul.f32 %v3112_v16, %v6396_v5  ;;  %v3139_v58 = vmul.f32 %v3116_v62, %v6396_v5  ;;  %v3140_v18 = vmul.f32 %v3120_v63, %v6396_v5 }
 0x2e2   : >> { %v3141_v29 = vmul.f32 %v3124_v22, %v6396_v5  ;;  %v3142_v6 = vmul.f32 %v3128_v23, %v6396_v5  ;;  %v3143_v50 = vmul.f32 %v3132_v57, %v6396_v5  ;;  %v3144_v13 = vmul.f32 %v3136_v14, %v6396_v5 }
 0x2e3   : >> { %v3145_v37 = vadd.f32 %v3137_v43, %v3097_v28  ;;  %v3146_v17 = vadd.f32 %v3138_v4, %v3098_v61  ;;  %v3147_v1 = vadd.f32 %v3139_v58, %v3099_v53  ;;  %v3148_v36 = vadd.f32 %v3140_v18, %v3100_v34 }
 0x2e4   : >> { %v3149_v3 = vadd.f32 %v3141_v29, %v3101_v12  ;;  %v3150_v31 = vadd.f32 %v3142_v6, %v3102_v55  ;;  %v3151_v46 = vadd.f32 %v3143_v50, %v3103_v51  ;;  %v3152_v49 = vadd.f32 %v3144_v13, %v3104_v60 }
 0x2e5   : >> { %v3156_v11 = vrot.slane %v6394_v44, %v7235_v20  ;;  %v3160_v26 = vrot.slane %v6396_v5, %v7235_v20  ;;  %v3164_v0 = vrot.slane %v6398_v9, %v7235_v20  ;;  %v3168_v15 = vrot.slane %v6400_v48, %v7235_v20 }
 0x2e6   : >> { %v3172_v24 = vrot.slane %v6402_v40, %v7235_v20  ;;  %v3176_v41 = vrot.slane %v6404_v45, %v7235_v20  ;;  %v3180_v42 = vrot.slane %v6406_v35, %v7235_v20  ;;  %v3184_v56 = vrot.slane %v6408_v47, %v7235_v20 }
 0x2e7   : >> { %v3185_v19 = vmul.f32 %v3156_v11, %v6398_v9  ;;  %v3186_v25 = vmul.f32 %v3160_v26, %v6398_v9  ;;  %v3187_v30 = vmul.f32 %v3164_v0, %v6398_v9  ;;  %v3188_v59 = vmul.f32 %v3168_v15, %v6398_v9 }
 0x2e8   : >> { %v3189_v52 = vmul.f32 %v3172_v24, %v6398_v9  ;;  %v3190_v10 = vmul.f32 %v3176_v41, %v6398_v9  ;;  %v3191_v21 = vmul.f32 %v3180_v42, %v6398_v9  ;;  %v3192_v28 = vmul.f32 %v3184_v56, %v6398_v9 }
 0x2e9   : >> { %v3193_v61 = vadd.f32 %v3185_v19, %v3145_v37  ;;  %v3194_v53 = vadd.f32 %v3186_v25, %v3146_v17  ;;  %v3195_v34 = vadd.f32 %v3187_v30, %v3147_v1  ;;  %v3196_v12 = vadd.f32 %v3188_v59, %v3148_v36 }
 0x2ea   : >> { %v3197_v55 = vadd.f32 %v3189_v52, %v3149_v3  ;;  %v3198_v51 = vadd.f32 %v3190_v10, %v3150_v31  ;;  %v3199_v60 = vadd.f32 %v3191_v21, %v3151_v46  ;;  %v3200_v32 = vadd.f32 %v3192_v28, %v3152_v49 }
 0x2eb   : >> { %v3204_v16 = vrot.slane %v6394_v44, %v7236_v7  ;;  %v3208_v62 = vrot.slane %v6396_v5, %v7236_v7  ;;  %v3212_v63 = vrot.slane %v6398_v9, %v7236_v7  ;;  %v3216_v22 = vrot.slane %v6400_v48, %v7236_v7 }
 0x2ec   : >> { %v3220_v23 = vrot.slane %v6402_v40, %v7236_v7  ;;  %v3224_v57 = vrot.slane %v6404_v45, %v7236_v7  ;;  %v3228_v14 = vrot.slane %v6406_v35, %v7236_v7  ;;  %v3232_v43 = vrot.slane %v6408_v47, %v7236_v7 }
 0x2ed   : >> { %v3233_v4 = vmul.f32 %v3204_v16, %v6400_v48  ;;  %v3234_v58 = vmul.f32 %v3208_v62, %v6400_v48  ;;  %v3235_v18 = vmul.f32 %v3212_v63, %v6400_v48  ;;  %v3236_v29 = vmul.f32 %v3216_v22, %v6400_v48 }
 0x2ee   : >> { %v3237_v6 = vmul.f32 %v3220_v23, %v6400_v48  ;;  %v3238_v50 = vmul.f32 %v3224_v57, %v6400_v48  ;;  %v3239_v13 = vmul.f32 %v3228_v14, %v6400_v48  ;;  %v3240_v37 = vmul.f32 %v3232_v43, %v6400_v48 }
 0x2ef   : >> { %v3241_v17 = vadd.f32 %v3233_v4, %v3193_v61  ;;  %v3242_v1 = vadd.f32 %v3234_v58, %v3194_v53  ;;  %v3243_v36 = vadd.f32 %v3235_v18, %v3195_v34  ;;  %v3244_v3 = vadd.f32 %v3236_v29, %v3196_v12 }
 0x2f0   : >> { %v3245_v31 = vadd.f32 %v3237_v6, %v3197_v55  ;;  %v3246_v46 = vadd.f32 %v3238_v50, %v3198_v51  ;;  %v3247_v49 = vadd.f32 %v3239_v13, %v3199_v60  ;;  %v3248_v11 = vadd.f32 %v3240_v37, %v3200_v32 }
 0x2f1   : >> { %v3252_v26 = vrot.slane %v6394_v44, %v7237_v54  ;;  %v3256_v0 = vrot.slane %v6396_v5, %v7237_v54  ;;  %v3260_v15 = vrot.slane %v6398_v9, %v7237_v54  ;;  %v3264_v24 = vrot.slane %v6400_v48, %v7237_v54 }
 0x2f2   : >> { %v3268_v41 = vrot.slane %v6402_v40, %v7237_v54  ;;  %v3272_v42 = vrot.slane %v6404_v45, %v7237_v54  ;;  %v3276_v56 = vrot.slane %v6406_v35, %v7237_v54  ;;  %v3280_v19 = vrot.slane %v6408_v47, %v7237_v54 }
 0x2f3   : >> { %v3281_v25 = vmul.f32 %v3252_v26, %v6402_v40  ;;  %v3282_v30 = vmul.f32 %v3256_v0, %v6402_v40  ;;  %v3283_v59 = vmul.f32 %v3260_v15, %v6402_v40  ;;  %v3284_v52 = vmul.f32 %v3264_v24, %v6402_v40 }
 0x2f4   : >> { %v3285_v10 = vmul.f32 %v3268_v41, %v6402_v40  ;;  %v3286_v21 = vmul.f32 %v3272_v42, %v6402_v40  ;;  %v3287_v28 = vmul.f32 %v3276_v56, %v6402_v40  ;;  %v3288_v61 = vmul.f32 %v3280_v19, %v6402_v40 }
 0x2f5   : >> { %v3289_v53 = vadd.f32 %v3281_v25, %v3241_v17  ;;  %v3290_v34 = vadd.f32 %v3282_v30, %v3242_v1  ;;  %v3291_v12 = vadd.f32 %v3283_v59, %v3243_v36  ;;  %v3292_v55 = vadd.f32 %v3284_v52, %v3244_v3 }
 0x2f6   : >> { %v3293_v51 = vadd.f32 %v3285_v10, %v3245_v31  ;;  %v3294_v60 = vadd.f32 %v3286_v21, %v3246_v46  ;;  %v3295_v32 = vadd.f32 %v3287_v28, %v3247_v49  ;;  %v3296_v16 = vadd.f32 %v3288_v61, %v3248_v11 }
 0x2f7   : >> { %v3300_v62 = vrot.slane %v6394_v44, %v7238_v8  ;;  %v3304_v63 = vrot.slane %v6396_v5, %v7238_v8  ;;  %v3308_v22 = vrot.slane %v6398_v9, %v7238_v8  ;;  %v3312_v23 = vrot.slane %v6400_v48, %v7238_v8 }
 0x2f8   : >> { %v3316_v57 = vrot.slane %v6402_v40, %v7238_v8  ;;  %v3320_v14 = vrot.slane %v6404_v45, %v7238_v8  ;;  %v3324_v43 = vrot.slane %v6406_v35, %v7238_v8  ;;  %v3328_v4 = vrot.slane %v6408_v47, %v7238_v8 }
 0x2f9   : >> { %v3329_v58 = vmul.f32 %v3300_v62, %v6404_v45  ;;  %v3330_v18 = vmul.f32 %v3304_v63, %v6404_v45  ;;  %v3331_v29 = vmul.f32 %v3308_v22, %v6404_v45  ;;  %v3332_v6 = vmul.f32 %v3312_v23, %v6404_v45 }
 0x2fa   : >> { %v3333_v50 = vmul.f32 %v3316_v57, %v6404_v45  ;;  %v3334_v13 = vmul.f32 %v3320_v14, %v6404_v45  ;;  %v3335_v37 = vmul.f32 %v3324_v43, %v6404_v45  ;;  %v3336_v17 = vmul.f32 %v3328_v4, %v6404_v45 }
 0x2fb   : >> { %v3337_v1 = vadd.f32 %v3329_v58, %v3289_v53  ;;  %v3338_v36 = vadd.f32 %v3330_v18, %v3290_v34  ;;  %v3339_v3 = vadd.f32 %v3331_v29, %v3291_v12  ;;  %v3340_v31 = vadd.f32 %v3332_v6, %v3292_v55 }
 0x2fc   : >> { %v3341_v46 = vadd.f32 %v3333_v50, %v3293_v51  ;;  %v3342_v49 = vadd.f32 %v3334_v13, %v3294_v60  ;;  %v3343_v11 = vadd.f32 %v3335_v37, %v3295_v32  ;;  %v3344_v26 = vadd.f32 %v3336_v17, %v3296_v16 }
 0x2fd   : >> { %v3348_v0 = vrot.slane %v6394_v44, %v7239_v33  ;;  %v3352_v15 = vrot.slane %v6396_v5, %v7239_v33  ;;  %v3356_v24 = vrot.slane %v6398_v9, %v7239_v33  ;;  %v3360_v41 = vrot.slane %v6400_v48, %v7239_v33 }
 0x2fe   : >> { %v3364_v42 = vrot.slane %v6402_v40, %v7239_v33  ;;  %v3368_v56 = vrot.slane %v6404_v45, %v7239_v33  ;;  %v3372_v19 = vrot.slane %v6406_v35, %v7239_v33  ;;  %v3376_v25 = vrot.slane %v6408_v47, %v7239_v33 }
 0x2ff   : >> { %v3377_v30 = vmul.f32 %v3348_v0, %v6406_v35  ;;  %v3378_v59 = vmul.f32 %v3352_v15, %v6406_v35  ;;  %v3379_v52 = vmul.f32 %v3356_v24, %v6406_v35  ;;  %v3380_v10 = vmul.f32 %v3360_v41, %v6406_v35 }
 0x300   : >> { %v3381_v21 = vmul.f32 %v3364_v42, %v6406_v35  ;;  %v3382_v28 = vmul.f32 %v3368_v56, %v6406_v35  ;;  %v3383_v61 = vmul.f32 %v3372_v19, %v6406_v35  ;;  %v3384_v53 = vmul.f32 %v3376_v25, %v6406_v35 }
 0x301   : >> { %v3385_v34 = vadd.f32 %v3377_v30, %v3337_v1  ;;  %v3386_v12 = vadd.f32 %v3378_v59, %v3338_v36  ;;  %v3387_v55 = vadd.f32 %v3379_v52, %v3339_v3  ;;  %v3388_v51 = vadd.f32 %v3380_v10, %v3340_v31 }
 0x302   : >> { %v3389_v60 = vadd.f32 %v3381_v21, %v3341_v46  ;;  %v3390_v32 = vadd.f32 %v3382_v28, %v3342_v49  ;;  %v3391_v16 = vadd.f32 %v3383_v61, %v3343_v11  ;;  %v3392_v62 = vadd.f32 %v3384_v53, %v3344_v26 }
 0x303   : >> { %v3396_v63 = vrot.slane %v6394_v44, %v7240_v2  ;;  %v3400_v22 = vrot.slane %v6396_v5, %v7240_v2  ;;  %v3404_v23 = vrot.slane %v6398_v9, %v7240_v2  ;;  %v3408_v57 = vrot.slane %v6400_v48, %v7240_v2 }
 0x304   : >> { %v3412_v14 = vrot.slane %v6402_v40, %v7240_v2  ;;  %v3416_v43 = vrot.slane %v6404_v45, %v7240_v2  ;;  %v3420_v4 = vrot.slane %v6406_v35, %v7240_v2  ;;  %v3424_v44 = vrot.slane %v6408_v47, %v7240_v2 }
 0x305   : >> { %v3425_v5 = vmul.f32 %v3396_v63, %v6408_v47  ;;  %v3426_v58 = vmul.f32 %v3400_v22, %v6408_v47  ;;  %v3427_v9 = vmul.f32 %v3404_v23, %v6408_v47  ;;  %v3428_v48 = vmul.f32 %v3408_v57, %v6408_v47 }
 0x306   : >> { %v3429_v18 = vmul.f32 %v3412_v14, %v6408_v47  ;;  %v3430_v40 = vmul.f32 %v3416_v43, %v6408_v47  ;;  %v3431_v45 = vmul.f32 %v3420_v4, %v6408_v47  ;;  %v3432_v29 = vmul.f32 %v3424_v44, %v6408_v47 }
 0x307   : >> { %v6602_v35 = vadd.f32 %v3425_v5, %v3385_v34  ;;  %v6604_v6 = vadd.f32 %v3426_v58, %v3386_v12  ;;  %v6606_v50 = vadd.f32 %v3427_v9, %v3387_v55  ;;  %v6608_v13 = vadd.f32 %v3428_v48, %v3388_v51 }
 0x308   : >> { %v6610_v37 = vadd.f32 %v3429_v18, %v3389_v60  ;;  %v6612_v17 = vadd.f32 %v3430_v40, %v3390_v32  ;;  %v6614_v1 = vadd.f32 %v3431_v45, %v3391_v16  ;;  %v6616_v36 = vadd.f32 %v3432_v29, %v3392_v62 }
 0x309   : >> { %v3444_v3 = vrot.slane %v6602_v35, %v7233_v38 }
 0x30a   : >> { %v3460_v47 = vrot.slane %v6610_v37, %v7233_v38  ;;  %v3500_v31 = vrot.slane %v6610_v37, %v7234_v39  ;;  %v3548_v46 = vrot.slane %v6610_v37, %v7235_v20  ;;  %v3596_v49 = vrot.slane %v6610_v37, %v7236_v7 }
 0x30b   : >> { %v3472_v11 = vrot.slane %v6616_v36, %v7233_v38  ;;  %v3512_v26 = vrot.slane %v6616_v36, %v7234_v39  ;;  %v3560_v0 = vrot.slane %v6616_v36, %v7235_v20  ;;  %v3608_v15 = vrot.slane %v6616_v36, %v7236_v7 }
 0x30c   : >> { %v3656_v24 = vrot.slane %v6616_v36, %v7237_v54  ;;  %v3704_v41 = vrot.slane %v6616_v36, %v7238_v8  ;;  %v3752_v42 = vrot.slane %v6616_v36, %v7239_v33  ;;  %v3800_v56 = vrot.slane %v6616_v36, %v7240_v2 }
 0x30d   : >> { %v3480_v19 = vmul.f32 %v3472_v11, %v6602_v35  ;;  %v3520_v25 = vmul.f32 %v3512_v26, %v6604_v6  ;;  %v3568_v30 = vmul.f32 %v3560_v0, %v6606_v50  ;;  %v3616_v59 = vmul.f32 %v3608_v15, %v6608_v13 }
 0x30e   : >> { %v3664_v52 = vmul.f32 %v3656_v24, %v6610_v37  ;;  %v3712_v10 = vmul.f32 %v3704_v41, %v6612_v17  ;;  %v3760_v21 = vmul.f32 %v3752_v42, %v6614_v1  ;;  %v3808_v28 = vmul.f32 %v3800_v56, %v6616_v36 }
 0x30f   : >> { %v3528_v61 = vadd.f32 %v3520_v25, %v3480_v19  ;;  %v3468_v53 = vrot.slane %v6614_v1, %v7233_v38  ;;  %v3508_v34 = vrot.slane %v6614_v1, %v7234_v39  ;;  %v3556_v12 = vrot.slane %v6614_v1, %v7235_v20 }
 0x310   : >> { %v3604_v55 = vrot.slane %v6614_v1, %v7236_v7  ;;  %v3652_v51 = vrot.slane %v6614_v1, %v7237_v54  ;;  %v3700_v60 = vrot.slane %v6614_v1, %v7238_v8  ;;  %v3748_v32 = vrot.slane %v6614_v1, %v7239_v33 }
 0x311   : >> { %v3576_v16 = vadd.f32 %v3568_v30, %v3528_v61  ;;  %v3479_v62 = vmul.f32 %v3468_v53, %v6602_v35  ;;  %v3519_v63 = vmul.f32 %v3508_v34, %v6604_v6  ;;  %v3567_v22 = vmul.f32 %v3556_v12, %v6606_v50 }
 0x312   : >> { %v3615_v23 = vmul.f32 %v3604_v55, %v6608_v13  ;;  %v3663_v57 = vmul.f32 %v3652_v51, %v6610_v37  ;;  %v3711_v14 = vmul.f32 %v3700_v60, %v6612_v17  ;;  %v3759_v43 = vmul.f32 %v3748_v32, %v6614_v1 }
 0x313   : >> { %v3624_v4 = vadd.f32 %v3616_v59, %v3576_v16  ;;  %v3527_v44 = vadd.f32 %v3519_v63, %v3479_v62  ;;  %v3796_v5 = vrot.slane %v6614_v1, %v7240_v2  ;;  %v3464_v58 = vrot.slane %v6612_v17, %v7233_v38 }
 0x314   : >> { %v3504_v9 = vrot.slane %v6612_v17, %v7234_v39  ;;  %v3552_v48 = vrot.slane %v6612_v17, %v7235_v20  ;;  %v3600_v18 = vrot.slane %v6612_v17, %v7236_v7  ;;  %v3648_v40 = vrot.slane %v6612_v17, %v7237_v54 }
 0x315   : >> { %v3672_v45 = vadd.f32 %v3664_v52, %v3624_v4  ;;  %v3575_v29 = vadd.f32 %v3567_v22, %v3527_v44  ;;  %v3807_v11 = vmul.f32 %v3796_v5, %v6616_v36  ;;  %v3478_v26 = vmul.f32 %v3464_v58, %v6602_v35 }
 0x316   : >> { %v3518_v0 = vmul.f32 %v3504_v9, %v6604_v6  ;;  %v3566_v15 = vmul.f32 %v3552_v48, %v6606_v50  ;;  %v3614_v24 = vmul.f32 %v3600_v18, %v6608_v13  ;;  %v3662_v41 = vmul.f32 %v3648_v40, %v6610_v37 }
 0x317   : >> { %v3720_v42 = vadd.f32 %v3712_v10, %v3672_v45  ;;  %v3623_v56 = vadd.f32 %v3615_v23, %v3575_v29  ;;  %v3696_v19 = vrot.slane %v6612_v17, %v7238_v8  ;;  %v3744_v25 = vrot.slane %v6612_v17, %v7239_v33 }
 0x318   : >> { %v3526_v30 = vadd.f32 %v3518_v0, %v3478_v26  ;;  %v3792_v59 = vrot.slane %v6612_v17, %v7240_v2  ;;  %v3477_v52 = vmul.f32 %v3460_v47, %v6602_v35  ;;  %v3517_v61 = vmul.f32 %v3500_v31, %v6604_v6 }
 0x319   : >> { %v3768_v53 = vadd.f32 %v3760_v21, %v3720_v42  ;;  %v3671_v34 = vadd.f32 %v3663_v57, %v3623_v56  ;;  %v3710_v12 = vmul.f32 %v3696_v19, %v6612_v17  ;;  %v3758_v10 = vmul.f32 %v3744_v25, %v6614_v1 }
 0x31a   : >> { %v3574_v55 = vadd.f32 %v3566_v15, %v3526_v30  ;;  %v3806_v51 = vmul.f32 %v3792_v59, %v6616_v36  ;;  %v3525_v60 = vadd.f32 %v3517_v61, %v3477_v52  ;;  %v3565_v32 = vmul.f32 %v3548_v46, %v6606_v50 }
 0x31b   : >> { %v3816_v16 = vadd.f32 %v3808_v28, %v3768_v53  ;;  %v3719_v62 = vadd.f32 %v3711_v14, %v3671_v34  ;;  %v3613_v47 = vmul.f32 %v3596_v49, %v6608_v13  ;;  %v3644_v31 = vrot.slane %v6610_v37, %v7237_v54 }
 0x31c   : >> { %v3622_v21 = vadd.f32 %v3614_v24, %v3574_v55  ;;  %v3573_v63 = vadd.f32 %v3565_v32, %v3525_v60  ;;  %v3692_v22 = vrot.slane %v6610_v37, %v7238_v8  ;;  %v3740_v23 = vrot.slane %v6610_v37, %v7239_v33 }
 0x31d   : >> { %4016 = vmatpush3.msra.mxu1 %v3816_v16  ;;  %v3767_v46 = vadd.f32 %v3759_v43, %v3719_v62  ;;  %v3661_v28 = vmul.f32 %v3644_v31, %v6610_v37  ;;  %v3788_v57 = vrot.slane %v6610_v37, %v7240_v2  ;;  %v3456_v49 = vrot.slane %v6608_v13, %v7233_v38 }
 0x31e   : >> { %4017 = vmatprep.subr.mxu1 %v4074_v27  ;;  %v3670_v14 = vadd.f32 %v3662_v41, %v3622_v21  ;;  %v3621_v4 = vadd.f32 %v3613_v47, %v3573_v63  ;;  %v3709_v44 = vmul.f32 %v3692_v22, %v6612_v17  ;;  %v3757_v5 = vmul.f32 %v3740_v23, %v6614_v1 }
 0x31f   : >> { %v3815_v58 = vadd.f32 %v3807_v11, %v3767_v46  ;;  %v3805_v9 = vmul.f32 %v3788_v57, %v6616_v36  ;;  %v3476_v43 = vmul.f32 %v3456_v49, %v6602_v35  ;;  %v3496_v48 = vrot.slane %v6608_v13, %v7234_v39 }
 0x320   : >> { %v3718_v18 = vadd.f32 %v3710_v12, %v3670_v14  ;;  %v3669_v40 = vadd.f32 %v3661_v28, %v3621_v4  ;;  %v3544_v45 = vrot.slane %v6608_v13, %v7235_v20  ;;  %v3592_v29 = vrot.slane %v6608_v13, %v7236_v7 }
 0x321   : >> { %4018 = vmatpush3.msra.mxu1 %v3815_v58  ;;  %v3516_v26 = vmul.f32 %v3496_v48, %v6604_v6  ;;  %v3640_v11 = vrot.slane %v6608_v13, %v7237_v54  ;;  %v3688_v0 = vrot.slane %v6608_v13, %v7238_v8  ;;  %v3736_v15 = vrot.slane %v6608_v13, %v7239_v33 }
 0x322   : >> { %4019 = vmatprep.subr.mxu1 %v4074_v27  ;;  %v3766_v24 = vadd.f32 %v3758_v10, %v3718_v18  ;;  %v3717_v41 = vadd.f32 %v3709_v44, %v3669_v40  ;;  %v3564_v42 = vmul.f32 %v3544_v45, %v6606_v50  ;;  %v3612_v56 = vmul.f32 %v3592_v29, %v6608_v13 }
 0x323   : >> { %v3524_v19 = vadd.f32 %v3516_v26, %v3476_v43  ;;  %v3660_v25 = vmul.f32 %v3640_v11, %v6610_v37  ;;  %v3708_v30 = vmul.f32 %v3688_v0, %v6612_v17  ;;  %v3756_v59 = vmul.f32 %v3736_v15, %v6614_v1 }
 0x324   : >> { %v3814_v52 = vadd.f32 %v3806_v51, %v3766_v24  ;;  %v3765_v61 = vadd.f32 %v3757_v5, %v3717_v41  ;;  %v3784_v53 = vrot.slane %v6608_v13, %v7240_v2  ;;  %v3452_v34 = vrot.slane %v6606_v50, %v7233_v38 }
 0x325   : >> { %v3572_v12 = vadd.f32 %v3564_v42, %v3524_v19  ;;  %v3492_v10 = vrot.slane %v6606_v50, %v7234_v39  ;;  %v3540_v55 = vrot.slane %v6606_v50, %v7235_v20  ;;  %v3588_v60 = vrot.slane %v6606_v50, %v7236_v7 }
 0x326   : >> { %4020 = vmatpush3.msra.mxu1 %v3814_v52  ;;  %v3813_v32 = vadd.f32 %v3805_v9, %v3765_v61  ;;  %v3804_v51 = vmul.f32 %v3784_v53, %v6616_v36  ;;  %v3475_v16 = vmul.f32 %v3452_v34, %v6602_v35  ;;  %v3636_v62 = vrot.slane %v6606_v50, %v7237_v54 }
 0x327   : >> { %4021 = vmatprep.subr.mxu1 %v4074_v27  ;;  %v3620_v47 = vadd.f32 %v3612_v56, %v3572_v12  ;;  %v3515_v31 = vmul.f32 %v3492_v10, %v6604_v6  ;;  %v3563_v21 = vmul.f32 %v3540_v55, %v6606_v50  ;;  %v3611_v63 = vmul.f32 %v3588_v60, %v6608_v13 }
 0x328   : >> { %4022 = vmatpush3.msra.mxu1 %v3813_v32  ;;  %v3659_v22 = vmul.f32 %v3636_v62, %v6610_v37  ;;  %v3684_v23 = vrot.slane %v6606_v50, %v7238_v8  ;;  %v3732_v46 = vrot.slane %v6606_v50, %v7239_v33  ;;  %v3780_v28 = vrot.slane %v6606_v50, %v7240_v2 }
 0x329   : >> { %4023 = vmatprep.subr.mxu1 %v4074_v27  ;;  %v3668_v57 = vadd.f32 %v3660_v25, %v3620_v47  ;;  %v3523_v49 = vadd.f32 %v3515_v31, %v3475_v16  ;;  %v3448_v14 = vrot.slane %v6604_v6, %v7233_v38  ;;  %v3488_v4 = vrot.slane %v6604_v6, %v7234_v39 }
 0x32a   : >> { %v3707_v44 = vmul.f32 %v3684_v23, %v6612_v17  ;;  %v3755_v5 = vmul.f32 %v3732_v46, %v6614_v1  ;;  %v3803_v58 = vmul.f32 %v3780_v28, %v6616_v36  ;;  %v3536_v9 = vrot.slane %v6604_v6, %v7235_v20 }
 0x32b   : >> { %v3716_v43 = vadd.f32 %v3708_v30, %v3668_v57  ;;  %v3571_v48 = vadd.f32 %v3563_v21, %v3523_v49  ;;  %v3474_v18 = vmul.f32 %v3448_v14, %v6602_v35  ;;  %v3514_v40 = vmul.f32 %v3488_v4, %v6604_v6 }
 0x32c   : >> { %v3562_v45 = vmul.f32 %v3536_v9, %v6606_v50  ;;  %v3584_v29 = vrot.slane %v6604_v6, %v7236_v7  ;;  %v3632_v26 = vrot.slane %v6604_v6, %v7237_v54  ;;  %v3680_v11 = vrot.slane %v6604_v6, %v7238_v8 }
 0x32d   : >> { %v3764_v0 = vadd.f32 %v3756_v59, %v3716_v43  ;;  %v3619_v15 = vadd.f32 %v3611_v63, %v3571_v48  ;;  %v3522_v24 = vadd.f32 %v3514_v40, %v3474_v18  ;;  %v3728_v41 = vrot.slane %v6604_v6, %v7239_v33 }
 0x32e   : >> { %v3610_v42 = vmul.f32 %v3584_v29, %v6608_v13  ;;  %v3658_v56 = vmul.f32 %v3632_v26, %v6610_v37  ;;  %v3706_v19 = vmul.f32 %v3680_v11, %v6612_v17  ;;  %v3776_v25 = vrot.slane %v6604_v6, %v7240_v2 }
 0x32f   : >> { %v3812_v30 = vadd.f32 %v3804_v51, %v3764_v0  ;;  %v3667_v52 = vadd.f32 %v3659_v22, %v3619_v15  ;;  %v3570_v61 = vadd.f32 %v3562_v45, %v3522_v24  ;;  %v3754_v53 = vmul.f32 %v3728_v41, %v6614_v1 }
 0x330   : >> { %v3802_v59 = vmul.f32 %v3776_v25, %v6616_v36  ;;  %v3473_v34 = vmul.f32 %v3444_v3, %v6602_v35  ;;  %v3484_v12 = vrot.slane %v6602_v35, %v7234_v39  ;;  %v3532_v10 = vrot.slane %v6602_v35, %v7235_v20 }
 0x331   : >> { %4024 = vmatpush3.msra.mxu1 %v3812_v30  ;;  %v3715_v55 = vadd.f32 %v3707_v44, %v3667_v52  ;;  %v3618_v60 = vadd.f32 %v3610_v42, %v3570_v61  ;;  %v3580_v32 = vrot.slane %v6602_v35, %v7236_v7  ;;  %v3628_v51 = vrot.slane %v6602_v35, %v7237_v54 }
 0x332   : >> { %4025 = vmatprep.subr.mxu1 %v4074_v27  ;;  %v3513_v38 = vmul.f32 %v3484_v12, %v6604_v6  ;;  %v3561_v3 = vmul.f32 %v3532_v10, %v6606_v50  ;;  %v3676_v39 = vrot.slane %v6602_v35, %v7238_v8  ;;  %v3724_v20 = vrot.slane %v6602_v35, %v7239_v33 }
 0x333   : >> { %v3763_v16 = vadd.f32 %v3755_v5, %v3715_v55  ;;  %v3666_v62 = vadd.f32 %v3658_v56, %v3618_v60  ;;  %v3609_v47 = vmul.f32 %v3580_v32, %v6608_v13  ;;  %v3657_v7 = vmul.f32 %v3628_v51, %v6610_v37 }
 0x334   : >> { %v3521_v31 = vadd.f32 %v3513_v38, %v3473_v34  ;;  %v3705_v54 = vmul.f32 %v3676_v39, %v6612_v17  ;;  %v3753_v21 = vmul.f32 %v3724_v20, %v6614_v1  ;;  %v3772_v6 = vrot.slane %v6602_v35, %v7240_v2 }
 0x335   : >> { %v3811_v50 = vadd.f32 %v3803_v58, %v3763_v16  ;;  %v3714_v63 = vadd.f32 %v3706_v19, %v3666_v62 }
 0x336   : >> { %v3569_v8 = vadd.f32 %v3561_v3, %v3521_v31  ;;  %v3801_v22 = vmul.f32 %v3772_v6, %v6616_v36  ;;  %v7241_v36 = vld [vmem:[#allocation15_spill] sm:$0xff] }
 0x337   : >> { %4026 = vmatpush3.msra.mxu1 %v3811_v50  ;;  %v3762_v33 = vadd.f32 %v3754_v53, %v3714_v63 }
 0x338   : >> { %4027 = vmatprep.subr.mxu1 %v4074_v27  ;;  %v3617_v13 = vadd.f32 %v3609_v47, %v3569_v8 }
 0x339   : >> { %v3810_v37 = vadd.f32 %v3802_v59, %v3762_v33 }
 0x33a   : >> { %v3665_v17 = vadd.f32 %v3657_v7, %v3617_v13 }
 0x33b   : >> { %4028 = vmatpush3.msra.mxu1 %v3810_v37 }
 0x33c   : >> { %4029 = vmatprep.subr.mxu1 %v4074_v27  ;;  %v3713_v2 = vadd.f32 %v3705_v54, %v3665_v17 }
 0x33e   : >> { %v3761_v35 = vadd.f32 %v3753_v21, %v3713_v2 }
 0x340   : >> { %v3809_v1 = vadd.f32 %v3801_v22, %v3761_v35 }
 0x342   : >> { %4030 = vmatpush3.msra.mxu1 %v3809_v1 }
 0x343   : >> { %4032 = vmatmul.mubr.msk.f32.vlgmr.msra.gmra.mxu1 %vm3817_vm10, %v7241_v36 }
 0x401   : > { %263 = sbr.rel (!%p261_p4) target bundleno = 23 (0x17), region = 79 }
 0x403   : >> { %v3887_v23 = vpop.f32.mrf.mxu1 }
 0x404   : >> { %3892 = vst [vmem:[%s3891_s6] sm:$0x1] %v3887_v23 }
 0x405   : >> { %v4033_v46 = vpop.f32.mrf.mxu1 }
 0x406 PF: > { %s15_s18 = sadd.s32 1, %s4066_s18  }
 0x407   : > { %p12_p5 = scmp.ge.s32.totalorder %s15_s18, 4  }
 0x409   :  { %14 = sbr.rel (!%p12_p5) target bundleno = 1 (0x1), region = 90 }

</bundles_post_ra>
